<compile_context>
chip_gen: v5e
topology: v5e:2x2
jax: 0.10.0
libtpu: 0.0.40
codegen_flags: <defaults>
</compile_context>

<pallas_src>
import jax
import jax.numpy as jnp
from jax.experimental import pallas as pl
from jax.experimental.pallas import tpu as pltpu

# Toy, module-consistent sizes (torch defaults are 768/1024/1024, heads=8).
TEXT_DIM = 96
IMAGE_DIM = 128
FUSION_DIM = 128
FFN_DIM = 4 * FUSION_DIM
HEADS = 8
HEAD_DIM = FUSION_DIM // HEADS
BATCH = 2
MAX_BATCH_BLOCK = 256    # batch rows per grid step (review: M>=256 keeps the MXU busy)
PROJ_IN = 128            # text/image features zero-padded to a lane-dense 128
LN_EPS = 1e-5            # torch.nn.LayerNorm default
NUM_VECS = 15            # stacked length-F bias / LayerNorm vectors (f32)


def _round_up(n, m):
    return ((n + m - 1) // m) * m


# ---------------------------------------------------------------------------
# In-kernel math helpers (pure jnp; guaranteed to lower in Mosaic).
# ---------------------------------------------------------------------------
_SQRT_2_OVER_PI = 0.7978845608028654


def _gelu(x):
    # tanh-form GELU: one EUP transcendental instead of a 14-op VALU erf polynomial.
    # Deviation from torch's exact erf GELU is <~1e-3 abs, inside the test tolerance.
    inner = jnp.float32(_SQRT_2_OVER_PI) * (x + jnp.float32(0.044715) * x * x * x)
    return jnp.float32(0.5) * x * (jnp.float32(1.0) + jnp.tanh(inner))


def _layer_norm(x, g, b):
    mu = jnp.mean(x, axis=-1, keepdims=True)
    var = jnp.mean(jnp.square(x - mu), axis=-1, keepdims=True)
    return (x - mu) * jax.lax.rsqrt(var + jnp.float32(LN_EPS)) * g + b


# ---------------------------------------------------------------------------
# Pallas kernel: whole forward pass for one batch block.
# Operands:
#   x_ref     (2, BB, PROJ_IN)  f32   [0]=padded text, [1]=image
#   w_proj    (2, PROJ_IN, F)   bf16  [0]=text_proj.W^T (zero-padded rows), [1]=image_proj.W^T
#   w_sq      (4, F, F)         bf16  [att_t2i (=wv@wo), att_i2t, Wf[:F], Wf[F:]]
#   w_f1      (2, F, 4F)        bf16  ffn first linear per layer
#   w_f2      (2, 4F, F)        bf16  ffn second linear per layer
#   vecs      (NUM_VECS, F)     f32   stacked biases / LN gamma,beta (see pack_params)
#   b_f1      (2, 4F)           f32   ffn first-linear biases
# ---------------------------------------------------------------------------
def _fusion_kernel(x_ref, w_proj_ref, w_sq_ref, w_f1_ref, w_f2_ref,
                   vec_ref, b_f1_ref, out_ref):
    V = vec_ref[...]            # (NUM_VECS, F) f32, tiny -> fully loaded
    BF1 = b_f1_ref[...]         # (2, 4F) f32

    def vec(i):                 # static row slice -> (1, F)
        # NOTE: single-row extract per grid step; cheap at these sizes.  Folding
        # biases into weights is not possible here (no spare augmented column).
        return V[i:i + 1]

    text = x_ref[0].astype(jnp.bfloat16)     # bf16 matmul operands, f32 accumulate
    image = x_ref[1].astype(jnp.bfloat16)

    text_proj = jnp.dot(text, w_proj_ref[0],
                        preferred_element_type=jnp.float32) + vec(0)
    image_proj = jnp.dot(image, w_proj_ref[1],
                         preferred_element_type=jnp.float32) + vec(1)

    def cross_attention(x, ctx, layer):
        # CrossAttentionLayer.forward for seq_len == 1:
        #   softmax over one key == 1.0 exactly  =>  attention(q, k, v) == v,
        # so the whole attention reduces to out_proj(v_proj(norm1(ctx))) + x, and the
        # v/o pair is pre-fused host-side into w_att / b_att (one matmul).
        base = 2 + 6 * layer
        n1g, n1b = vec(base + 0), vec(base + 1)
        b_att = vec(base + 2)
        n2g, n2b = vec(base + 3), vec(base + 4)
        f2b = vec(base + 5)
        w_att = w_sq_ref[layer]               # (F, F)  = wv @ wo
        wf1 = w_f1_ref[layer]                 # (F, 4F)
        wf2 = w_f2_ref[layer]                 # (4F, F)
        bf1 = BF1[layer:layer + 1]            # (1, 4F)

        # attention block (fused): norm1(ctx) @ (wv@wo) + (vb@wo + ob) + residual
        cn = _layer_norm(ctx, n1g, n1b).astype(jnp.bfloat16)
        x = jnp.dot(cn, w_att, preferred_element_type=jnp.float32) + b_att + x

        # FFN block: f2(gelu(f1(norm2(x)))) + residual
        residual = x
        h = _layer_norm(x, n2g, n2b).astype(jnp.bfloat16)
        h = jnp.dot(h, wf1, preferred_element_type=jnp.float32) + bf1
        h = _gelu(h).astype(jnp.bfloat16)
        h = jnp.dot(h, wf2, preferred_element_type=jnp.float32) + f2b
        return h + residual

    text_att = cross_attention(text_proj, image_proj, 0).astype(jnp.bfloat16)
    image_att = cross_attention(image_proj, text_proj, 1).astype(jnp.bfloat16)

    # final_proj(concat([t, i], -1)) == t @ Wf[:F] + i @ Wf[F:] + bf  (no lane concat)
    out_ref[...] = (
        jnp.dot(text_att, w_sq_ref[2], preferred_element_type=jnp.float32)
        + jnp.dot(image_att, w_sq_ref[3], preferred_element_type=jnp.float32)
        + vec(14))


# ---------------------------------------------------------------------------
# Host-side parameter packing (torch-layout params -> 6 stacked kernel operands).
# Weights are stored pre-transposed as (in, out) = torch weight.T; the v/o pair of
# each cross-attention layer is algebraically fused (valid because attention is the
# identity at seq_len==1).  Matmul weights are cast to bf16; biases / LN stay f32.
# ---------------------------------------------------------------------------
def pack_params(params):
    F = FUSION_DIM
    t2i, i2t = params["t2i"], params["i2t"]

    def pad_in(w):  # zero-pad the input (row) axis up to PROJ_IN
        out = jnp.zeros((PROJ_IN, F), jnp.float32)
        return out.at[: w.shape[0]].set(w)

    def fuse_vo(p):  # out_proj(v_proj(x)) == x @ (wv@wo) + (vb@wo + ob)
        w_att = p["vw"] @ p["ow"]
        b_att = p["vb"] @ p["ow"] + p["ob"]
        return w_att, b_att

    watt_t, batt_t = fuse_vo(t2i)
    watt_i, batt_i = fuse_vo(i2t)

    w_proj = jnp.stack([pad_in(params["wt"]), pad_in(params["wi"])]).astype(jnp.bfloat16)
    w_sq = jnp.stack([watt_t, watt_i,
                      params["wf"][:F], params["wf"][F:]]).astype(jnp.bfloat16)
    w_f1 = jnp.stack([t2i["f1w"], i2t["f1w"]]).astype(jnp.bfloat16)
    w_f2 = jnp.stack([t2i["f2w"], i2t["f2w"]]).astype(jnp.bfloat16)
    vecs = jnp.stack([
        params["bt"], params["bi"],
        t2i["n1g"], t2i["n1b"], batt_t, t2i["n2g"], t2i["n2b"], t2i["f2b"],
        i2t["n1g"], i2t["n1b"], batt_i, i2t["n2g"], i2t["n2b"], i2t["f2b"],
        params["bf"],
    ]).astype(jnp.float32)
    b_f1 = jnp.stack([t2i["f1b"], i2t["f1b"]]).astype(jnp.float32)
    return w_proj, w_sq, w_f1, w_f2, vecs, b_f1


def _build_call(batch_block, n_blocks, b_pad, single_buffer_weights):
    # Grid-invariant weight operands: index_map is constant, so double-buffering them
    # is pure VMEM waste -> request single buffering (fallback handled by caller).
    wkw = {"pipeline_mode": pl.Buffered(1)} if single_buffer_weights else {}
    in_specs = [
        pl.BlockSpec((2, batch_block, PROJ_IN), lambda b: (0, b, 0)),
        pl.BlockSpec((2, PROJ_IN, FUSION_DIM), lambda b: (0, 0, 0), **wkw),
        pl.BlockSpec((4, FUSION_DIM, FUSION_DIM), lambda b: (0, 0, 0), **wkw),
        pl.BlockSpec((2, FUSION_DIM, FFN_DIM), lambda b: (0, 0, 0), **wkw),
        pl.BlockSpec((2, FFN_DIM, FUSION_DIM), lambda b: (0, 0, 0), **wkw),
        pl.BlockSpec((NUM_VECS, FUSION_DIM), lambda b: (0, 0), **wkw),
        pl.BlockSpec((2, FFN_DIM), lambda b: (0, 0), **wkw),
    ]
    return pl.pallas_call(
        _fusion_kernel,
        out_shape=jax.ShapeDtypeStruct((b_pad, FUSION_DIM), jnp.float32),
        grid=(n_blocks,),
        in_specs=in_specs,
        out_specs=pl.BlockSpec((batch_block, FUSION_DIM), lambda b: (b, 0)),
        compiler_params=pltpu.CompilerParams(dimension_semantics=("parallel",)),
        # NOTE: at real 768/1024 dims add vmem_limit_bytes=... so bf16 weights stay
        # resident (v5e/v6e), or stream w_f1/w_f2 from HBM on v7x (64 MiB VMEM).
    )


def text_image_fusion(text_emb, image_emb, params):
    B = text_emb.shape[0]
    # Big-M batch blocks (up to 256 rows), padded to a sublane multiple.
    batch_block = min(MAX_BATCH_BLOCK, _round_up(B, 8))
    b_pad = _round_up(B, batch_block)
    n_blocks = b_pad // batch_block

    # Pad batch rows and features to lane-dense shapes; padded rows are zeros
    # (LayerNorm of a zero row is finite thanks to the eps guard, rows are sliced off).
    x_stack = jnp.zeros((2, b_pad, PROJ_IN), jnp.float32)
    x_stack = x_stack.at[0, :B, :TEXT_DIM].set(text_emb)
    x_stack = x_stack.at[1, :B, :IMAGE_DIM].set(image_emb)

    packed = pack_params(params)

    def run(single_buffer_weights):
        call = _build_call(batch_block, n_blocks, b_pad, single_buffer_weights)
        return jax.block_until_ready(call(x_stack, *packed))

    try:
        out = run(True)
    except Exception:
        # pipeline_mode=pl.Buffered(1) not supported by this jax build / backend path:
        # fall back to default double-buffered weight specs (correctness identical).
        out = run(False)
    return out[:B]


# ---------------------------------------------------------------------------
# Deterministic synthetic parameters mirroring the torch module structure
# (q/k projections are created too: the reference uses them, the kernel does not
#  need them because they have zero effect on the seq_len==1 forward).
# ---------------------------------------------------------------------------
def _init_linear(key, din, dout):
    kw, kb = jax.random.split(key)
    w = jax.random.normal(kw, (din, dout), jnp.float32) * 0.02
    b = jax.random.normal(kb, (dout,), jnp.float32) * 0.02
    return w, b


def _init_ln(key, dim):
    kg, kb = jax.random.split(key)
    g = 1.0 + 0.1 * jax.random.normal(kg, (dim,), jnp.float32)
    b = 0.1 * jax.random.normal(kb, (dim,), jnp.float32)
    return g, b


def _init_cross_attention(key, dim):
    ks = jax.random.split(key, 8)
    qw, qb = _init_linear(ks[0], dim, dim)
    kw, kb = _init_linear(ks[1], dim, dim)
    vw, vb = _init_linear(ks[2], dim, dim)
    ow, ob = _init_linear(ks[3], dim, dim)
    n1g, n1b = _init_ln(ks[4], dim)
    n2g, n2b = _init_ln(ks[5], dim)
    f1w, f1b = _init_linear(ks[6], dim, dim * 4)
    f2w, f2b = _init_linear(ks[7], dim * 4, dim)
    return dict(qw=qw, qb=qb, kw=kw, kb=kb, vw=vw, vb=vb, ow=ow, ob=ob,
                n1g=n1g, n1b=n1b, n2g=n2g, n2b=n2b,
                f1w=f1w, f1b=f1b, f2w=f2w, f2b=f2b)


def init_params(key):
    ks = jax.random.split(key, 5)
    wt, bt = _init_linear(ks[0], TEXT_DIM, FUSION_DIM)
    wi, bi = _init_linear(ks[1], IMAGE_DIM, FUSION_DIM)
    wf, bf = _init_linear(ks[4], 2 * FUSION_DIM, FUSION_DIM)
    return dict(wt=wt, bt=bt, wi=wi, bi=bi,
                t2i=_init_cross_attention(ks[2], FUSION_DIM),
                i2t=_init_cross_attention(ks[3], FUSION_DIM),
                wf=wf, bf=bf)


# ---------------------------------------------------------------------------
# Plain-JAX full-fidelity reference (all in f32): runs the COMPLETE torch forward
# including q/k projections, head split, scaling, softmax-over-one-key and exact
# erf GELU, independently validating the dead-path elision, the v/o fusion, the
# bf16 operand casts and the tanh GELU used in the kernel.
# ---------------------------------------------------------------------------
def _ref_layer_norm(x, g, b):
    mu = jnp.mean(x, axis=-1, keepdims=True)
    var = jnp.mean(jnp.square(x - mu), axis=-1, keepdims=True)
    return (x - mu) * jax.lax.rsqrt(var + LN_EPS) * g + b


def _ref_linear(x, w, b):
    return x @ w + b


def _ref_cross_attention(x, ctx, p):
    # x, ctx: (B, 1, F)
    residual = x
    xn = _ref_layer_norm(x, p["n1g"], p["n1b"])
    cn = _ref_layer_norm(ctx, p["n1g"], p["n1b"])
    q = _ref_linear(xn, p["qw"], p["qb"])
    k = _ref_linear(cn, p["kw"], p["kb"])
    v = _ref_linear(cn, p["vw"], p["vb"])
    B, S, F = q.shape
    q = q.reshape(B, S, HEADS, HEAD_DIM).transpose(0, 2, 1, 3)
    k = k.reshape(B, S, HEADS, HEAD_DIM).transpose(0, 2, 1, 3)
    v = v.reshape(B, S, HEADS, HEAD_DIM).transpose(0, 2, 1, 3)
    scores = jnp.einsum("bhqd,bhkd->bhqk", q, k) / (HEAD_DIM ** 0.5)
    attn = jax.nn.softmax(scores, axis=-1)
    out = jnp.einsum("bhqk,bhkd->bhqd", attn, v)
    out = out.transpose(0, 2, 1, 3).reshape(B, S, F)
    x = _ref_linear(out, p["ow"], p["ob"]) + residual
    residual = x
    h = _ref_layer_norm(x, p["n2g"], p["n2b"])
    h = _ref_linear(h, p["f1w"], p["f1b"])
    h = jax.nn.gelu(h, approximate=False)
    h = _ref_linear(h, p["f2w"], p["f2b"])
    return h + residual


def reference(text_emb, image_emb, params):
    B = text_emb.shape[0]
    tp = _ref_linear(text_emb, params["wt"], params["bt"])[:, None, :]
    ip = _ref_linear(image_emb, params["wi"], params["bi"])[:, None, :]
    t_att = _ref_cross_attention(tp, ip, params["t2i"]).reshape(B, -1)
    i_att = _ref_cross_attention(ip, tp, params["i2t"]).reshape(B, -1)
    combined = jnp.concatenate([t_att, i_att], axis=-1)
    return _ref_linear(combined, params["wf"], params["bf"])


if __name__ == "__main__":
    key = jax.random.PRNGKey(0)
    k_text, k_image, k_params, k_text2, k_image2 = jax.random.split(key, 5)
    params = init_params(k_params)

    # Tolerance: bf16 matmul operands (f32 accumulation) + tanh-form GELU bound the
    # kernel-vs-f32-reference deviation to a few 1e-3; 1.5e-2 keeps real structural
    # bugs (missing biases, wrong fusion) detectable.
    RTOL = ATOL = 1.5e-2

    # Small module-consistent shapes (batch=2).
    text_emb = jax.random.normal(k_text, (BATCH, TEXT_DIM), jnp.float32)
    image_emb = jax.random.normal(k_image, (BATCH, IMAGE_DIM), jnp.float32)
    out = jax.block_until_ready(text_image_fusion(text_emb, image_emb, params))
    ref = reference(text_emb, image_emb, params)
    assert out.shape == (BATCH, FUSION_DIM), out.shape
    max_err = float(jnp.max(jnp.abs(out - ref)))
    assert jnp.allclose(out, ref, rtol=RTOL, atol=ATOL), max_err

    # Larger batch exercises the 256-row batch block, multi-block parallel grid and
    # zero-padded batch rows.
    B2 = 260
    text2 = jax.random.normal(k_text2, (B2, TEXT_DIM), jnp.float32)
    image2 = jax.random.normal(k_image2, (B2, IMAGE_DIM), jnp.float32)
    out2 = jax.block_until_ready(text_image_fusion(text2, image2, params))
    ref2 = reference(text2, image2, params)
    assert out2.shape == (B2, FUSION_DIM), out2.shape
    max_err2 = float(jnp.max(jnp.abs(out2 - ref2)))
    assert jnp.allclose(out2, ref2, rtol=RTOL, atol=ATOL), max_err2

    print("KERNEL_OK")
</pallas_src>

<mosaic_0001>
module attributes {stable_mosaic.version = 11 : i64} {
  func.func @_fusion_kernel(%arg0: i32, %arg1: memref<2x8x128xf32, #tpu.memory_space<vmem>>, %arg2: memref<2x128x128xbf16, #tpu.memory_space<vmem>>, %arg3: memref<4x128x128xbf16, #tpu.memory_space<vmem>>, %arg4: memref<2x128x512xbf16, #tpu.memory_space<vmem>>, %arg5: memref<2x512x128xbf16, #tpu.memory_space<vmem>>, %arg6: memref<15x128xf32, #tpu.memory_space<vmem>>, %arg7: memref<2x512xf32, #tpu.memory_space<vmem>>, %arg8: memref<8x128xf32, #tpu.memory_space<vmem>>) attributes {dimension_semantics = [#tpu.dimension_semantics<parallel>], iteration_bounds = array<i64: 1>, scalar_prefetch = 0 : i64, scratch_operands = 0 : i64, tpu.core_type = #tpu.core_type<tc>, window_params = [{transform_indices = @transform_0, window_bounds = array<i64: 2, 8, 128>}, {pipeline_mode = #tpu.pipeline_mode<synchronous>, transform_indices = @transform_1, window_bounds = array<i64: 2, 128, 128>}, {pipeline_mode = #tpu.pipeline_mode<synchronous>, transform_indices = @transform_2, window_bounds = array<i64: 4, 128, 128>}, {pipeline_mode = #tpu.pipeline_mode<synchronous>, transform_indices = @transform_3, window_bounds = array<i64: 2, 128, 512>}, {pipeline_mode = #tpu.pipeline_mode<synchronous>, transform_indices = @transform_4, window_bounds = array<i64: 2, 512, 128>}, {pipeline_mode = #tpu.pipeline_mode<synchronous>, transform_indices = @transform_5, window_bounds = array<i64: 15, 128>}, {pipeline_mode = #tpu.pipeline_mode<synchronous>, transform_indices = @transform_6, window_bounds = array<i64: 2, 512>}, {transform_indices = @transform_7, window_bounds = array<i64: 8, 128>}]} {
    %c0 = arith.constant 0 : index
    %c0_0 = arith.constant 0 : index
    %0 = vector.load %arg6[%c0, %c0_0] : memref<15x128xf32, #tpu.memory_space<vmem>>, vector<15x128xf32>
    %c0_1 = arith.constant 0 : index
    %c0_2 = arith.constant 0 : index
    %1 = vector.load %arg7[%c0_1, %c0_2] : memref<2x512xf32, #tpu.memory_space<vmem>>, vector<2x512xf32>
    %c0_3 = arith.constant 0 : index
    %c0_4 = arith.constant 0 : index
    %c0_5 = arith.constant 0 : index
    %2 = vector.load %arg1[%c0_3, %c0_4, %c0_5] : memref<2x8x128xf32, #tpu.memory_space<vmem>>, vector<1x8x128xf32>
    %3 = vector.shape_cast %2 : vector<1x8x128xf32> to vector<8x128xf32>
    %4 = arith.truncf %3 : vector<8x128xf32> to vector<8x128xbf16>
    %c1 = arith.constant 1 : index
    %c0_6 = arith.constant 0 : index
    %c0_7 = arith.constant 0 : index
    %5 = vector.load %arg1[%c1, %c0_6, %c0_7] : memref<2x8x128xf32, #tpu.memory_space<vmem>>, vector<1x8x128xf32>
    %6 = vector.shape_cast %5 : vector<1x8x128xf32> to vector<8x128xf32>
    %7 = arith.truncf %6 : vector<8x128xf32> to vector<8x128xbf16>
    %c0_8 = arith.constant 0 : index
    %c0_9 = arith.constant 0 : index
    %c0_10 = arith.constant 0 : index
    %8 = vector.load %arg2[%c0_8, %c0_9, %c0_10] : memref<2x128x128xbf16, #tpu.memory_space<vmem>>, vector<1x128x128xbf16>
    %9 = vector.shape_cast %8 : vector<1x128x128xbf16> to vector<128x128xbf16>
    %cst = arith.constant dense<0.000000e+00> : vector<8x128xf32>
    %10 = tpu.matmul %4, %9, %cst {dimension_numbers = #tpu.dot_dimension_numbers<[1], [0], [0], [1], [0, 0, 1, 1], [], []>} : vector<8x128xbf16>, vector<128x128xbf16>, vector<8x128xf32> -> vector<8x128xf32>
    %11 = vector.extract_strided_slice %0 {offsets = [0, 0], sizes = [1, 128], strides = [1, 1]} : vector<15x128xf32> to vector<1x128xf32>
    %12 = vector.broadcast %11 : vector<1x128xf32> to vector<8x128xf32>
    %13 = arith.addf %10, %12 : vector<8x128xf32>
    %c1_11 = arith.constant 1 : index
    %c0_12 = arith.constant 0 : index
    %c0_13 = arith.constant 0 : index
    %14 = vector.load %arg2[%c1_11, %c0_12, %c0_13] : memref<2x128x128xbf16, #tpu.memory_space<vmem>>, vector<1x128x128xbf16>
    %15 = vector.shape_cast %14 : vector<1x128x128xbf16> to vector<128x128xbf16>
    %cst_14 = arith.constant dense<0.000000e+00> : vector<8x128xf32>
    %16 = tpu.matmul %7, %15, %cst_14 {dimension_numbers = #tpu.dot_dimension_numbers<[1], [0], [0], [1], [0, 0, 1, 1], [], []>} : vector<8x128xbf16>, vector<128x128xbf16>, vector<8x128xf32> -> vector<8x128xf32>
    %17 = vector.extract_strided_slice %0 {offsets = [1, 0], sizes = [1, 128], strides = [1, 1]} : vector<15x128xf32> to vector<1x128xf32>
    %18 = vector.broadcast %17 : vector<1x128xf32> to vector<8x128xf32>
    %19 = arith.addf %16, %18 : vector<8x128xf32>
    %20 = vector.extract_strided_slice %0 {offsets = [2, 0], sizes = [1, 128], strides = [1, 1]} : vector<15x128xf32> to vector<1x128xf32>
    %21 = vector.extract_strided_slice %0 {offsets = [3, 0], sizes = [1, 128], strides = [1, 1]} : vector<15x128xf32> to vector<1x128xf32>
    %22 = vector.extract_strided_slice %0 {offsets = [4, 0], sizes = [1, 128], strides = [1, 1]} : vector<15x128xf32> to vector<1x128xf32>
    %23 = vector.extract_strided_slice %0 {offsets = [5, 0], sizes = [1, 128], strides = [1, 1]} : vector<15x128xf32> to vector<1x128xf32>
    %24 = vector.extract_strided_slice %0 {offsets = [6, 0], sizes = [1, 128], strides = [1, 1]} : vector<15x128xf32> to vector<1x128xf32>
    %25 = vector.extract_strided_slice %0 {offsets = [7, 0], sizes = [1, 128], strides = [1, 1]} : vector<15x128xf32> to vector<1x128xf32>
    %c0_15 = arith.constant 0 : index
    %c0_16 = arith.constant 0 : index
    %c0_17 = arith.constant 0 : index
    %26 = vector.load %arg3[%c0_15, %c0_16, %c0_17] : memref<4x128x128xbf16, #tpu.memory_space<vmem>>, vector<1x128x128xbf16>
    %27 = vector.shape_cast %26 : vector<1x128x128xbf16> to vector<128x128xbf16>
    %c0_18 = arith.constant 0 : index
    %c0_19 = arith.constant 0 : index
    %c0_20 = arith.constant 0 : index
    %28 = vector.load %arg4[%c0_18, %c0_19, %c0_20] : memref<2x128x512xbf16, #tpu.memory_space<vmem>>, vector<1x128x512xbf16>
    %29 = vector.shape_cast %28 : vector<1x128x512xbf16> to vector<128x512xbf16>
    %c0_21 = arith.constant 0 : index
    %c0_22 = arith.constant 0 : index
    %c0_23 = arith.constant 0 : index
    %30 = vector.load %arg5[%c0_21, %c0_22, %c0_23] : memref<2x512x128xbf16, #tpu.memory_space<vmem>>, vector<1x512x128xbf16>
    %31 = vector.shape_cast %30 : vector<1x512x128xbf16> to vector<512x128xbf16>
    %32 = vector.extract_strided_slice %1 {offsets = [0, 0], sizes = [1, 512], strides = [1, 1]} : vector<2x512xf32> to vector<1x512xf32>
    %cst_24 = arith.constant dense<0.000000e+00> : vector<8xf32>
    %33 = vector.multi_reduction <add>, %19, %cst_24 [1] : vector<8x128xf32> to vector<8xf32>
    %34 = vector.shape_cast %33 : vector<8xf32> to vector<8x1xf32>
    %cst_25 = arith.constant 1.280000e+02 : f32
    %35 = vector.broadcast %cst_25 : f32 to vector<8x1xf32>
    %36 = arith.divf %34, %35 : vector<8x1xf32>
    %37 = vector.broadcast %36 : vector<8x1xf32> to vector<8x128xf32>
    %38 = arith.subf %19, %37 : vector<8x128xf32>
    %39 = arith.mulf %38, %38 : vector<8x128xf32>
    %cst_26 = arith.constant dense<0.000000e+00> : vector<8xf32>
    %40 = vector.multi_reduction <add>, %39, %cst_26 [1] : vector<8x128xf32> to vector<8xf32>
    %41 = vector.shape_cast %40 : vector<8xf32> to vector<8x1xf32>
    %cst_27 = arith.constant 1.280000e+02 : f32
    %42 = vector.broadcast %cst_27 : f32 to vector<8x1xf32>
    %43 = arith.divf %41, %42 : vector<8x1xf32>
    %44 = vector.broadcast %36 : vector<8x1xf32> to vector<8x128xf32>
    %45 = arith.subf %19, %44 : vector<8x128xf32>
    %cst_28 = arith.constant 9.99999974E-6 : f32
    %46 = vector.broadcast %cst_28 : f32 to vector<8x1xf32>
    %47 = arith.addf %43, %46 : vector<8x1xf32>
    %48 = math.rsqrt %47 : vector<8x1xf32>
    %49 = vector.broadcast %48 : vector<8x1xf32> to vector<8x128xf32>
    %50 = arith.mulf %45, %49 : vector<8x128xf32>
    %51 = vector.broadcast %20 : vector<1x128xf32> to vector<8x128xf32>
    %52 = arith.mulf %50, %51 : vector<8x128xf32>
    %53 = vector.broadcast %21 : vector<1x128xf32> to vector<8x128xf32>
    %54 = arith.addf %52, %53 : vector<8x128xf32>
    %55 = arith.truncf %54 : vector<8x128xf32> to vector<8x128xbf16>
    %cst_29 = arith.constant dense<0.000000e+00> : vector<8x128xf32>
    %56 = tpu.matmul %55, %27, %cst_29 {dimension_numbers = #tpu.dot_dimension_numbers<[1], [0], [0], [1], [0, 0, 1, 1], [], []>} : vector<8x128xbf16>, vector<128x128xbf16>, vector<8x128xf32> -> vector<8x128xf32>
    %57 = vector.broadcast %22 : vector<1x128xf32> to vector<8x128xf32>
    %58 = arith.addf %56, %57 : vector<8x128xf32>
    %59 = arith.addf %58, %13 : vector<8x128xf32>
    %cst_30 = arith.constant dense<0.000000e+00> : vector<8xf32>
    %60 = vector.multi_reduction <add>, %59, %cst_30 [1] : vector<8x128xf32> to vector<8xf32>
    %61 = vector.shape_cast %60 : vector<8xf32> to vector<8x1xf32>
    %cst_31 = arith.constant 1.280000e+02 : f32
    %62 = vector.broadcast %cst_31 : f32 to vector<8x1xf32>
    %63 = arith.divf %61, %62 : vector<8x1xf32>
    %64 = vector.broadcast %63 : vector<8x1xf32> to vector<8x128xf32>
    %65 = arith.subf %59, %64 : vector<8x128xf32>
    %66 = arith.mulf %65, %65 : vector<8x128xf32>
    %cst_32 = arith.constant dense<0.000000e+00> : vector<8xf32>
    %67 = vector.multi_reduction <add>, %66, %cst_32 [1] : vector<8x128xf32> to vector<8xf32>
    %68 = vector.shape_cast %67 : vector<8xf32> to vector<8x1xf32>
    %cst_33 = arith.constant 1.280000e+02 : f32
    %69 = vector.broadcast %cst_33 : f32 to vector<8x1xf32>
    %70 = arith.divf %68, %69 : vector<8x1xf32>
    %71 = vector.broadcast %63 : vector<8x1xf32> to vector<8x128xf32>
    %72 = arith.subf %59, %71 : vector<8x128xf32>
    %cst_34 = arith.constant 9.99999974E-6 : f32
    %73 = vector.broadcast %cst_34 : f32 to vector<8x1xf32>
    %74 = arith.addf %70, %73 : vector<8x1xf32>
    %75 = math.rsqrt %74 : vector<8x1xf32>
    %76 = vector.broadcast %75 : vector<8x1xf32> to vector<8x128xf32>
    %77 = arith.mulf %72, %76 : vector<8x128xf32>
    %78 = vector.broadcast %23 : vector<1x128xf32> to vector<8x128xf32>
    %79 = arith.mulf %77, %78 : vector<8x128xf32>
    %80 = vector.broadcast %24 : vector<1x128xf32> to vector<8x128xf32>
    %81 = arith.addf %79, %80 : vector<8x128xf32>
    %82 = arith.truncf %81 : vector<8x128xf32> to vector<8x128xbf16>
    %cst_35 = arith.constant dense<0.000000e+00> : vector<8x512xf32>
    %83 = tpu.matmul %82, %29, %cst_35 {dimension_numbers = #tpu.dot_dimension_numbers<[1], [0], [0], [1], [0, 0, 1, 1], [], []>} : vector<8x128xbf16>, vector<128x512xbf16>, vector<8x512xf32> -> vector<8x512xf32>
    %84 = vector.broadcast %32 : vector<1x512xf32> to vector<8x512xf32>
    %85 = arith.addf %83, %84 : vector<8x512xf32>
    %cst_36 = arith.constant 4.471500e-02 : f32
    %86 = vector.broadcast %cst_36 : f32 to vector<8x512xf32>
    %87 = arith.mulf %86, %85 : vector<8x512xf32>
    %88 = arith.mulf %87, %85 : vector<8x512xf32>
    %89 = arith.mulf %88, %85 : vector<8x512xf32>
    %90 = arith.addf %85, %89 : vector<8x512xf32>
    %cst_37 = arith.constant 0.797884583 : f32
    %91 = vector.broadcast %cst_37 : f32 to vector<8x512xf32>
    %92 = arith.mulf %91, %90 : vector<8x512xf32>
    %cst_38 = arith.constant 5.000000e-01 : f32
    %93 = vector.broadcast %cst_38 : f32 to vector<8x512xf32>
    %94 = arith.mulf %93, %85 : vector<8x512xf32>
    %95 = math.tanh %92 : vector<8x512xf32>
    %cst_39 = arith.constant 1.000000e+00 : f32
    %96 = vector.broadcast %cst_39 : f32 to vector<8x512xf32>
    %97 = arith.addf %96, %95 : vector<8x512xf32>
    %98 = arith.mulf %94, %97 : vector<8x512xf32>
    %99 = arith.truncf %98 : vector<8x512xf32> to vector<8x512xbf16>
    %cst_40 = arith.constant dense<0.000000e+00> : vector<8x128xf32>
    %100 = tpu.matmul %99, %31, %cst_40 {dimension_numbers = #tpu.dot_dimension_numbers<[1], [0], [0], [1], [0, 0, 1, 1], [], []>} : vector<8x512xbf16>, vector<512x128xbf16>, vector<8x128xf32> -> vector<8x128xf32>
    %101 = vector.broadcast %25 : vector<1x128xf32> to vector<8x128xf32>
    %102 = arith.addf %100, %101 : vector<8x128xf32>
    %103 = arith.addf %102, %59 : vector<8x128xf32>
    %104 = arith.truncf %103 : vector<8x128xf32> to vector<8x128xbf16>
    %105 = vector.extract_strided_slice %0 {offsets = [8, 0], sizes = [1, 128], strides = [1, 1]} : vector<15x128xf32> to vector<1x128xf32>
    %106 = vector.extract_strided_slice %0 {offsets = [9, 0], sizes = [1, 128], strides = [1, 1]} : vector<15x128xf32> to vector<1x128xf32>
    %107 = vector.extract_strided_slice %0 {offsets = [10, 0], sizes = [1, 128], strides = [1, 1]} : vector<15x128xf32> to vector<1x128xf32>
    %108 = vector.extract_strided_slice %0 {offsets = [11, 0], sizes = [1, 128], strides = [1, 1]} : vector<15x128xf32> to vector<1x128xf32>
    %109 = vector.extract_strided_slice %0 {offsets = [12, 0], sizes = [1, 128], strides = [1, 1]} : vector<15x128xf32> to vector<1x128xf32>
    %110 = vector.extract_strided_slice %0 {offsets = [13, 0], sizes = [1, 128], strides = [1, 1]} : vector<15x128xf32> to vector<1x128xf32>
    %c1_41 = arith.constant 1 : index
    %c0_42 = arith.constant 0 : index
    %c0_43 = arith.constant 0 : index
    %111 = vector.load %arg3[%c1_41, %c0_42, %c0_43] : memref<4x128x128xbf16, #tpu.memory_space<vmem>>, vector<1x128x128xbf16>
    %112 = vector.shape_cast %111 : vector<1x128x128xbf16> to vector<128x128xbf16>
    %c1_44 = arith.constant 1 : index
    %c0_45 = arith.constant 0 : index
    %c0_46 = arith.constant 0 : index
    %113 = vector.load %arg4[%c1_44, %c0_45, %c0_46] : memref<2x128x512xbf16, #tpu.memory_space<vmem>>, vector<1x128x512xbf16>
    %114 = vector.shape_cast %113 : vector<1x128x512xbf16> to vector<128x512xbf16>
    %c1_47 = arith.constant 1 : index
    %c0_48 = arith.constant 0 : index
    %c0_49 = arith.constant 0 : index
    %115 = vector.load %arg5[%c1_47, %c0_48, %c0_49] : memref<2x512x128xbf16, #tpu.memory_space<vmem>>, vector<1x512x128xbf16>
    %116 = vector.shape_cast %115 : vector<1x512x128xbf16> to vector<512x128xbf16>
    %117 = vector.extract_strided_slice %1 {offsets = [1, 0], sizes = [1, 512], strides = [1, 1]} : vector<2x512xf32> to vector<1x512xf32>
    %cst_50 = arith.constant dense<0.000000e+00> : vector<8xf32>
    %118 = vector.multi_reduction <add>, %13, %cst_50 [1] : vector<8x128xf32> to vector<8xf32>
    %119 = vector.shape_cast %118 : vector<8xf32> to vector<8x1xf32>
    %cst_51 = arith.constant 1.280000e+02 : f32
    %120 = vector.broadcast %cst_51 : f32 to vector<8x1xf32>
    %121 = arith.divf %119, %120 : vector<8x1xf32>
    %122 = vector.broadcast %121 : vector<8x1xf32> to vector<8x128xf32>
    %123 = arith.subf %13, %122 : vector<8x128xf32>
    %124 = arith.mulf %123, %123 : vector<8x128xf32>
    %cst_52 = arith.constant dense<0.000000e+00> : vector<8xf32>
    %125 = vector.multi_reduction <add>, %124, %cst_52 [1] : vector<8x128xf32> to vector<8xf32>
    %126 = vector.shape_cast %125 : vector<8xf32> to vector<8x1xf32>
    %cst_53 = arith.constant 1.280000e+02 : f32
    %127 = vector.broadcast %cst_53 : f32 to vector<8x1xf32>
    %128 = arith.divf %126, %127 : vector<8x1xf32>
    %129 = vector.broadcast %121 : vector<8x1xf32> to vector<8x128xf32>
    %130 = arith.subf %13, %129 : vector<8x128xf32>
    %cst_54 = arith.constant 9.99999974E-6 : f32
    %131 = vector.broadcast %cst_54 : f32 to vector<8x1xf32>
    %132 = arith.addf %128, %131 : vector<8x1xf32>
    %133 = math.rsqrt %132 : vector<8x1xf32>
    %134 = vector.broadcast %133 : vector<8x1xf32> to vector<8x128xf32>
    %135 = arith.mulf %130, %134 : vector<8x128xf32>
    %136 = vector.broadcast %105 : vector<1x128xf32> to vector<8x128xf32>
    %137 = arith.mulf %135, %136 : vector<8x128xf32>
    %138 = vector.broadcast %106 : vector<1x128xf32> to vector<8x128xf32>
    %139 = arith.addf %137, %138 : vector<8x128xf32>
    %140 = arith.truncf %139 : vector<8x128xf32> to vector<8x128xbf16>
    %cst_55 = arith.constant dense<0.000000e+00> : vector<8x128xf32>
    %141 = tpu.matmul %140, %112, %cst_55 {dimension_numbers = #tpu.dot_dimension_numbers<[1], [0], [0], [1], [0, 0, 1, 1], [], []>} : vector<8x128xbf16>, vector<128x128xbf16>, vector<8x128xf32> -> vector<8x128xf32>
    %142 = vector.broadcast %107 : vector<1x128xf32> to vector<8x128xf32>
    %143 = arith.addf %141, %142 : vector<8x128xf32>
    %144 = arith.addf %143, %19 : vector<8x128xf32>
    %cst_56 = arith.constant dense<0.000000e+00> : vector<8xf32>
    %145 = vector.multi_reduction <add>, %144, %cst_56 [1] : vector<8x128xf32> to vector<8xf32>
    %146 = vector.shape_cast %145 : vector<8xf32> to vector<8x1xf32>
    %cst_57 = arith.constant 1.280000e+02 : f32
    %147 = vector.broadcast %cst_57 : f32 to vector<8x1xf32>
    %148 = arith.divf %146, %147 : vector<8x1xf32>
    %149 = vector.broadcast %148 : vector<8x1xf32> to vector<8x128xf32>
    %150 = arith.subf %144, %149 : vector<8x128xf32>
    %151 = arith.mulf %150, %150 : vector<8x128xf32>
    %cst_58 = arith.constant dense<0.000000e+00> : vector<8xf32>
    %152 = vector.multi_reduction <add>, %151, %cst_58 [1] : vector<8x128xf32> to vector<8xf32>
    %153 = vector.shape_cast %152 : vector<8xf32> to vector<8x1xf32>
    %cst_59 = arith.constant 1.280000e+02 : f32
    %154 = vector.broadcast %cst_59 : f32 to vector<8x1xf32>
    %155 = arith.divf %153, %154 : vector<8x1xf32>
    %156 = vector.broadcast %148 : vector<8x1xf32> to vector<8x128xf32>
    %157 = arith.subf %144, %156 : vector<8x128xf32>
    %cst_60 = arith.constant 9.99999974E-6 : f32
    %158 = vector.broadcast %cst_60 : f32 to vector<8x1xf32>
    %159 = arith.addf %155, %158 : vector<8x1xf32>
    %160 = math.rsqrt %159 : vector<8x1xf32>
    %161 = vector.broadcast %160 : vector<8x1xf32> to vector<8x128xf32>
    %162 = arith.mulf %157, %161 : vector<8x128xf32>
    %163 = vector.broadcast %108 : vector<1x128xf32> to vector<8x128xf32>
    %164 = arith.mulf %162, %163 : vector<8x128xf32>
    %165 = vector.broadcast %109 : vector<1x128xf32> to vector<8x128xf32>
    %166 = arith.addf %164, %165 : vector<8x128xf32>
    %167 = arith.truncf %166 : vector<8x128xf32> to vector<8x128xbf16>
    %cst_61 = arith.constant dense<0.000000e+00> : vector<8x512xf32>
    %168 = tpu.matmul %167, %114, %cst_61 {dimension_numbers = #tpu.dot_dimension_numbers<[1], [0], [0], [1], [0, 0, 1, 1], [], []>} : vector<8x128xbf16>, vector<128x512xbf16>, vector<8x512xf32> -> vector<8x512xf32>
    %169 = vector.broadcast %117 : vector<1x512xf32> to vector<8x512xf32>
    %170 = arith.addf %168, %169 : vector<8x512xf32>
    %cst_62 = arith.constant 4.471500e-02 : f32
    %171 = vector.broadcast %cst_62 : f32 to vector<8x512xf32>
    %172 = arith.mulf %171, %170 : vector<8x512xf32>
    %173 = arith.mulf %172, %170 : vector<8x512xf32>
    %174 = arith.mulf %173, %170 : vector<8x512xf32>
    %175 = arith.addf %170, %174 : vector<8x512xf32>
    %cst_63 = arith.constant 0.797884583 : f32
    %176 = vector.broadcast %cst_63 : f32 to vector<8x512xf32>
    %177 = arith.mulf %176, %175 : vector<8x512xf32>
    %cst_64 = arith.constant 5.000000e-01 : f32
    %178 = vector.broadcast %cst_64 : f32 to vector<8x512xf32>
    %179 = arith.mulf %178, %170 : vector<8x512xf32>
    %180 = math.tanh %177 : vector<8x512xf32>
    %cst_65 = arith.constant 1.000000e+00 : f32
    %181 = vector.broadcast %cst_65 : f32 to vector<8x512xf32>
    %182 = arith.addf %181, %180 : vector<8x512xf32>
    %183 = arith.mulf %179, %182 : vector<8x512xf32>
    %184 = arith.truncf %183 : vector<8x512xf32> to vector<8x512xbf16>
    %cst_66 = arith.constant dense<0.000000e+00> : vector<8x128xf32>
    %185 = tpu.matmul %184, %116, %cst_66 {dimension_numbers = #tpu.dot_dimension_numbers<[1], [0], [0], [1], [0, 0, 1, 1], [], []>} : vector<8x512xbf16>, vector<512x128xbf16>, vector<8x128xf32> -> vector<8x128xf32>
    %186 = vector.broadcast %110 : vector<1x128xf32> to vector<8x128xf32>
    %187 = arith.addf %185, %186 : vector<8x128xf32>
    %188 = arith.addf %187, %144 : vector<8x128xf32>
    %189 = arith.truncf %188 : vector<8x128xf32> to vector<8x128xbf16>
    %c2 = arith.constant 2 : index
    %c0_67 = arith.constant 0 : index
    %c0_68 = arith.constant 0 : index
    %190 = vector.load %arg3[%c2, %c0_67, %c0_68] : memref<4x128x128xbf16, #tpu.memory_space<vmem>>, vector<1x128x128xbf16>
    %191 = vector.shape_cast %190 : vector<1x128x128xbf16> to vector<128x128xbf16>
    %cst_69 = arith.constant dense<0.000000e+00> : vector<8x128xf32>
    %192 = tpu.matmul %104, %191, %cst_69 {dimension_numbers = #tpu.dot_dimension_numbers<[1], [0], [0], [1], [0, 0, 1, 1], [], []>} : vector<8x128xbf16>, vector<128x128xbf16>, vector<8x128xf32> -> vector<8x128xf32>
    %c3 = arith.constant 3 : index
    %c0_70 = arith.constant 0 : index
    %c0_71 = arith.constant 0 : index
    %193 = vector.load %arg3[%c3, %c0_70, %c0_71] : memref<4x128x128xbf16, #tpu.memory_space<vmem>>, vector<1x128x128xbf16>
    %194 = vector.shape_cast %193 : vector<1x128x128xbf16> to vector<128x128xbf16>
    %cst_72 = arith.constant dense<0.000000e+00> : vector<8x128xf32>
    %195 = tpu.matmul %189, %194, %cst_72 {dimension_numbers = #tpu.dot_dimension_numbers<[1], [0], [0], [1], [0, 0, 1, 1], [], []>} : vector<8x128xbf16>, vector<128x128xbf16>, vector<8x128xf32> -> vector<8x128xf32>
    %196 = arith.addf %192, %195 : vector<8x128xf32>
    %197 = vector.extract_strided_slice %0 {offsets = [14, 0], sizes = [1, 128], strides = [1, 1]} : vector<15x128xf32> to vector<1x128xf32>
    %198 = vector.broadcast %197 : vector<1x128xf32> to vector<8x128xf32>
    %199 = arith.addf %196, %198 : vector<8x128xf32>
    %c0_73 = arith.constant 0 : index
    %c0_74 = arith.constant 0 : index
    %200 = vector.load %arg8[%c0_73, %c0_74] : memref<8x128xf32, #tpu.memory_space<vmem>>, vector<8x128xf32>
    tpu.vector_store %arg8[%c0_73, %c0_74], %199 {strides = array<i32>} : memref<8x128xf32, #tpu.memory_space<vmem>>, vector<8x128xf32>,
    return
  }
  func.func @transform_0(%arg0: i32) -> (i32, i32, i32) {
    %c0_i32 = arith.constant 0 : i32
    %c0_i32_0 = arith.constant 0 : i32
    %c0_i32_1 = arith.constant 0 : i32
    return %c0_i32, %arg0, %c0_i32_0 : i32, i32, i32
  }
  func.func @transform_1(%arg0: i32) -> (i32, i32, i32) {
    %c0_i32 = arith.constant 0 : i32
    %c0_i32_0 = arith.constant 0 : i32
    %c0_i32_1 = arith.constant 0 : i32
    %c0_i32_2 = arith.constant 0 : i32
    return %c0_i32, %c0_i32_0, %c0_i32_1 : i32, i32, i32
  }
  func.func @transform_2(%arg0: i32) -> (i32, i32, i32) {
    %c0_i32 = arith.constant 0 : i32
    %c0_i32_0 = arith.constant 0 : i32
    %c0_i32_1 = arith.constant 0 : i32
    %c0_i32_2 = arith.constant 0 : i32
    return %c0_i32, %c0_i32_0, %c0_i32_1 : i32, i32, i32
  }
  func.func @transform_3(%arg0: i32) -> (i32, i32, i32) {
    %c0_i32 = arith.constant 0 : i32
    %c0_i32_0 = arith.constant 0 : i32
    %c0_i32_1 = arith.constant 0 : i32
    %c0_i32_2 = arith.constant 0 : i32
    return %c0_i32, %c0_i32_0, %c0_i32_1 : i32, i32, i32
  }
  func.func @transform_4(%arg0: i32) -> (i32, i32, i32) {
    %c0_i32 = arith.constant 0 : i32
    %c0_i32_0 = arith.constant 0 : i32
    %c0_i32_1 = arith.constant 0 : i32
    %c0_i32_2 = arith.constant 0 : i32
    return %c0_i32, %c0_i32_0, %c0_i32_1 : i32, i32, i32
  }
  func.func @transform_5(%arg0: i32) -> (i32, i32) {
    %c0_i32 = arith.constant 0 : i32
    %c0_i32_0 = arith.constant 0 : i32
    %c0_i32_1 = arith.constant 0 : i32
    return %c0_i32, %c0_i32_0 : i32, i32
  }
  func.func @transform_6(%arg0: i32) -> (i32, i32) {
    %c0_i32 = arith.constant 0 : i32
    %c0_i32_0 = arith.constant 0 : i32
    %c0_i32_1 = arith.constant 0 : i32
    return %c0_i32, %c0_i32_0 : i32, i32
  }
  func.func @transform_7(%arg0: i32) -> (i32, i32) {
    %c0_i32 = arith.constant 0 : i32
    %c0_i32_0 = arith.constant 0 : i32
    return %arg0, %c0_i32 : i32, i32
  }
}

module attributes {stable_mosaic.version = 11 : i64} {
  func.func @_fusion_kernel(%arg0: i32, %arg1: memref<2x8x128xf32, #tpu.memory_space<vmem>>, %arg2: memref<2x128x128xbf16, #tpu.memory_space<vmem>>, %arg3: memref<4x128x128xbf16, #tpu.memory_space<vmem>>, %arg4: memref<2x128x512xbf16, #tpu.memory_space<vmem>>, %arg5: memref<2x512x128xbf16, #tpu.memory_space<vmem>>, %arg6: memref<15x128xf32, #tpu.memory_space<vmem>>, %arg7: memref<2x512xf32, #tpu.memory_space<vmem>>, %arg8: memref<8x128xf32, #tpu.memory_space<vmem>>) attributes {dimension_semantics = [#tpu.dimension_semantics<parallel>], iteration_bounds = array<i64: 1>, scalar_prefetch = 0 : i64, scratch_operands = 0 : i64, tpu.core_type = #tpu.core_type<tc>, window_params = [{transform_indices = @transform_0, window_bounds = array<i64: 2, 8, 128>}, {pipeline_mode = #tpu.pipeline_mode<synchronous>, transform_indices = @transform_1, window_bounds = array<i64: 2, 128, 128>}, {pipeline_mode = #tpu.pipeline_mode<synchronous>, transform_indices = @transform_2, window_bounds = array<i64: 4, 128, 128>}, {pipeline_mode = #tpu.pipeline_mode<synchronous>, transform_indices = @transform_3, window_bounds = array<i64: 2, 128, 512>}, {pipeline_mode = #tpu.pipeline_mode<synchronous>, transform_indices = @transform_4, window_bounds = array<i64: 2, 512, 128>}, {pipeline_mode = #tpu.pipeline_mode<synchronous>, transform_indices = @transform_5, window_bounds = array<i64: 15, 128>}, {pipeline_mode = #tpu.pipeline_mode<synchronous>, transform_indices = @transform_6, window_bounds = array<i64: 2, 512>}, {transform_indices = @transform_7, window_bounds = array<i64: 8, 128>}]} {
    %c0 = arith.constant 0 : index
    %c0_0 = arith.constant 0 : index
    %0 = vector.load %arg6[%c0, %c0_0] : memref<15x128xf32, #tpu.memory_space<vmem>>, vector<15x128xf32>
    %c0_1 = arith.constant 0 : index
    %c0_2 = arith.constant 0 : index
    %1 = vector.load %arg7[%c0_1, %c0_2] : memref<2x512xf32, #tpu.memory_space<vmem>>, vector<2x512xf32>
    %c0_3 = arith.constant 0 : index
    %c0_4 = arith.constant 0 : index
    %c0_5 = arith.constant 0 : index
    %2 = vector.load %arg1[%c0_3, %c0_4, %c0_5] : memref<2x8x128xf32, #tpu.memory_space<vmem>>, vector<1x8x128xf32>
    %3 = vector.shape_cast %2 : vector<1x8x128xf32> to vector<8x128xf32>
    %4 = arith.truncf %3 : vector<8x128xf32> to vector<8x128xbf16>
    %c1 = arith.constant 1 : index
    %c0_6 = arith.constant 0 : index
    %c0_7 = arith.constant 0 : index
    %5 = vector.load %arg1[%c1, %c0_6, %c0_7] : memref<2x8x128xf32, #tpu.memory_space<vmem>>, vector<1x8x128xf32>
    %6 = vector.shape_cast %5 : vector<1x8x128xf32> to vector<8x128xf32>
    %7 = arith.truncf %6 : vector<8x128xf32> to vector<8x128xbf16>
    %c0_8 = arith.constant 0 : index
    %c0_9 = arith.constant 0 : index
    %c0_10 = arith.constant 0 : index
    %8 = vector.load %arg2[%c0_8, %c0_9, %c0_10] : memref<2x128x128xbf16, #tpu.memory_space<vmem>>, vector<1x128x128xbf16>
    %9 = vector.shape_cast %8 : vector<1x128x128xbf16> to vector<128x128xbf16>
    %cst = arith.constant dense<0.000000e+00> : vector<8x128xf32>
    %10 = tpu.matmul %4, %9, %cst {dimension_numbers = #tpu.dot_dimension_numbers<[1], [0], [0], [1], [0, 0, 1, 1], [], []>} : vector<8x128xbf16>, vector<128x128xbf16>, vector<8x128xf32> -> vector<8x128xf32>
    %11 = vector.extract_strided_slice %0 {offsets = [0, 0], sizes = [1, 128], strides = [1, 1]} : vector<15x128xf32> to vector<1x128xf32>
    %12 = vector.broadcast %11 : vector<1x128xf32> to vector<8x128xf32>
    %13 = arith.addf %10, %12 : vector<8x128xf32>
    %c1_11 = arith.constant 1 : index
    %c0_12 = arith.constant 0 : index
    %c0_13 = arith.constant 0 : index
    %14 = vector.load %arg2[%c1_11, %c0_12, %c0_13] : memref<2x128x128xbf16, #tpu.memory_space<vmem>>, vector<1x128x128xbf16>
    %15 = vector.shape_cast %14 : vector<1x128x128xbf16> to vector<128x128xbf16>
    %cst_14 = arith.constant dense<0.000000e+00> : vector<8x128xf32>
    %16 = tpu.matmul %7, %15, %cst_14 {dimension_numbers = #tpu.dot_dimension_numbers<[1], [0], [0], [1], [0, 0, 1, 1], [], []>} : vector<8x128xbf16>, vector<128x128xbf16>, vector<8x128xf32> -> vector<8x128xf32>
    %17 = vector.extract_strided_slice %0 {offsets = [1, 0], sizes = [1, 128], strides = [1, 1]} : vector<15x128xf32> to vector<1x128xf32>
    %18 = vector.broadcast %17 : vector<1x128xf32> to vector<8x128xf32>
    %19 = arith.addf %16, %18 : vector<8x128xf32>
    %20 = vector.extract_strided_slice %0 {offsets = [2, 0], sizes = [1, 128], strides = [1, 1]} : vector<15x128xf32> to vector<1x128xf32>
    %21 = vector.extract_strided_slice %0 {offsets = [3, 0], sizes = [1, 128], strides = [1, 1]} : vector<15x128xf32> to vector<1x128xf32>
    %22 = vector.extract_strided_slice %0 {offsets = [4, 0], sizes = [1, 128], strides = [1, 1]} : vector<15x128xf32> to vector<1x128xf32>
    %23 = vector.extract_strided_slice %0 {offsets = [5, 0], sizes = [1, 128], strides = [1, 1]} : vector<15x128xf32> to vector<1x128xf32>
    %24 = vector.extract_strided_slice %0 {offsets = [6, 0], sizes = [1, 128], strides = [1, 1]} : vector<15x128xf32> to vector<1x128xf32>
    %25 = vector.extract_strided_slice %0 {offsets = [7, 0], sizes = [1, 128], strides = [1, 1]} : vector<15x128xf32> to vector<1x128xf32>
    %c0_15 = arith.constant 0 : index
    %c0_16 = arith.constant 0 : index
    %c0_17 = arith.constant 0 : index
    %26 = vector.load %arg3[%c0_15, %c0_16, %c0_17] : memref<4x128x128xbf16, #tpu.memory_space<vmem>>, vector<1x128x128xbf16>
    %27 = vector.shape_cast %26 : vector<1x128x128xbf16> to vector<128x128xbf16>
    %c0_18 = arith.constant 0 : index
    %c0_19 = arith.constant 0 : index
    %c0_20 = arith.constant 0 : index
    %28 = vector.load %arg4[%c0_18, %c0_19, %c0_20] : memref<2x128x512xbf16, #tpu.memory_space<vmem>>, vector<1x128x512xbf16>
    %29 = vector.shape_cast %28 : vector<1x128x512xbf16> to vector<128x512xbf16>
    %c0_21 = arith.constant 0 : index
    %c0_22 = arith.constant 0 : index
    %c0_23 = arith.constant 0 : index
    %30 = vector.load %arg5[%c0_21, %c0_22, %c0_23] : memref<2x512x128xbf16, #tpu.memory_space<vmem>>, vector<1x512x128xbf16>
    %31 = vector.shape_cast %30 : vector<1x512x128xbf16> to vector<512x128xbf16>
    %32 = vector.extract_strided_slice %1 {offsets = [0, 0], sizes = [1, 512], strides = [1, 1]} : vector<2x512xf32> to vector<1x512xf32>
    %cst_24 = arith.constant dense<0.000000e+00> : vector<8xf32>
    %33 = vector.multi_reduction <add>, %19, %cst_24 [1] : vector<8x128xf32> to vector<8xf32>
    %34 = vector.shape_cast %33 : vector<8xf32> to vector<8x1xf32>
    %cst_25 = arith.constant 1.280000e+02 : f32
    %35 = vector.broadcast %cst_25 : f32 to vector<8x1xf32>
    %36 = arith.divf %34, %35 : vector<8x1xf32>
    %37 = vector.broadcast %36 : vector<8x1xf32> to vector<8x128xf32>
    %38 = arith.subf %19, %37 : vector<8x128xf32>
    %39 = arith.mulf %38, %38 : vector<8x128xf32>
    %cst_26 = arith.constant dense<0.000000e+00> : vector<8xf32>
    %40 = vector.multi_reduction <add>, %39, %cst_26 [1] : vector<8x128xf32> to vector<8xf32>
    %41 = vector.shape_cast %40 : vector<8xf32> to vector<8x1xf32>
    %cst_27 = arith.constant 1.280000e+02 : f32
    %42 = vector.broadcast %cst_27 : f32 to vector<8x1xf32>
    %43 = arith.divf %41, %42 : vector<8x1xf32>
    %44 = vector.broadcast %36 : vector<8x1xf32> to vector<8x128xf32>
    %45 = arith.subf %19, %44 : vector<8x128xf32>
    %cst_28 = arith.constant 9.99999974E-6 : f32
    %46 = vector.broadcast %cst_28 : f32 to vector<8x1xf32>
    %47 = arith.addf %43, %46 : vector<8x1xf32>
    %48 = math.rsqrt %47 : vector<8x1xf32>
    %49 = vector.broadcast %48 : vector<8x1xf32> to vector<8x128xf32>
    %50 = arith.mulf %45, %49 : vector<8x128xf32>
    %51 = vector.broadcast %20 : vector<1x128xf32> to vector<8x128xf32>
    %52 = arith.mulf %50, %51 : vector<8x128xf32>
    %53 = vector.broadcast %21 : vector<1x128xf32> to vector<8x128xf32>
    %54 = arith.addf %52, %53 : vector<8x128xf32>
    %55 = arith.truncf %54 : vector<8x128xf32> to vector<8x128xbf16>
    %cst_29 = arith.constant dense<0.000000e+00> : vector<8x128xf32>
    %56 = tpu.matmul %55, %27, %cst_29 {dimension_numbers = #tpu.dot_dimension_numbers<[1], [0], [0], [1], [0, 0, 1, 1], [], []>} : vector<8x128xbf16>, vector<128x128xbf16>, vector<8x128xf32> -> vector<8x128xf32>
    %57 = vector.broadcast %22 : vector<1x128xf32> to vector<8x128xf32>
    %58 = arith.addf %56, %57 : vector<8x128xf32>
    %59 = arith.addf %58, %13 : vector<8x128xf32>
    %cst_30 = arith.constant dense<0.000000e+00> : vector<8xf32>
    %60 = vector.multi_reduction <add>, %59, %cst_30 [1] : vector<8x128xf32> to vector<8xf32>
    %61 = vector.shape_cast %60 : vector<8xf32> to vector<8x1xf32>
    %cst_31 = arith.constant 1.280000e+02 : f32
    %62 = vector.broadcast %cst_31 : f32 to vector<8x1xf32>
    %63 = arith.divf %61, %62 : vector<8x1xf32>
    %64 = vector.broadcast %63 : vector<8x1xf32> to vector<8x128xf32>
    %65 = arith.subf %59, %64 : vector<8x128xf32>
    %66 = arith.mulf %65, %65 : vector<8x128xf32>
    %cst_32 = arith.constant dense<0.000000e+00> : vector<8xf32>
    %67 = vector.multi_reduction <add>, %66, %cst_32 [1] : vector<8x128xf32> to vector<8xf32>
    %68 = vector.shape_cast %67 : vector<8xf32> to vector<8x1xf32>
    %cst_33 = arith.constant 1.280000e+02 : f32
    %69 = vector.broadcast %cst_33 : f32 to vector<8x1xf32>
    %70 = arith.divf %68, %69 : vector<8x1xf32>
    %71 = vector.broadcast %63 : vector<8x1xf32> to vector<8x128xf32>
    %72 = arith.subf %59, %71 : vector<8x128xf32>
    %cst_34 = arith.constant 9.99999974E-6 : f32
    %73 = vector.broadcast %cst_34 : f32 to vector<8x1xf32>
    %74 = arith.addf %70, %73 : vector<8x1xf32>
    %75 = math.rsqrt %74 : vector<8x1xf32>
    %76 = vector.broadcast %75 : vector<8x1xf32> to vector<8x128xf32>
    %77 = arith.mulf %72, %76 : vector<8x128xf32>
    %78 = vector.broadcast %23 : vector<1x128xf32> to vector<8x128xf32>
    %79 = arith.mulf %77, %78 : vector<8x128xf32>
    %80 = vector.broadcast %24 : vector<1x128xf32> to vector<8x128xf32>
    %81 = arith.addf %79, %80 : vector<8x128xf32>
    %82 = arith.truncf %81 : vector<8x128xf32> to vector<8x128xbf16>
    %cst_35 = arith.constant dense<0.000000e+00> : vector<8x512xf32>
    %83 = tpu.matmul %82, %29, %cst_35 {dimension_numbers = #tpu.dot_dimension_numbers<[1], [0], [0], [1], [0, 0, 1, 1], [], []>} : vector<8x128xbf16>, vector<128x512xbf16>, vector<8x512xf32> -> vector<8x512xf32>
    %84 = vector.broadcast %32 : vector<1x512xf32> to vector<8x512xf32>
    %85 = arith.addf %83, %84 : vector<8x512xf32>
    %cst_36 = arith.constant 4.471500e-02 : f32
    %86 = vector.broadcast %cst_36 : f32 to vector<8x512xf32>
    %87 = arith.mulf %86, %85 : vector<8x512xf32>
    %88 = arith.mulf %87, %85 : vector<8x512xf32>
    %89 = arith.mulf %88, %85 : vector<8x512xf32>
    %90 = arith.addf %85, %89 : vector<8x512xf32>
    %cst_37 = arith.constant 0.797884583 : f32
    %91 = vector.broadcast %cst_37 : f32 to vector<8x512xf32>
    %92 = arith.mulf %91, %90 : vector<8x512xf32>
    %cst_38 = arith.constant 5.000000e-01 : f32
    %93 = vector.broadcast %cst_38 : f32 to vector<8x512xf32>
    %94 = arith.mulf %93, %85 : vector<8x512xf32>
    %95 = math.tanh %92 : vector<8x512xf32>
    %cst_39 = arith.constant 1.000000e+00 : f32
    %96 = vector.broadcast %cst_39 : f32 to vector<8x512xf32>
    %97 = arith.addf %96, %95 : vector<8x512xf32>
    %98 = arith.mulf %94, %97 : vector<8x512xf32>
    %99 = arith.truncf %98 : vector<8x512xf32> to vector<8x512xbf16>
    %cst_40 = arith.constant dense<0.000000e+00> : vector<8x128xf32>
    %100 = tpu.matmul %99, %31, %cst_40 {dimension_numbers = #tpu.dot_dimension_numbers<[1], [0], [0], [1], [0, 0, 1, 1], [], []>} : vector<8x512xbf16>, vector<512x128xbf16>, vector<8x128xf32> -> vector<8x128xf32>
    %101 = vector.broadcast %25 : vector<1x128xf32> to vector<8x128xf32>
    %102 = arith.addf %100, %101 : vector<8x128xf32>
    %103 = arith.addf %102, %59 : vector<8x128xf32>
    %104 = arith.truncf %103 : vector<8x128xf32> to vector<8x128xbf16>
    %105 = vector.extract_strided_slice %0 {offsets = [8, 0], sizes = [1, 128], strides = [1, 1]} : vector<15x128xf32> to vector<1x128xf32>
    %106 = vector.extract_strided_slice %0 {offsets = [9, 0], sizes = [1, 128], strides = [1, 1]} : vector<15x128xf32> to vector<1x128xf32>
    %107 = vector.extract_strided_slice %0 {offsets = [10, 0], sizes = [1, 128], strides = [1, 1]} : vector<15x128xf32> to vector<1x128xf32>
    %108 = vector.extract_strided_slice %0 {offsets = [11, 0], sizes = [1, 128], strides = [1, 1]} : vector<15x128xf32> to vector<1x128xf32>
    %109 = vector.extract_strided_slice %0 {offsets = [12, 0], sizes = [1, 128], strides = [1, 1]} : vector<15x128xf32> to vector<1x128xf32>
    %110 = vector.extract_strided_slice %0 {offsets = [13, 0], sizes = [1, 128], strides = [1, 1]} : vector<15x128xf32> to vector<1x128xf32>
    %c1_41 = arith.constant 1 : index
    %c0_42 = arith.constant 0 : index
    %c0_43 = arith.constant 0 : index
    %111 = vector.load %arg3[%c1_41, %c0_42, %c0_43] : memref<4x128x128xbf16, #tpu.memory_space<vmem>>, vector<1x128x128xbf16>
    %112 = vector.shape_cast %111 : vector<1x128x128xbf16> to vector<128x128xbf16>
    %c1_44 = arith.constant 1 : index
    %c0_45 = arith.constant 0 : index
    %c0_46 = arith.constant 0 : index
    %113 = vector.load %arg4[%c1_44, %c0_45, %c0_46] : memref<2x128x512xbf16, #tpu.memory_space<vmem>>, vector<1x128x512xbf16>
    %114 = vector.shape_cast %113 : vector<1x128x512xbf16> to vector<128x512xbf16>
    %c1_47 = arith.constant 1 : index
    %c0_48 = arith.constant 0 : index
    %c0_49 = arith.constant 0 : index
    %115 = vector.load %arg5[%c1_47, %c0_48, %c0_49] : memref<2x512x128xbf16, #tpu.memory_space<vmem>>, vector<1x512x128xbf16>
    %116 = vector.shape_cast %115 : vector<1x512x128xbf16> to vector<512x128xbf16>
    %117 = vector.extract_strided_slice %1 {offsets = [1, 0], sizes = [1, 512], strides = [1, 1]} : vector<2x512xf32> to vector<1x512xf32>
    %cst_50 = arith.constant dense<0.000000e+00> : vector<8xf32>
    %118 = vector.multi_reduction <add>, %13, %cst_50 [1] : vector<8x128xf32> to vector<8xf32>
    %119 = vector.shape_cast %118 : vector<8xf32> to vector<8x1xf32>
    %cst_51 = arith.constant 1.280000e+02 : f32
    %120 = vector.broadcast %cst_51 : f32 to vector<8x1xf32>
    %121 = arith.divf %119, %120 : vector<8x1xf32>
    %122 = vector.broadcast %121 : vector<8x1xf32> to vector<8x128xf32>
    %123 = arith.subf %13, %122 : vector<8x128xf32>
    %124 = arith.mulf %123, %123 : vector<8x128xf32>
    %cst_52 = arith.constant dense<0.000000e+00> : vector<8xf32>
    %125 = vector.multi_reduction <add>, %124, %cst_52 [1] : vector<8x128xf32> to vector<8xf32>
    %126 = vector.shape_cast %125 : vector<8xf32> to vector<8x1xf32>
    %cst_53 = arith.constant 1.280000e+02 : f32
    %127 = vector.broadcast %cst_53 : f32 to vector<8x1xf32>
    %128 = arith.divf %126, %127 : vector<8x1xf32>
    %129 = vector.broadcast %121 : vector<8x1xf32> to vector<8x128xf32>
    %130 = arith.subf %13, %129 : vector<8x128xf32>
    %cst_54 = arith.constant 9.99999974E-6 : f32
    %131 = vector.broadcast %cst_54 : f32 to vector<8x1xf32>
    %132 = arith.addf %128, %131 : vector<8x1xf32>
    %133 = math.rsqrt %132 : vector<8x1xf32>
    %134 = vector.broadcast %133 : vector<8x1xf32> to vector<8x128xf32>
    %135 = arith.mulf %130, %134 : vector<8x128xf32>
    %136 = vector.broadcast %105 : vector<1x128xf32> to vector<8x128xf32>
    %137 = arith.mulf %135, %136 : vector<8x128xf32>
    %138 = vector.broadcast %106 : vector<1x128xf32> to vector<8x128xf32>
    %139 = arith.addf %137, %138 : vector<8x128xf32>
    %140 = arith.truncf %139 : vector<8x128xf32> to vector<8x128xbf16>
    %cst_55 = arith.constant dense<0.000000e+00> : vector<8x128xf32>
    %141 = tpu.matmul %140, %112, %cst_55 {dimension_numbers = #tpu.dot_dimension_numbers<[1], [0], [0], [1], [0, 0, 1, 1], [], []>} : vector<8x128xbf16>, vector<128x128xbf16>, vector<8x128xf32> -> vector<8x128xf32>
    %142 = vector.broadcast %107 : vector<1x128xf32> to vector<8x128xf32>
    %143 = arith.addf %141, %142 : vector<8x128xf32>
    %144 = arith.addf %143, %19 : vector<8x128xf32>
    %cst_56 = arith.constant dense<0.000000e+00> : vector<8xf32>
    %145 = vector.multi_reduction <add>, %144, %cst_56 [1] : vector<8x128xf32> to vector<8xf32>
    %146 = vector.shape_cast %145 : vector<8xf32> to vector<8x1xf32>
    %cst_57 = arith.constant 1.280000e+02 : f32
    %147 = vector.broadcast %cst_57 : f32 to vector<8x1xf32>
    %148 = arith.divf %146, %147 : vector<8x1xf32>
    %149 = vector.broadcast %148 : vector<8x1xf32> to vector<8x128xf32>
    %150 = arith.subf %144, %149 : vector<8x128xf32>
    %151 = arith.mulf %150, %150 : vector<8x128xf32>
    %cst_58 = arith.constant dense<0.000000e+00> : vector<8xf32>
    %152 = vector.multi_reduction <add>, %151, %cst_58 [1] : vector<8x128xf32> to vector<8xf32>
    %153 = vector.shape_cast %152 : vector<8xf32> to vector<8x1xf32>
    %cst_59 = arith.constant 1.280000e+02 : f32
    %154 = vector.broadcast %cst_59 : f32 to vector<8x1xf32>
    %155 = arith.divf %153, %154 : vector<8x1xf32>
    %156 = vector.broadcast %148 : vector<8x1xf32> to vector<8x128xf32>
    %157 = arith.subf %144, %156 : vector<8x128xf32>
    %cst_60 = arith.constant 9.99999974E-6 : f32
    %158 = vector.broadcast %cst_60 : f32 to vector<8x1xf32>
    %159 = arith.addf %155, %158 : vector<8x1xf32>
    %160 = math.rsqrt %159 : vector<8x1xf32>
    %161 = vector.broadcast %160 : vector<8x1xf32> to vector<8x128xf32>
    %162 = arith.mulf %157, %161 : vector<8x128xf32>
    %163 = vector.broadcast %108 : vector<1x128xf32> to vector<8x128xf32>
    %164 = arith.mulf %162, %163 : vector<8x128xf32>
    %165 = vector.broadcast %109 : vector<1x128xf32> to vector<8x128xf32>
    %166 = arith.addf %164, %165 : vector<8x128xf32>
    %167 = arith.truncf %166 : vector<8x128xf32> to vector<8x128xbf16>
    %cst_61 = arith.constant dense<0.000000e+00> : vector<8x512xf32>
    %168 = tpu.matmul %167, %114, %cst_61 {dimension_numbers = #tpu.dot_dimension_numbers<[1], [0], [0], [1], [0, 0, 1, 1], [], []>} : vector<8x128xbf16>, vector<128x512xbf16>, vector<8x512xf32> -> vector<8x512xf32>
    %169 = vector.broadcast %117 : vector<1x512xf32> to vector<8x512xf32>
    %170 = arith.addf %168, %169 : vector<8x512xf32>
    %cst_62 = arith.constant 4.471500e-02 : f32
    %171 = vector.broadcast %cst_62 : f32 to vector<8x512xf32>
    %172 = arith.mulf %171, %170 : vector<8x512xf32>
    %173 = arith.mulf %172, %170 : vector<8x512xf32>
    %174 = arith.mulf %173, %170 : vector<8x512xf32>
    %175 = arith.addf %170, %174 : vector<8x512xf32>
    %cst_63 = arith.constant 0.797884583 : f32
    %176 = vector.broadcast %cst_63 : f32 to vector<8x512xf32>
    %177 = arith.mulf %176, %175 : vector<8x512xf32>
    %cst_64 = arith.constant 5.000000e-01 : f32
    %178 = vector.broadcast %cst_64 : f32 to vector<8x512xf32>
    %179 = arith.mulf %178, %170 : vector<8x512xf32>
    %180 = math.tanh %177 : vector<8x512xf32>
    %cst_65 = arith.constant 1.000000e+00 : f32
    %181 = vector.broadcast %cst_65 : f32 to vector<8x512xf32>
    %182 = arith.addf %181, %180 : vector<8x512xf32>
    %183 = arith.mulf %179, %182 : vector<8x512xf32>
    %184 = arith.truncf %183 : vector<8x512xf32> to vector<8x512xbf16>
    %cst_66 = arith.constant dense<0.000000e+00> : vector<8x128xf32>
    %185 = tpu.matmul %184, %116, %cst_66 {dimension_numbers = #tpu.dot_dimension_numbers<[1], [0], [0], [1], [0, 0, 1, 1], [], []>} : vector<8x512xbf16>, vector<512x128xbf16>, vector<8x128xf32> -> vector<8x128xf32>
    %186 = vector.broadcast %110 : vector<1x128xf32> to vector<8x128xf32>
    %187 = arith.addf %185, %186 : vector<8x128xf32>
    %188 = arith.addf %187, %144 : vector<8x128xf32>
    %189 = arith.truncf %188 : vector<8x128xf32> to vector<8x128xbf16>
    %c2 = arith.constant 2 : index
    %c0_67 = arith.constant 0 : index
    %c0_68 = arith.constant 0 : index
    %190 = vector.load %arg3[%c2, %c0_67, %c0_68] : memref<4x128x128xbf16, #tpu.memory_space<vmem>>, vector<1x128x128xbf16>
    %191 = vector.shape_cast %190 : vector<1x128x128xbf16> to vector<128x128xbf16>
    %cst_69 = arith.constant dense<0.000000e+00> : vector<8x128xf32>
    %192 = tpu.matmul %104, %191, %cst_69 {dimension_numbers = #tpu.dot_dimension_numbers<[1], [0], [0], [1], [0, 0, 1, 1], [], []>} : vector<8x128xbf16>, vector<128x128xbf16>, vector<8x128xf32> -> vector<8x128xf32>
    %c3 = arith.constant 3 : index
    %c0_70 = arith.constant 0 : index
    %c0_71 = arith.constant 0 : index
    %193 = vector.load %arg3[%c3, %c0_70, %c0_71] : memref<4x128x128xbf16, #tpu.memory_space<vmem>>, vector<1x128x128xbf16>
    %194 = vector.shape_cast %193 : vector<1x128x128xbf16> to vector<128x128xbf16>
    %cst_72 = arith.constant dense<0.000000e+00> : vector<8x128xf32>
    %195 = tpu.matmul %189, %194, %cst_72 {dimension_numbers = #tpu.dot_dimension_numbers<[1], [0], [0], [1], [0, 0, 1, 1], [], []>} : vector<8x128xbf16>, vector<128x128xbf16>, vector<8x128xf32> -> vector<8x128xf32>
    %196 = arith.addf %192, %195 : vector<8x128xf32>
    %197 = vector.extract_strided_slice %0 {offsets = [14, 0], sizes = [1, 128], strides = [1, 1]} : vector<15x128xf32> to vector<1x128xf32>
    %198 = vector.broadcast %197 : vector<1x128xf32> to vector<8x128xf32>
    %199 = arith.addf %196, %198 : vector<8x128xf32>
    %c0_73 = arith.constant 0 : index
    %c0_74 = arith.constant 0 : index
    %200 = vector.load %arg8[%c0_73, %c0_74] : memref<8x128xf32, #tpu.memory_space<vmem>>, vector<8x128xf32>
    tpu.vector_store %arg8[%c0_73, %c0_74], %199 {strides = array<i32>} : memref<8x128xf32, #tpu.memory_space<vmem>>, vector<8x128xf32>,
    return
  }
  func.func @transform_0(%arg0: i32) -> (i32, i32, i32) {
    %c0_i32 = arith.constant 0 : i32
    %c0_i32_0 = arith.constant 0 : i32
    %c0_i32_1 = arith.constant 0 : i32
    return %c0_i32, %arg0, %c0_i32_0 : i32, i32, i32
  }
  func.func @transform_1(%arg0: i32) -> (i32, i32, i32) {
    %c0_i32 = arith.constant 0 : i32
    %c0_i32_0 = arith.constant 0 : i32
    %c0_i32_1 = arith.constant 0 : i32
    %c0_i32_2 = arith.constant 0 : i32
    return %c0_i32, %c0_i32_0, %c0_i32_1 : i32, i32, i32
  }
  func.func @transform_2(%arg0: i32) -> (i32, i32, i32) {
    %c0_i32 = arith.constant 0 : i32
    %c0_i32_0 = arith.constant 0 : i32
    %c0_i32_1 = arith.constant 0 : i32
    %c0_i32_2 = arith.constant 0 : i32
    return %c0_i32, %c0_i32_0, %c0_i32_1 : i32, i32, i32
  }
  func.func @transform_3(%arg0: i32) -> (i32, i32, i32) {
    %c0_i32 = arith.constant 0 : i32
    %c0_i32_0 = arith.constant 0 : i32
    %c0_i32_1 = arith.constant 0 : i32
    %c0_i32_2 = arith.constant 0 : i32
    return %c0_i32, %c0_i32_0, %c0_i32_1 : i32, i32, i32
  }
  func.func @transform_4(%arg0: i32) -> (i32, i32, i32) {
    %c0_i32 = arith.constant 0 : i32
    %c0_i32_0 = arith.constant 0 : i32
    %c0_i32_1 = arith.constant 0 : i32
    %c0_i32_2 = arith.constant 0 : i32
    return %c0_i32, %c0_i32_0, %c0_i32_1 : i32, i32, i32
  }
  func.func @transform_5(%arg0: i32) -> (i32, i32) {
    %c0_i32 = arith.constant 0 : i32
    %c0_i32_0 = arith.constant 0 : i32
    %c0_i32_1 = arith.constant 0 : i32
    return %c0_i32, %c0_i32_0 : i32, i32
  }
  func.func @transform_6(%arg0: i32) -> (i32, i32) {
    %c0_i32 = arith.constant 0 : i32
    %c0_i32_0 = arith.constant 0 : i32
    %c0_i32_1 = arith.constant 0 : i32
    return %c0_i32, %c0_i32_0 : i32, i32
  }
  func.func @transform_7(%arg0: i32) -> (i32, i32) {
    %c0_i32 = arith.constant 0 : i32
    %c0_i32_0 = arith.constant 0 : i32
    return %arg0, %c0_i32 : i32, i32
  }
}

</mosaic_0001>

<bundles_post_ra>
// kernel: tpu_custom_call.1
= control target key start
LH: loop header
LB: loop body
LE: loop exit
PB: predicated region body
PF: predicated region fallthrough
CT: control target
= control target key end

     0   :  { %12 = vsyncpa [#allocation3], 0  ;;  %s3256_s0 = inlined_call_operand.hbm [shape: f32[2,8,128], index: 0, kind: input, shape index: {}]   ;;  %s3257_s1 = inlined_call_operand.hbm [shape: bf16[2,128,128], index: 1, kind: input, shape index: {}]   ;;  %s3258_s2 = inlined_call_operand.hbm [shape: bf16[4,128,128], index: 2, kind: input, shape index: {}]   ;;  %s3259_s3 = inlined_call_operand.hbm [shape: bf16[2,128,512], index: 3, kind: input, shape index: {}]   ;;  %s3260_s4 = inlined_call_operand.hbm [shape: bf16[2,512,128], index: 4, kind: input, shape index: {}]   ;;  %s3261_s5 = inlined_call_operand.hbm [shape: f32[15,128], index: 5, kind: input, shape index: {}]   ;;  %s3262_s6 = inlined_call_operand.hbm [shape: f32[2,512], index: 6, kind: input, shape index: {}]   ;;  %s3263_s7 = inlined_call_operand.hbm [shape: f32[8,128], index: 7, kind: output, shape index: {}]  }
   0x1   :  { %13 = vsyncpa [#allocation6], 0 }
   0x2   :  { %14 = vsyncpa [#allocation9], 0 }
   0x3   :  { %15 = vsyncpa [#allocation12], 0  ;;  %s34_s26 = sshll.u32 %s3257_s1, 4  ;;  %s35_s26 = int_to_ptr.hbm [resolvable:$true] %s34_s26 }
   0x4   :  { %16 = vsyncpa [#allocation4], 0  ;;  %s3084_s27 = smov [#allocation5]   ;;  %s60_s8 = sshll.u32 %s3259_s3, 4  ;;  %s61_s8 = int_to_ptr.hbm [resolvable:$true] %s60_s8 }
   0x5   :  { %s36_s28 = sshll.u32 %s3084_s27, 4  ;;  %s3085_s9 = smov 64   ;;  %s37_s28 = int_to_ptr.vmem [resolvable:$true] %s36_s28 }
   0x6   :  { %s3086_s10 = smov 4   ;;  %s3087_s11 = smov [#allocation8]  }
   0x7   :  { %42 = dma.hbm_to_vmem [thread:$0]  %s35_s26, 2048, %s37_s28, [#allocation6], %s3085_s9, %s3085_s9, %s3086_s10  }
   0x8   :  { %s62_s12 = sshll.u32 %s3087_s11, 4  ;;  %s3088_s1 = smov 256   ;;  %s63_s12 = int_to_ptr.vmem [resolvable:$true] %s62_s12 }
   0x9   :  { %s3089_s13 = smov 16   ;;  %s86_s16 = sshll.u32 %s3261_s5, 4  ;;  %s87_s16 = int_to_ptr.hbm [resolvable:$true] %s86_s16 }
   0xa   :  { %68 = dma.hbm_to_vmem [thread:$0]  %s61_s8, 8192, %s63_s12, [#allocation9], %s3088_s1, %s3088_s1, %s3089_s13  }
   0xb   :  { %s3090_s17 = smov [#allocation11]   ;;  %s21_s20 = sshll.u32 %s3256_s0, 4  ;;  %s22_s20 = int_to_ptr.hbm [resolvable:$true] %s21_s20 }
   0xc   :  { %s88_s3 = sshll.u32 %s3090_s17, 4  ;;  %s3091_s21 = smov 128   ;;  %s89_s3 = int_to_ptr.vmem [resolvable:$true] %s88_s3 }
   0xd   :  { %s3092_s22 = smov 8   ;;  %s3093_s23 = smov [#allocation2]  }
   0xe   :  { %94 = dma.hbm_to_vmem [thread:$0]  %s87_s16, 256, %s89_s3, [#allocation12], %s3091_s21, %s3091_s21, %s3092_s22  }
   0xf   :  { %s23_s24 = sshll.u32 %s3093_s23, 4  ;;  %s47_s27 = sshll.u32 %s3258_s2, 4  ;;  %s24_s24 = int_to_ptr.vmem [resolvable:$true] %s23_s24  ;;  %s48_s27 = int_to_ptr.hbm [resolvable:$true] %s47_s27 }
  0x10   :  { %29 = dma.hbm_to_vmem [thread:$0]  %s22_s20, 256, %s24_s24, [#allocation3], %s3091_s21, %s3091_s21, %s3092_s22  }
  0x11   :  { %s73_s29 = sshll.u32 %s3260_s4, 4  ;;  %s3094_s30 = smov [#allocation7]   ;;  %s74_s29 = int_to_ptr.hbm [resolvable:$true] %s73_s29 }
  0x12   :  { %s49_s8 = sshll.u32 %s3094_s30, 4  ;;  %s3095_s0 = smov [#allocation10]   ;;  %s50_s8 = int_to_ptr.vmem [resolvable:$true] %s49_s8 }
  0x13   :  { %55 = dma.hbm_to_vmem [thread:$0]  %s48_s27, 4096, %s50_s8, [#allocation6], %s3085_s9, %s3085_s9, %s3086_s10  }
  0x14   :  { %s75_s11 = sshll.u32 %s3095_s0, 4  ;;  %s100_s2 = sshll.u32 %s3262_s6, 4  ;;  %s76_s11 = int_to_ptr.vmem [resolvable:$true] %s75_s11  ;;  %s101_s2 = int_to_ptr.hbm [resolvable:$true] %s100_s2 }
  0x15   :  { %81 = dma.hbm_to_vmem [thread:$0]  %s74_s29, 8192, %s76_s11, [#allocation9], %s3085_s9, %s3085_s9, %s3086_s10  }
  0x16   :  { %s3096_s4 = smov [#allocation13]  }
  0x17   :  { %s102_s13 = sshll.u32 %s3096_s4, 4  ;;  %s103_s13 = int_to_ptr.vmem [resolvable:$true] %s102_s13 }
  0x18   :  { %105 = dma.hbm_to_vmem [thread:$0]  %s101_s2, 128, %s103_s13, [#allocation12]  }
  0x19   :  { %3074 = dma.done.wait [#allocation3], 256  }
  0x1a   :  { %3075 = vsyncadd [#allocation3], 4294967040 }
  0x1b   :  { %3076 = dma.done.wait [#allocation6], 6144  }
  0x1c   :  { %3077 = vsyncadd [#allocation6], 4294961152 }
  0x1d   :  { %3078 = dma.done.wait [#allocation9], 16384  }
  0x1e   :  { %3079 = vsyncadd [#allocation9], 4294950912 }
  0x1f   :  { %3080 = dma.done.wait [#allocation12], 384  }
  0x20   :  { %3081 = vsyncadd [#allocation12], 4294966912  ;;  %v2680_v0 = vld [vmem:[#allocation5 + $0x78] sm:$0xff]  ;;  %v2679_v1 = vld [vmem:[#allocation5 + $0x70] sm:$0xff]  ;;  %v3097_v25 = vmov 128.0   ;;  %s3098_s6 = smov [#allocation14]  }
  0x21   :  { %286 = vmatpush.bf16.msra.mxu1 %v2680_v0  ;;  %v2672_v2 = vld [vmem:[#allocation5 + $0x38] sm:$0xff]  ;;  %v2671_v3 = vld [vmem:[#allocation5 + $0x30] sm:$0xff]  ;;  %v2678_v4 = vld [vmem:[#allocation5 + $0x68] sm:$0xff]  ;;  %2856 = vrcp.f32 %v3097_v25  ;;  %s1946_s9 = sshll.u32 %s3098_s6, 4  ;;  %s1948_s15 = sshll.u32 %s3263_s7, 4  ;;  %s1947_s9 = int_to_ptr.vmem [resolvable:$true] %s1946_s9  ;;  %s1949_s15 = int_to_ptr.hbm [resolvable:$true] %s1948_s15 }
  0x22   :  { %207 = vmatpush.bf16.msra.mxu0 %v2672_v2  ;;  %v2670_v5 = vld [vmem:[#allocation5 + $0x28] sm:$0xff]  ;;  %v2677_v6 = vld [vmem:[#allocation5 + $0x60] sm:$0xff]  ;;  %v2676_v8 = vld [vmem:[#allocation5 + $0x58] sm:$0xff] }
  0x23   :  { %v2669_v7 = vld [vmem:[#allocation5 + $0x20] sm:$0xff]  ;;  %v2675_v9 = vld [vmem:[#allocation5 + $0x50] sm:$0xff]  ;;  %v2674_v10 = vld [vmem:[#allocation5 + $0x48] sm:$0xff] }
  0x24   :  { %v2673_v11 = vld [vmem:[#allocation5 + $0x40] sm:$0xff]  ;;  %v140_v12 = vld [vmem:[#allocation2 + $0x8] sm:$0xff]  ;;  %v2667_v15 = vld [vmem:[#allocation5 + $0x10] sm:$0xff] }
  0x25   :  { %287 = vmatpush.bf16.msra.mxu1 %v2679_v1  ;;  %v141_v13 = vpack.c.bf16 %v140_v12, %v140_v12  ;;  %v2668_v14 = vld [vmem:[#allocation5 + $0x18] sm:$0xff]  ;;  %v2666_v16 = vld [vmem:[#allocation5 + $0x8] sm:$0xff]  ;;  %v2665_v17 = vld [vmem:[#allocation5] sm:$0xff] }
  0x26   :  { %208 = vmatpush.bf16.msra.mxu0 %v2671_v3  ;;  %v137_v18 = vld [vmem:[#allocation2] sm:$0xff]  ;;  %v3169_v20 = vld [vmem:[#allocation11] sm:$0xff]  ;;  %v2688_v26 = vld [vmem:[#allocation7 + $0x38] sm:$0xff] }
  0x27   :  { %v138_v19 = vpack.c.bf16 %v137_v18, %v137_v18  ;;  %v237_v21 = vperm.slane %v3169_v20, 1  ;;  %492 = vmatpush.bf16.msra.mxu2 %v2688_v26  ;;  %v2857_v27 = vpop.eup %2856  ;;  %v158_v31 = vperm.slane %v3169_v20, 0  ;;  %v2687_v41 = vld [vmem:[#allocation7 + $0x30] sm:$0xff]  ;;  %v2686_v42 = vld [vmem:[#allocation7 + $0x28] sm:$0xff]  ;;  %v2685_v43 = vld [vmem:[#allocation7 + $0x20] sm:$0xff]  ;;  %v438_v61 = vperm.slane %v3169_v20, 2 }
  0x28   :  { %v414_v28 = vmul.f32 128.0, %v2857_v27  ;;  %vm418_vm0 = vweird.f32 %v2857_v27  ;;  %v2684_v44 = vld [vmem:[#allocation7 + $0x18] sm:$0xff]  ;;  %v2683_v45 = vld [vmem:[#allocation7 + $0x10] sm:$0xff]  ;;  %v2682_v46 = vld [vmem:[#allocation7 + $0x8] sm:$0xff]  ;;  %v440_v0 = vperm.slane %v3169_v20, 3 }
  0x29   :  { %288 = vmatpush.bf16.msra.mxu1 %v2678_v4  ;;  %v2681_v49 = vld [vmem:[#allocation7] sm:$0xff]  ;;  %v443_v4 = vperm.slane %v3169_v20, 4  ;;  %v2718_v18 = vld [vmem:[#allocation8 + $0xec] sm:$0xf] }
  0x2a   :  { %209 = vmatpush.bf16.msra.mxu0 %v2670_v5  ;;  %v415_v29 = vsub.f32 1.0, %v414_v28  ;;  %v2715_v28 = vld [vmem:[#allocation8 + $0xcc] sm:$0xf0] }
  0x2b   :  { %493 = vmatpush.bf16.msra.mxu2 %v2687_v41  ;;  %v2711_v41 = vld [vmem:[#allocation8 + $0xac] sm:$0xf0] }
  0x2c   :  { %v416_v30 = vmul.f32 %v2857_v27, %v415_v29  ;;  %v2713_v29 = vld [vmem:[#allocation8 + $0xc4] sm:$0xf] }
  0x2d   :  { %289 = vmatpush.bf16.msra.mxu1 %v2677_v6 }
  0x2e   :  { %210 = vmatpush.bf16.msra.mxu0 %v2669_v7  ;;  %v417_v32 = vadd.f32 %v2857_v27, %v416_v30 }
  0x2f   :  { %494 = vmatpush.bf16.msra.mxu2 %v2686_v42  ;;  %v2709_v42 = vld [vmem:[#allocation8 + $0xa4] sm:$0xf] }
  0x30   :  { %v3176_v35 = vsel %vm418_vm0, %v2857_v27, %v417_v32  ;;  %v2155_v27 = vld [vmem:[#allocation8 + $0xc0] sm:$0xf]  ;;  %v2163_v32 = vld [vmem:[#allocation8 + $0xc8] sm:$0xf] }
  0x31   :  { %290 = vmatpush.bf16.msra.mxu1 %v2676_v8  ;;  %v2156_v30 = vor.u32 %v2715_v28, %v2155_v27  ;;  %v2101_v27 = vld [vmem:[#allocation8 + $0x58] sm:$0xf0] }
  0x32   :  { %211 = vmatpush.bf16.msra.mxu0 %v2668_v14  ;;  %v2179_v14 = vld [vmem:[#allocation8 + $0xe8] sm:$0xf] }
  0x33   :  { %495 = vmatpush.bf16.msra.mxu2 %v2685_v43 }
  0x35   :  { %291 = vmatpush.bf16.msra.mxu1 %v2675_v9  ;;  %v2171_v9 = vld [vmem:[#allocation8 + $0xe0] sm:$0xf] }
  0x36   :  { %212 = vmatpush.bf16.msra.mxu0 %v2667_v15  ;;  %v2720_v15 = vld [vmem:[#allocation8 + $0xf4] sm:$0xf0] }
  0x37   :  { %496 = vmatpush.bf16.msra.mxu2 %v2684_v44  ;;  %v2141_v44 = vld [vmem:[#allocation8 + $0xb0] sm:$0xf0] }
  0x39   :  { %292 = vmatpush.bf16.msra.mxu1 %v2674_v10  ;;  %v2719_v10 = vld [vmem:[#allocation8 + $0xec] sm:$0xf0] }
  0x3a   :  { %213 = vmatpush.bf16.msra.mxu0 %v2666_v16  ;;  %v2172_v12 = vor.u32 %v2719_v10, %v2171_v9 }
  0x3b   :  { %497 = vmatpush.bf16.msra.mxu2 %v2683_v45  ;;  %v2147_v45 = vld [vmem:[#allocation8 + $0xa8] sm:$0xf] }
  0x3c   :  { %704 = vmatpush.bf16.msra.mxu3 %v2172_v12  ;;  %v2117_v12 = vld [vmem:[#allocation8 + $0x78] sm:$0xf0] }
  0x3d   :  { %293 = vmatpush.bf16.msra.mxu1 %v2673_v11  ;;  %v2717_v11 = vld [vmem:[#allocation8 + $0xe4] sm:$0xf] }
  0x3e   :  { %214 = vmatpush.bf16.msra.mxu0 %v2665_v17  ;;  %v2180_v17 = vor.u32 %v2720_v15, %v2179_v14  ;;  %v2091_v14 = vld [vmem:[#allocation8 + $0x40] sm:$0xf]  ;;  %v2699_v15 = vld [vmem:[#allocation8 + $0x4c] sm:$0xf0] }
  0x3f   :  { %498 = vmatpush.bf16.msra.mxu2 %v2682_v46  ;;  %v2712_v46 = vld [vmem:[#allocation8 + $0xb4] sm:$0xf0] }
  0x40   :  { %294 = vmatmul.bf16.vlgmr.msra.gmra.mxu1 %v141_v13  ;;  %v2173_v13 = vld [vmem:[#allocation8 + $0xf0] sm:$0xf0]  ;;  %705 = vmatpush.bf16.msra.mxu3 %v2156_v30  ;;  %v2695_v30 = vld [vmem:[#allocation8 + $0x2c] sm:$0xf0] }
  0x41   :  { %215 = vmatmul.bf16.vlgmr.msra.gmra.mxu0 %v138_v19  ;;  %v2176_v16 = vor.u32 %v2717_v11, %v2173_v13  ;;  %v2181_v19 = vld [vmem:[#allocation8 + $0xf8] sm:$0xf0]  ;;  %730 = vmatpush.bf16.msrb.mxu1 %v2180_v17  ;;  %v2702_v11 = vld [vmem:[#allocation8 + $0x6c] sm:$0xf]  ;;  %v2092_v17 = vor.u32 %v2699_v15, %v2091_v14  ;;  %v2725_v15 = vld [vmem:[#allocation10 + $0x20] sm:$0xff] }
  0x42   :  { %v2120_v13 = vor.u32 %v2702_v11, %v2117_v12  ;;  %v528_v11 = vperm.slane %v3169_v20, 6 }
  0x43   :  { %499 = vmatpush.bf16.msra.mxu2 %v2681_v49  ;;  %717 = vmatpush.bf16.msrb.mxu0 %v2176_v16  ;;  %v2710_v49 = vld [vmem:[#allocation8 + $0xac] sm:$0xf]  ;;  %v2697_v16 = vld [vmem:[#allocation8 + $0x44] sm:$0xf] }
  0xbd   :  { %v295_v22 = vpop.f32.mrf.mxu1 }
  0xbe   :  { %v3172_v23 = vadd.f32 %v295_v22, %v237_v21  ;;  %v216_v33 = vpop.f32.mrf.mxu0  ;;  %v2184_v21 = vor.u32 %v2718_v18, %v2181_v19  ;;  %v2093_v18 = vld [vmem:[#allocation8 + $0x50] sm:$0xf0]  ;;  %v2099_v19 = vld [vmem:[#allocation8 + $0x48] sm:$0xf] }
  0xbf   :  { %v217_v34 = vadd.f32 %v216_v33, %v158_v31  ;;  %v2157_v31 = vld [vmem:[#allocation8 + $0xd0] sm:$0xf0]  ;;  %v2716_v33 = vld [vmem:[#allocation8 + $0xd4] sm:$0xf0] }
  0xc0   :  { %411 = vadd.xlane.f32.xlu0 %v3172_v23  ;;  %743 = vmatpush.bf16.msrb.mxu2 %v2184_v21  ;;  %v2700_v21 = vld [vmem:[#allocation8 + $0x54] sm:$0xf0] }
  0xc1   :  { %1158 = vadd.xlane.f32.xlu2 %v217_v34 }
  0xc5   :  { %v297_v24 = vpop.f32.mrf.mxu1 }
  0xc6   :  { %v218_v38 = vpop.f32.mrf.mxu0 }
  0xc7   :  { %v2165_v38 = vld [vmem:[#allocation8 + $0xd8] sm:$0xf0] }
 0x133   :  { %v412_v36 = vpop.xlane.xlu0 %411 }
 0x134   :  { %v420_v37 = vmul.f32 %v3176_v35, %v412_v36  ;;  %v1159_v47 = vpop.xlane.xlu2 %1158  ;;  %v2164_v36 = vor.u32 %v2716_v33, %v2163_v32  ;;  %v2077_v33 = vld [vmem:[#allocation8 + $0x30] sm:$0xf0] }
 0x135   :  { %v1160_v48 = vmul.f32 %v1159_v47, %v3176_v35  ;;  %v2144_v47 = vor.u32 %v2709_v42, %v2141_v44  ;;  %v2689_v44 = vld [vmem:[#allocation8 + $0x4] sm:$0xf] }
 0x136   :  { %v421_v39 = vsub.f32 %v3172_v23, %v420_v37  ;;  %v2714_v37 = vld [vmem:[#allocation8 + $0xcc] sm:$0xf]  ;;  %731 = vmatpush.bf16.msrb.mxu1 %v2164_v36  ;;  %v2696_v36 = vld [vmem:[#allocation8 + $0x34] sm:$0xf0] }
 0x137   :  { %v3181_v50 = vsub.f32 %v217_v34, %v1160_v48  ;;  %v2148_v48 = vor.u32 %v2712_v46, %v2147_v45  ;;  %v2061_v45 = vld [vmem:[#allocation8 + $0x10] sm:$0xf0] }
 0x138   :  { %v422_v40 = vmul.f32 %v421_v39, %v421_v39 }
 0x139   :  { %v1162_v51 = vmul.f32 %v3181_v50, %v3181_v50 }
 0x13a   :  { %423 = vadd.xlane.f32.xlu0 %v422_v40  ;;  %v2139_v40 = vld [vmem:[#allocation8 + $0xa0] sm:$0xf]  ;;  %732 = vmatpush.bf16.msrb.mxu1 %v2148_v48  ;;  %v2067_v48 = vld [vmem:[#allocation8 + $0x8] sm:$0xf] }
 0x13b   :  { %1163 = vadd.xlane.f32.xlu2 %v1162_v51  ;;  %v2140_v43 = vor.u32 %v2711_v41, %v2139_v40  ;;  %v2149_v51 = vld [vmem:[#allocation8 + $0xb8] sm:$0xf0]  ;;  %v2059_v41 = vld [vmem:[#allocation8] sm:$0xf] }
 0x13c   :  { %v2085_v40 = vld [vmem:[#allocation8 + $0x38] sm:$0xf0] }
 0x13d   :  { %706 = vmatpush.bf16.msra.mxu3 %v2140_v43  ;;  %v2691_v43 = vld [vmem:[#allocation8 + $0xc] sm:$0xf0] }
 0x13e   :  { %v2060_v46 = vor.u32 %v2691_v43, %v2059_v41  ;;  %v2729_v41 = vld [vmem:[#allocation10 + $0x40] sm:$0xff]  ;;  %v3202_v43 = vld [vmem:[#allocation13] sm:$0xff] }
 0x1ad   :  { %v424_v52 = vpop.xlane.xlu0 %423 }
 0x1ae   :  { %v425_v53 = vmul.f32 %v424_v52, %v3176_v35  ;;  %v2152_v52 = vor.u32 %v2710_v49, %v2149_v51  ;;  %v2692_v49 = vld [vmem:[#allocation8 + $0x14] sm:$0xf0]  ;;  %v2690_v51 = vld [vmem:[#allocation8 + $0xc] sm:$0xf] }
 0x1b0   :  { %v426_v54 = vadd.f32 1e-05, %v425_v53  ;;  %v2123_v53 = vld [vmem:[#allocation8 + $0x80] sm:$0xf] }
 0x1b2   :  { %2858 = vrsqrt.f32 %v426_v54  ;;  %vm433_vm2 = vweird.f32 %v426_v54 }
 0x1b8   :  { %v2859_v55 = vpop.eup %2858 }
 0x1b9   :  { %v428_v56 = vmul.f32 %v2859_v55, %v426_v54  ;;  %vm434_vm1 = vweird.f32 %v2859_v55  ;;  %v2707_v54 = vld [vmem:[#allocation8 + $0x8c] sm:$0xf0] }
 0x1ba   :  { %vm435_vm3 = vmor %vm433_vm2, %vm434_vm1 }
 0x1bb   :  { %v429_v57 = vmul.f32 %v2859_v55, %v428_v56  ;;  %v2124_v56 = vor.u32 %v2707_v54, %v2123_v53  ;;  %v2069_v53 = vld [vmem:[#allocation8 + $0x18] sm:$0xf0] }
 0x1bc   :  { %v2072_v54 = vor.u32 %v2690_v51, %v2069_v53  ;;  %v2745_v51 = vld [vmem:[#allocation10 + $0xc0] sm:$0xff] }
 0x1bd   :  { %v430_v58 = vmul.f32 0.5, %v429_v57  ;;  %v2125_v57 = vld [vmem:[#allocation8 + $0x90] sm:$0xf0]  ;;  %707 = vmatpush.bf16.msra.mxu3 %v2124_v56  ;;  %v2728_v56 = vld [vmem:[#allocation10 + $0x38] sm:$0xff] }
 0x1bf   :  { %v431_v59 = vsub.f32 1.5, %v430_v58  ;;  %v2131_v58 = vld [vmem:[#allocation8 + $0x88] sm:$0xf] }
 0x1c1   :  { %v432_v60 = vmul.f32 %v2859_v55, %v431_v59  ;;  %v2708_v59 = vld [vmem:[#allocation8 + $0x94] sm:$0xf0] }
 0x1c3   :  { %v436_v62 = vsel %vm435_vm3, %v2859_v55, %v432_v60  ;;  %v2705_v55 = vld [vmem:[#allocation8 + $0x84] sm:$0xf] }
 0x1c4   :  { %v437_v63 = vmul.f32 %v436_v62, %v421_v39  ;;  %v2168_v39 = vor.u32 %v2714_v37, %v2165_v38  ;;  %v2128_v60 = vor.u32 %v2705_v55, %v2125_v57  ;;  %v2706_v62 = vld [vmem:[#allocation8 + $0x8c] sm:$0xf]  ;;  %v2736_v57 = vld [vmem:[#allocation10 + $0x78] sm:$0xff] }
 0x1c6   :  { %v439_v1 = vmul.f32 %v438_v61, %v437_v63  ;;  %744 = vmatpush.bf16.msrb.mxu2 %v2168_v39  ;;  %v2132_v61 = vor.u32 %v2708_v59, %v2131_v58  ;;  %v2133_v63 = vld [vmem:[#allocation8 + $0x98] sm:$0xf0]  ;;  %v2694_v39 = vld [vmem:[#allocation8 + $0x2c] sm:$0xf] }
 0x1c7   :  { %v2088_v42 = vor.u32 %v2694_v39, %v2085_v40  ;;  %v2744_v59 = vld [vmem:[#allocation10 + $0xb8] sm:$0xff]  ;;  %v2747_v39 = vld [vmem:[#allocation10 + $0xd0] sm:$0xff] }
 0x1c8   :  { %v441_v2 = vadd.f32 %v440_v0, %v439_v1  ;;  %v2136_v0 = vor.u32 %v2706_v62, %v2133_v63  ;;  %733 = vmatpush.bf16.msrb.mxu1 %v2132_v61  ;;  %v2107_v1 = vld [vmem:[#allocation8 + $0x60] sm:$0xf]  ;;  %v2735_v61 = vld [vmem:[#allocation10 + $0x70] sm:$0xff] }
 0x1c9   :  { %v2743_v63 = vld [vmem:[#allocation10 + $0xb0] sm:$0xff] }
 0x1ca   :  { %v442_v3 = vpack.c.bf16 %v441_v2, %v441_v2  ;;  %745 = vmatpush.bf16.msrb.mxu2 %v2152_v52  ;;  %v2703_v2 = vld [vmem:[#allocation8 + $0x6c] sm:$0xf0]  ;;  %v2068_v52 = vor.u32 %v2692_v49, %v2067_v48  ;;  %v534_v49 = vperm.slane %v3202_v43, 4 }
 0x1cb   :  { %v2759_v40 = vld [vmem:[#allocation7 + $0x70] sm:$0xff] }
 0x1cc   :  { %500 = vmatmul.bf16.vlgmr.msra.gmra.mxu2 %v442_v3  ;;  %v2701_v3 = vld [vmem:[#allocation8 + $0x64] sm:$0xf] }
 0x1ce   :  { %746 = vmatpush.bf16.msrb.mxu2 %v2136_v0  ;;  %v2726_v0 = vld [vmem:[#allocation10 + $0x28] sm:$0xff] }
 0x1d2   :  { %747 = vmatpush.bf16.msrb.mxu2 %v2120_v13 }
 0x24f   :  { %v501_v5 = vpop.f32.mrf.mxu2 }
 0x250   :  { %v502_v6 = vadd.f32 %v501_v5, %v443_v4  ;;  %v2108_v4 = vor.u32 %v2703_v2, %v2107_v1  ;;  %v2109_v5 = vld [vmem:[#allocation8 + $0x70] sm:$0xf0] }
 0x251   :  { %v2112_v9 = vor.u32 %v2701_v3, %v2109_v5 }
 0x252   :  { %v3189_v7 = vadd.f32 %v502_v6, %v217_v34  ;;  %v2160_v34 = vor.u32 %v2713_v29, %v2157_v31  ;;  %v2115_v6 = vld [vmem:[#allocation8 + $0x68] sm:$0xf]  ;;  %708 = vmatpush.bf16.msra.mxu3 %v2108_v4  ;;  %v2075_v29 = vld [vmem:[#allocation8 + $0x20] sm:$0xf]  ;;  %v2693_v31 = vld [vmem:[#allocation8 + $0x24] sm:$0xf] }
 0x253   :  { %v2076_v32 = vor.u32 %v2695_v30, %v2075_v29  ;;  %v2080_v37 = vor.u32 %v2693_v31, %v2077_v33  ;;  %v2722_v29 = vld [vmem:[#allocation10 + $0x8] sm:$0xff]  ;;  %v2749_v30 = vld [vmem:[#allocation10 + $0xe0] sm:$0xff]  ;;  %v2731_v31 = vld [vmem:[#allocation10 + $0x50] sm:$0xff] }
 0x254   :  { %506 = vadd.xlane.f32.xlu1 %v3189_v7  ;;  %718 = vmatpush.bf16.msrb.mxu0 %v2160_v34  ;;  %v2083_v34 = vld [vmem:[#allocation8 + $0x28] sm:$0xf]  ;;  %v2721_v33 = vld [vmem:[#allocation10] sm:$0xff] }
 0x255   :  { %v2084_v38 = vor.u32 %v2696_v36, %v2083_v34  ;;  %v2748_v34 = vld [vmem:[#allocation10 + $0xd8] sm:$0xff] }
 0x256   :  { %709 = vmatpush.bf16.msra.mxu3 %v2092_v17  ;;  %v2734_v17 = vld [vmem:[#allocation10 + $0x68] sm:$0xff]  ;;  %v2760_v36 = vld [vmem:[#allocation7 + $0x78] sm:$0xff] }
 0x257   :  { %v503_v8 = vpop.f32.mrf.mxu2 }
 0x258   :  { %719 = vmatpush.bf16.msrb.mxu0 %v2144_v47  ;;  %v2704_v8 = vld [vmem:[#allocation8 + $0x74] sm:$0xf0]  ;;  %v2064_v47 = vor.u32 %v2689_v44, %v2061_v45  ;;  %v2746_v44 = vld [vmem:[#allocation10 + $0xc8] sm:$0xff] }
 0x259   :  { %v2116_v10 = vor.u32 %v2704_v8, %v2115_v6  ;;  %v526_v8 = vperm.slane %v3169_v20, 5  ;;  %v2758_v45 = vld [vmem:[#allocation7 + $0x68] sm:$0xff] }
 0x25a   :  { %710 = vmatpush.bf16.msra.mxu3 %v2076_v32  ;;  %v2739_v32 = vld [vmem:[#allocation10 + $0x90] sm:$0xff] }
 0x25b   :  { %734 = vmatpush.bf16.msrb.mxu1 %v2116_v10 }
 0x25c   :  { %720 = vmatpush.bf16.msrb.mxu0 %v2128_v60  ;;  %v2727_v60 = vld [vmem:[#allocation10 + $0x30] sm:$0xff] }
 0x25e   :  { %711 = vmatpush.bf16.msra.mxu3 %v2060_v46  ;;  %v1164_v46 = vpop.xlane.xlu2 %1163 }
 0x25f   :  { %v1165_v48 = vmul.f32 %v1164_v46, %v3176_v35 }
 0x260   :  { %721 = vmatpush.bf16.msrb.mxu0 %v2112_v9 }
 0x262   :  { %989 = vmatpush.bf16.msrb.mxu3 %v2728_v56  ;;  %v532_v56 = vperm.slane %v3202_v43, 0 }
 0x266   :  { %990 = vmatpush.bf16.msrb.mxu3 %v2727_v60 }
 0x26a   :  { %991 = vmatpush.bf16.msrb.mxu3 %v2726_v0 }
 0x26e   :  { %992 = vmatpush.bf16.msrb.mxu3 %v2725_v15 }
 0x2c7   :  { %v507_v22 = vpop.xlane.xlu1 %506 }
 0x2c8   :  { %v508_v24 = vmul.f32 %v507_v22, %v3176_v35  ;;  %v2096_v22 = vor.u32 %v2697_v16, %v2093_v18  ;;  %v2752_v16 = vld [vmem:[#allocation10 + $0xf8] sm:$0xff]  ;;  %v2742_v18 = vld [vmem:[#allocation10 + $0xa8] sm:$0xff] }
 0x2ca   :  { %v3194_v25 = vsub.f32 %v3189_v7, %v508_v24  ;;  %v2100_v24 = vor.u32 %v2700_v21, %v2099_v19  ;;  %722 = vmatpush.bf16.msrb.mxu0 %v2096_v22  ;;  %v2724_v19 = vld [vmem:[#allocation10 + $0x18] sm:$0xff]  ;;  %v2751_v21 = vld [vmem:[#allocation10 + $0xf0] sm:$0xff]  ;;  %v2741_v22 = vld [vmem:[#allocation10 + $0xa0] sm:$0xff] }
 0x2cb   :  { %993 = vmatpush.bf16.msrb.mxu3 %v2724_v19 }
 0x2cc   :  { %v510_v26 = vmul.f32 %v3194_v25, %v3194_v25  ;;  %735 = vmatpush.bf16.msrb.mxu1 %v2100_v24  ;;  %v2723_v24 = vld [vmem:[#allocation10 + $0x10] sm:$0xff] }
 0x2ce   :  { %511 = vadd.xlane.f32.xlu1 %v510_v26  ;;  %v2698_v26 = vld [vmem:[#allocation8 + $0x4c] sm:$0xf]  ;;  %723 = vmatpush.bf16.msrb.mxu0 %v2080_v37 }
 0x2cf   :  { %v2104_v28 = vor.u32 %v2698_v26, %v2101_v27  ;;  %v2750_v26 = vld [vmem:[#allocation10 + $0xe8] sm:$0xff]  ;;  %994 = vmatpush.bf16.msrb.mxu3 %v2723_v24  ;;  %v2732_v27 = vld [vmem:[#allocation10 + $0x58] sm:$0xff] }
 0x2d0   :  { %736 = vmatpush.bf16.msrb.mxu1 %v2084_v38  ;;  %v2730_v37 = vld [vmem:[#allocation10 + $0x48] sm:$0xff] }
 0x2d1   :  { %748 = vmatpush.bf16.msrb.mxu2 %v2104_v28  ;;  %v2740_v28 = vld [vmem:[#allocation10 + $0x98] sm:$0xff]  ;;  %v2738_v38 = vld [vmem:[#allocation10 + $0x88] sm:$0xff] }
 0x2d2   :  { %724 = vmatpush.bf16.msrb.mxu0 %v2064_v47  ;;  %v533_v47 = vperm.slane %v3202_v43, 2 }
 0x2d3   :  { %995 = vmatpush.bf16.msrb.mxu3 %v2722_v29 }
 0x2d4   :  { %737 = vmatpush.bf16.msrb.mxu1 %v2068_v52  ;;  %v2757_v52 = vld [vmem:[#allocation7 + $0x60] sm:$0xff]  ;;  %v541_v53 = vperm.slane %v533_v47, 0 }
 0x2d5   :  { %749 = vmatpush.bf16.msrb.mxu2 %v2088_v42  ;;  %v2737_v42 = vld [vmem:[#allocation10 + $0x80] sm:$0xff] }
 0x2d6   :  { %1002 = vmatpush.bf16.msra.mxu0 %v2736_v57 }
 0x2d7   :  { %996 = vmatpush.bf16.msrb.mxu3 %v2721_v33 }
 0x2d8   :  { %1015 = vmatpush.bf16.msra.mxu1 %v2744_v59  ;;  %v2756_v59 = vld [vmem:[#allocation7 + $0x58] sm:$0xff] }
 0x2d9   :  { %750 = vmatpush.bf16.msrb.mxu2 %v2072_v54  ;;  %v3207_v54 = vadd.f32 1e-05, %v1165_v48 }
 0x2da   :  { %1003 = vmatpush.bf16.msra.mxu0 %v2735_v61 }
 0x2db   :  { %vm1173_vm7 = vweird.f32 %v3207_v54 }
 0x2dc   :  { %1016 = vmatpush.bf16.msra.mxu1 %v2743_v63  ;;  %v2755_v63 = vld [vmem:[#allocation7 + $0x50] sm:$0xff] }
 0x2dd   :  { %1028 = vmatpush.bf16.msra.mxu2 %v2752_v16 }
 0x2de   :  { %1004 = vmatpush.bf16.msra.mxu0 %v2734_v17 }
 0x2e0   :  { %1017 = vmatpush.bf16.msra.mxu1 %v2742_v18 }
 0x2e1   :  { %1029 = vmatpush.bf16.msra.mxu2 %v2751_v21 }
 0x2e4   :  { %1018 = vmatpush.bf16.msra.mxu1 %v2741_v22 }
 0x2e5   :  { %1030 = vmatpush.bf16.msra.mxu2 %v2750_v26 }
 0x2e8   :  { %1019 = vmatpush.bf16.msra.mxu1 %v2740_v28 }
 0x2e9   :  { %1031 = vmatpush.bf16.msra.mxu2 %v2749_v30 }
 0x2ec   :  { %1020 = vmatpush.bf16.msra.mxu1 %v2739_v32 }
 0x2ed   :  { %1032 = vmatpush.bf16.msra.mxu2 %v2748_v34 }
 0x2f0   :  { %1021 = vmatpush.bf16.msra.mxu1 %v2738_v38 }
 0x2f1   :  { %1033 = vmatpush.bf16.msra.mxu2 %v2747_v39 }
 0x2f4   :  { %1022 = vmatpush.bf16.msra.mxu1 %v2737_v42 }
 0x2f5   :  { %1034 = vmatpush.bf16.msra.mxu2 %v2746_v44 }
 0x2f9   :  { %1035 = vmatpush.bf16.msra.mxu2 %v2745_v51 }
 0x341   :  { %v512_v55 = vpop.xlane.xlu1 %511 }
 0x342   :  { %v513_v58 = vmul.f32 %v512_v55, %v3176_v35  ;;  %v542_v55 = vperm.slane %v534_v49, 0 }
 0x344   :  { %v514_v62 = vadd.f32 1e-05, %v513_v58  ;;  %v535_v58 = vperm.slane %v3202_v43, 6 }
 0x346   :  { %2860 = vrsqrt.f32 %v514_v62  ;;  %vm521_vm5 = vweird.f32 %v514_v62 }
 0x347   :  { %2862 = vrsqrt.f32 %v3207_v54 }
 0x34c   :  { %v2861_v1 = vpop.eup %2860 }
 0x34d   :  { %v516_v2 = vmul.f32 %v2861_v1, %v514_v62  ;;  %vm522_vm4 = vweird.f32 %v2861_v1 }
 0x34e   :  { %vm523_vm6 = vmor %vm521_vm5, %vm522_vm4 }
 0x34f   :  { %v517_v3 = vmul.f32 %v2861_v1, %v516_v2 }
 0x351   :  { %v518_v4 = vmul.f32 0.5, %v517_v3  ;;  %v543_v3 = vperm.slane %v535_v58, 0 }
 0x353   :  { %v519_v5 = vsub.f32 1.5, %v518_v4 }
 0x355   :  { %v520_v6 = vmul.f32 %v2861_v1, %v519_v5 }
 0x357   :  { %v524_v9 = vsel %vm523_vm6, %v2861_v1, %v520_v6  ;;  %v540_v1 = vperm.slane %v532_v56, 0 }
 0x358   :  { %v525_v10 = vmul.f32 %v524_v9, %v3194_v25  ;;  %v2733_v25 = vld [vmem:[#allocation10 + $0x60] sm:$0xff] }
 0x359   :  { %1005 = vmatpush.bf16.msra.mxu0 %v2733_v25  ;;  %v2753_v25 = vld [vmem:[#allocation7 + $0x40] sm:$0xff] }
 0x35a   :  { %v527_v12 = vmul.f32 %v526_v8, %v525_v10  ;;  %v2754_v8 = vld [vmem:[#allocation7 + $0x48] sm:$0xff] }
 0x35c   :  { %v529_v13 = vadd.f32 %v528_v11, %v527_v12  ;;  %v3212_v12 = vpop.eup %2862 }
 0x35d   :  { %1006 = vmatpush.bf16.msra.mxu0 %v2732_v27  ;;  %v1168_v22 = vmul.f32 %v3212_v12, %v3207_v54  ;;  %vm1174_vm8 = vweird.f32 %v3212_v12  ;;  %v3221_v54 = vld [vmem:[#allocation11 + $0x8] sm:$0x7f] }
 0x35e   :  { %v530_v14 = vpack.c.bf16 %v529_v13, %v529_v13  ;;  %vm1175_vm9 = vmor %vm1173_vm7, %vm1174_vm8 }
 0x35f   :  { %v1169_v32 = vmul.f32 %v3212_v12, %v1168_v22 }
 0x360   :  { %712 = vmatmul.bf16.vlgmr.msra.gmra.mxu3 %v530_v14  ;;  %725 = vmatmul.bf16.vlgmr.msrb.gmra.mxu0 %v530_v14 }
 0x361   :  { %738 = vmatmul.bf16.vlgmr.msrb.gmra.mxu1 %v530_v14  ;;  %751 = vmatmul.bf16.vlgmr.msrb.gmra.mxu2 %v530_v14 }
 0x362   :  { %1007 = vmatpush.bf16.msra.mxu0 %v2731_v31  ;;  %1232 = vmatpush.bf16.msra.mxu3 %v2760_v36 }
 0x366   :  { %1008 = vmatpush.bf16.msra.mxu0 %v2730_v37  ;;  %1233 = vmatpush.bf16.msra.mxu3 %v2759_v40  ;;  %v1170_v40 = vmul.f32 0.5, %v1169_v32  ;;  %v2467_v32 = vld [vmem:[#allocation8 + $0x1e8] sm:$0xf] }
 0x368   :  { %v1171_v48 = vsub.f32 1.5, %v1170_v40 }
 0x36a   :  { %1009 = vmatpush.bf16.msra.mxu0 %v2729_v41  ;;  %1234 = vmatpush.bf16.msra.mxu3 %v2758_v45  ;;  %v1172_v58 = vmul.f32 %v3212_v12, %v1171_v48  ;;  %v2445_v48 = vld [vmem:[#allocation8 + $0x1d0] sm:$0xf0] }
 0x36e   :  { %1235 = vmatpush.bf16.msra.mxu3 %v2757_v52 }
 0x372   :  { %1236 = vmatpush.bf16.msra.mxu3 %v2756_v59 }
 0x376   :  { %1237 = vmatpush.bf16.msra.mxu3 %v2755_v63 }
 0x37a   :  { %1238 = vmatpush.bf16.msra.mxu3 %v2754_v8 }
 0x37e   :  { %1239 = vmatpush.bf16.msra.mxu3 %v2753_v25  ;;  %v1183_v25 = vperm.slane %v3221_v54, 2 }
 0x3dd   :  { %v726_v57 = vpop.f32.mrf.mxu0 }
 0x3de   :  { %v727_v60 = vadd.f32 %v726_v57, %v541_v53  ;;  %v739_v61 = vpop.f32.mrf.mxu1 }
 0x3df   :  { %v740_v62 = vadd.f32 %v739_v61, %v542_v55 }
 0x3e0   :  { %v757_v0 = vmul.f32 0.044715, %v727_v60  ;;  %v777_v42 = vmul.f32 0.5, %v727_v60 }
 0x3e1   :  { %v758_v2 = vmul.f32 0.044715, %v740_v62  ;;  %v778_v45 = vmul.f32 0.5, %v740_v62 }
 0x3e2   :  { %v761_v4 = vmul.f32 %v757_v0, %v727_v60  ;;  %v1176_v0 = vsel %vm1175_vm9, %v3212_v12, %v1172_v58  ;;  %v796_v12 = vperm.slane %v3169_v20, 7  ;;  %v2459_v20 = vld [vmem:[#allocation8 + $0x1e0] sm:$0xf] }
 0x3e3   :  { %v762_v5 = vmul.f32 %v758_v2, %v740_v62  ;;  %v713_v6 = vpop.f32.mrf.mxu3  ;;  %v1177_v2 = vmul.f32 %v1176_v0, %v3181_v50  ;;  %v2427_v58 = vld [vmem:[#allocation8 + $0x1a0] sm:$0xf]  ;;  %v2784_v0 = vld [vmem:[#allocation8 + $0x1b4] sm:$0xf0] }
 0x3e4   :  { %v765_v9 = vmul.f32 %v761_v4, %v727_v60  ;;  %v714_v10 = vadd.f32 %v713_v6, %v540_v1  ;;  %v752_v11 = vpop.f32.mrf.mxu2 }
 0x3e5   :  { %v766_v13 = vmul.f32 %v762_v5, %v740_v62  ;;  %v753_v14 = vadd.f32 %v752_v11, %v543_v3  ;;  %v728_v15 = vpop.f32.mrf.mxu0  ;;  %v1178_v3 = vperm.slane %v3221_v54, 0  ;;  %v1180_v5 = vperm.slane %v3221_v54, 1 }
 0x3e6   :  { %v756_v16 = vmul.f32 0.044715, %v714_v10  ;;  %v741_v17 = vpop.f32.mrf.mxu1  ;;  %v769_v18 = vadd.f32 %v765_v9, %v727_v60  ;;  %v776_v56 = vmul.f32 0.5, %v714_v10 }
 0x3e7   :  { %v759_v19 = vmul.f32 0.044715, %v753_v14  ;;  %v770_v21 = vadd.f32 %v766_v13, %v740_v62  ;;  %v779_v59 = vmul.f32 0.5, %v753_v14  ;;  %v1179_v4 = vmul.f32 %v1178_v3, %v1177_v2  ;;  %v2782_v3 = vld [vmem:[#allocation8 + $0x1ac] sm:$0xf] }
 0x3e8   :  { %v760_v24 = vmul.f32 %v756_v16, %v714_v10  ;;  %v773_v26 = vmul.f32 0.7978846, %v769_v18 }
 0x3e9   :  { %v763_v27 = vmul.f32 %v759_v19, %v753_v14  ;;  %v774_v28 = vmul.f32 0.7978846, %v770_v21  ;;  %v1181_v6 = vadd.f32 %v1180_v5, %v1179_v4  ;;  %v2437_v4 = vld [vmem:[#allocation8 + $0x1b8] sm:$0xf0] }
 0x3ea   :  { %2864 = vtanh.f32 %v773_v26  ;;  %v764_v29 = vmul.f32 %v760_v24, %v714_v10  ;;  %v2440_v5 = vor.u32 %v2782_v3, %v2437_v4  ;;  %v2355_v3 = vld [vmem:[#allocation8 + $0x108] sm:$0xf]  ;;  %v2764_v4 = vld [vmem:[#allocation8 + $0x114] sm:$0xf0] }
 0x3eb   :  { %v767_v30 = vmul.f32 %v763_v27, %v753_v14  ;;  %v715_v31 = vpop.f32.mrf.mxu3  ;;  %2866 = vtanh.f32 %v774_v28  ;;  %v1182_v8 = vpack.c.bf16 %v1181_v6, %v1181_v6  ;;  %v2791_v28 = vld [vmem:[#allocation8 + $0x1ec] sm:$0xf0]  ;;  %v2411_v6 = vld [vmem:[#allocation8 + $0x180] sm:$0xf] }
 0x3ec   :  { %v754_v33 = vpop.f32.mrf.mxu2  ;;  %v768_v34 = vadd.f32 %v764_v29, %v714_v10  ;;  %v2789_v29 = vld [vmem:[#allocation8 + $0x1e4] sm:$0xf]  ;;  %v2461_v31 = vld [vmem:[#allocation8 + $0x1f0] sm:$0xf0] }
 0x3ed   :  { %v771_v36 = vadd.f32 %v767_v30, %v753_v14  ;;  %v2460_v30 = vor.u32 %v2791_v28, %v2459_v20  ;;  %v2792_v33 = vld [vmem:[#allocation8 + $0x1f4] sm:$0xf0] }
 0x3ee   :  { %v772_v37 = vmul.f32 0.7978846, %v768_v34  ;;  %v2464_v34 = vor.u32 %v2789_v29, %v2461_v31  ;;  %v2776_v20 = vld [vmem:[#allocation8 + $0x174] sm:$0xf0]  ;;  %v2405_v31 = vld [vmem:[#allocation8 + $0x178] sm:$0xf0] }
 0x3ef   :  { %v775_v38 = vmul.f32 0.7978846, %v771_v36  ;;  %v2468_v36 = vor.u32 %v2792_v33, %v2467_v32  ;;  %1443 = vmatpush.bf16.msrb.mxu0 %v2460_v30  ;;  %v2774_v30 = vld [vmem:[#allocation8 + $0x16c] sm:$0xf]  ;;  %v2379_v33 = vld [vmem:[#allocation8 + $0x140] sm:$0xf] }
 0x3f0   :  { %v2865_v39 = vpop.eup %2864  ;;  %2868 = vtanh.f32 %v772_v37  ;;  %v2790_v37 = vld [vmem:[#allocation8 + $0x1ec] sm:$0xf]  ;;  %1456 = vmatpush.bf16.msrb.mxu1 %v2464_v34  ;;  %v2408_v32 = vor.u32 %v2774_v30, %v2405_v31  ;;  %v2771_v34 = vld [vmem:[#allocation8 + $0x14c] sm:$0xf0]  ;;  %v1268_v30 = vperm.slane %v3221_v54, 4 }
 0x3f1   :  { %v2867_v41 = vpop.eup %2866  ;;  %v785_v44 = vadd.f32 1.0, %v2865_v39  ;;  %2870 = vtanh.f32 %v775_v38  ;;  %v2469_v38 = vld [vmem:[#allocation8 + $0x1f8] sm:$0xf0]  ;;  %1469 = vmatpush.bf16.msrb.mxu2 %v2468_v36  ;;  %v2769_v36 = vld [vmem:[#allocation8 + $0x144] sm:$0xf] }
 0x3f2   :  { %v786_v46 = vadd.f32 1.0, %v2867_v41  ;;  %v2472_v39 = vor.u32 %v2790_v37, %v2469_v38  ;;  %v2380_v37 = vor.u32 %v2771_v34, %v2379_v33  ;;  %v2381_v38 = vld [vmem:[#allocation8 + $0x150] sm:$0xf0]  ;;  %v2816_v34 = vld [vmem:[#allocation10 + $0x1b8] sm:$0xff] }
 0x3f3   :  { %v789_v47 = vmul.f32 %v785_v44, %v777_v42  ;;  %v2443_v44 = vld [vmem:[#allocation8 + $0x1c0] sm:$0xf] }
 0x3f4   :  { %v790_v49 = vmul.f32 %v786_v46, %v778_v45  ;;  %v2787_v45 = vld [vmem:[#allocation8 + $0x1cc] sm:$0xf0]  ;;  %v2785_v46 = vld [vmem:[#allocation8 + $0x1c4] sm:$0xf] }
 0x3f5   :  { %v793_v51 = vpack.c.bf16 %v789_v47, %v789_v47  ;;  %v2444_v47 = vor.u32 %v2787_v45, %v2443_v44  ;;  %v2770_v44 = vld [vmem:[#allocation8 + $0x14c] sm:$0xf]  ;;  %v2389_v45 = vld [vmem:[#allocation8 + $0x158] sm:$0xf0] }
 0x3f6   :  { %v2869_v52 = vpop.eup %2868  ;;  %v794_v53 = vpack.c.bf16 %v790_v49, %v790_v49  ;;  %v2451_v49 = vld [vmem:[#allocation8 + $0x1c8] sm:$0xf] }
 0x3f7   :  { %v2871_v55 = vpop.eup %2870  ;;  %1010 = vmatmul.bf16.vlgmr.msra.gmra.mxu0 %v793_v51  ;;  %v784_v57 = vadd.f32 1.0, %v2869_v52  ;;  %v2788_v51 = vld [vmem:[#allocation8 + $0x1d4] sm:$0xf0]  ;;  %v2448_v52 = vor.u32 %v2785_v46, %v2445_v48  ;;  %v2392_v46 = vor.u32 %v2770_v44, %v2389_v45  ;;  %v2767_v48 = vld [vmem:[#allocation8 + $0x12c] sm:$0xf0]  ;;  %v2822_v44 = vld [vmem:[#allocation10 + $0x1e8] sm:$0xff] }
 0x3f8   :  { %1023 = vmatmul.bf16.vlgmr.msra.gmra.mxu1 %v794_v53  ;;  %v787_v60 = vadd.f32 1.0, %v2871_v55  ;;  %v2452_v53 = vor.u32 %v2788_v51, %v2451_v49  ;;  %v2786_v55 = vld [vmem:[#allocation8 + $0x1cc] sm:$0xf]  ;;  %1444 = vmatpush.bf16.msrb.mxu0 %v2444_v47  ;;  %v2363_v47 = vld [vmem:[#allocation8 + $0x120] sm:$0xf] }
 0x3f9   :  { %v788_v61 = vmul.f32 %v784_v57, %v776_v56  ;;  %v2453_v56 = vld [vmem:[#allocation8 + $0x1d8] sm:$0xf0]  ;;  %1457 = vmatpush.bf16.msrb.mxu1 %v2448_v52  ;;  %v2765_v49 = vld [vmem:[#allocation8 + $0x124] sm:$0xf]  ;;  %v2364_v51 = vor.u32 %v2767_v48, %v2363_v47  ;;  %v2365_v52 = vld [vmem:[#allocation8 + $0x130] sm:$0xf0] }
 0x3fa   :  { %v791_v62 = vmul.f32 %v787_v60, %v779_v59  ;;  %v2456_v57 = vor.u32 %v2786_v55, %v2453_v56  ;;  %1470 = vmatpush.bf16.msrb.mxu2 %v2452_v53  ;;  %v2783_v59 = vld [vmem:[#allocation8 + $0x1ac] sm:$0xf0]  ;;  %v2781_v60 = vld [vmem:[#allocation8 + $0x1a4] sm:$0xf]  ;;  %v2371_v53 = vld [vmem:[#allocation8 + $0x128] sm:$0xf]  ;;  %v2368_v56 = vor.u32 %v2765_v49, %v2365_v52 }
 0x3fb   :  { %v792_v63 = vpack.c.bf16 %v788_v61, %v788_v61  ;;  %v2428_v61 = vor.u32 %v2783_v59, %v2427_v58  ;;  %v2768_v55 = vld [vmem:[#allocation8 + $0x134] sm:$0xf0]  ;;  %v2766_v58 = vld [vmem:[#allocation8 + $0x12c] sm:$0xf]  ;;  %v2373_v59 = vld [vmem:[#allocation8 + $0x138] sm:$0xf0] }
 0x3fc   :  { %v795_v1 = vpack.c.bf16 %v791_v62, %v791_v62  ;;  %v2429_v62 = vld [vmem:[#allocation8 + $0x1b0] sm:$0xf0]  ;;  %v2801_v45 = vld [vmem:[#allocation10 + $0x140] sm:$0xff]  ;;  %v2832_v47 = vld [vmem:[#allocation7 + $0xb8] sm:$0xff] }
 0x3fd   :  { %997 = vmatmul.bf16.vlgmr.msrb.gmra.mxu3 %v792_v63  ;;  %v2435_v63 = vld [vmem:[#allocation8 + $0x1a8] sm:$0xf]  ;;  %1445 = vmatpush.bf16.msrb.mxu0 %v2428_v61  ;;  %v2376_v61 = vor.u32 %v2766_v58, %v2373_v59  ;;  %v2813_v48 = vld [vmem:[#allocation10 + $0x1a0] sm:$0xff]  ;;  %v2831_v52 = vld [vmem:[#allocation7 + $0xb0] sm:$0xff] }
 0x3fe   :  { %1036 = vmatmul.bf16.vlgmr.msra.gmra.mxu2 %v795_v1  ;;  %1482 = vmatpush.bf16.msrb.mxu3 %v2472_v39  ;;  %v2432_v1 = vor.u32 %v2781_v60, %v2429_v62  ;;  %v2436_v2 = vor.u32 %v2784_v0, %v2435_v63  ;;  %v2387_v39 = vld [vmem:[#allocation8 + $0x148] sm:$0xf]  ;;  %v2347_v60 = vld [vmem:[#allocation8 + $0x100] sm:$0xf]  ;;  %v2763_v62 = vld [vmem:[#allocation8 + $0x10c] sm:$0xf0] }
 0x3ff   :  { %v2761_v63 = vld [vmem:[#allocation8 + $0x104] sm:$0xf]  ;;  %v2349_v0 = vld [vmem:[#allocation8 + $0x110] sm:$0xf0] }
 0x400   :  { %1458 = vmatpush.bf16.msrb.mxu1 %v2432_v1  ;;  %1471 = vmatpush.bf16.msrb.mxu2 %v2436_v2  ;;  %v2348_v1 = vor.u32 %v2763_v62, %v2347_v60  ;;  %v2352_v2 = vor.u32 %v2761_v63, %v2349_v0  ;;  %v2821_v49 = vld [vmem:[#allocation10 + $0x1e0] sm:$0xff]  ;;  %v2811_v58 = vld [vmem:[#allocation10 + $0x190] sm:$0xff]  ;;  %v2810_v62 = vld [vmem:[#allocation10 + $0x188] sm:$0xff]  ;;  %v1271_v0 = vperm.slane %v3202_v43, 1 }
 0x401   :  { %v2819_v59 = vld [vmem:[#allocation10 + $0x1d0] sm:$0xff]  ;;  %v2793_v60 = vld [vmem:[#allocation10 + $0x100] sm:$0xff]  ;;  %v2818_v63 = vld [vmem:[#allocation10 + $0x1c8] sm:$0xff] }
 0x402   :  { %1483 = vmatpush.bf16.msrb.mxu3 %v2456_v57  ;;  %v2372_v57 = vor.u32 %v2768_v55, %v2371_v53  ;;  %v2812_v53 = vld [vmem:[#allocation10 + $0x198] sm:$0xff] }
 0x403   :  { %v2820_v55 = vld [vmem:[#allocation10 + $0x1d8] sm:$0xff] }
 0x406   :  { %1484 = vmatpush.bf16.msrb.mxu3 %v2440_v5  ;;  %v2762_v5 = vld [vmem:[#allocation8 + $0x10c] sm:$0xf] }
 0x40d   :  { %1240 = vmatmul.bf16.vlgmr.msra.gmra.mxu3 %v1182_v8  ;;  %v2779_v8 = vld [vmem:[#allocation8 + $0x18c] sm:$0xf0] }
 0x474   :  { %v1011_v9 = vpop.f32.mrf.mxu0 }
 0x475   :  { %v1024_v10 = vpop.f32.mrf.mxu1 }
 0x47c   :  { %v1013_v11 = vpop.f32.mrf.mxu0 }
 0x47d   :  { %v1026_v13 = vpop.f32.mrf.mxu1  ;;  %v2413_v11 = vld [vmem:[#allocation8 + $0x190] sm:$0xf0] }
 0x47e   :  { %v2419_v13 = vld [vmem:[#allocation8 + $0x188] sm:$0xf] }
 0x480   :  { %v998_v14 = vpop.f32.mrf.mxu3 }
 0x481   :  { %v999_v15 = vadd.f32 %v998_v14, %v796_v12  ;;  %v1037_v16 = vpop.f32.mrf.mxu2  ;;  %v2780_v12 = vld [vmem:[#allocation8 + $0x194] sm:$0xf0] }
 0x483   :  { %v1012_v17 = vadd.f32 %v1011_v9, %v999_v15  ;;  %v2777_v9 = vld [vmem:[#allocation8 + $0x184] sm:$0xf]  ;;  %v2420_v15 = vor.u32 %v2780_v12, %v2419_v13  ;;  %v2800_v12 = vld [vmem:[#allocation10 + $0x138] sm:$0xff] }
 0x484   :  { %v2416_v14 = vor.u32 %v2777_v9, %v2413_v11  ;;  %v2808_v11 = vld [vmem:[#allocation10 + $0x178] sm:$0xff] }
 0x485   :  { %v1025_v18 = vadd.f32 %v1024_v10, %v1012_v17  ;;  %v2412_v10 = vor.u32 %v2779_v8, %v2411_v6  ;;  %v2421_v17 = vld [vmem:[#allocation8 + $0x198] sm:$0xf0]  ;;  %1472 = vmatpush.bf16.msrb.mxu2 %v2420_v15  ;;  %v2356_v6 = vor.u32 %v2764_v4, %v2355_v3  ;;  %v2809_v3 = vld [vmem:[#allocation10 + $0x180] sm:$0xff] }
 0x486   :  { %1459 = vmatpush.bf16.msrb.mxu1 %v2416_v14  ;;  %v2357_v8 = vld [vmem:[#allocation8 + $0x118] sm:$0xf0]  ;;  %v2807_v14 = vld [vmem:[#allocation10 + $0x170] sm:$0xff]  ;;  %v2817_v4 = vld [vmem:[#allocation10 + $0x1c0] sm:$0xff] }
 0x487   :  { %v3227_v50 = vadd.f32 %v1037_v16, %v1025_v18  ;;  %v2778_v16 = vld [vmem:[#allocation8 + $0x18c] sm:$0xf]  ;;  %1446 = vmatpush.bf16.msrb.mxu0 %v2412_v10  ;;  %v2360_v9 = vor.u32 %v2762_v5, %v2357_v8  ;;  %v2827_v5 = vld [vmem:[#allocation7 + $0x90] sm:$0xff] }
 0x488   :  { %v1000_v19 = vpop.f32.mrf.mxu3  ;;  %v2424_v18 = vor.u32 %v2778_v16, %v2421_v17  ;;  %v2799_v16 = vld [vmem:[#allocation10 + $0x130] sm:$0xff]  ;;  %v2806_v17 = vld [vmem:[#allocation10 + $0x168] sm:$0xff] }
 0x489   :  { %v1039_v21 = vpop.f32.mrf.mxu2  ;;  %v2395_v19 = vld [vmem:[#allocation8 + $0x160] sm:$0xf] }
 0x48a   :  { %v2775_v21 = vld [vmem:[#allocation8 + $0x16c] sm:$0xf0]  ;;  %1485 = vmatpush.bf16.msrb.mxu3 %v2424_v18  ;;  %v2805_v18 = vld [vmem:[#allocation10 + $0x160] sm:$0xff] }
 0x48e   :  { %1486 = vmatpush.bf16.msrb.mxu3 %v2408_v32 }
 0x490   :  { %v1241_v22 = vpop.f32.mrf.mxu3 }
 0x491   :  { %v1242_v24 = vadd.f32 %v1241_v22, %v1183_v25  ;;  %v2773_v25 = vld [vmem:[#allocation8 + $0x164] sm:$0xf]  ;;  %v2396_v22 = vor.u32 %v2775_v21, %v2395_v19 }
 0x492   :  { %1487 = vmatpush.bf16.msrb.mxu3 %v2392_v46  ;;  %v2796_v46 = vld [vmem:[#allocation10 + $0x118] sm:$0xff] }
 0x493   :  { %v3231_v26 = vadd.f32 %v1242_v24, %v3172_v23  ;;  %v2397_v24 = vld [vmem:[#allocation8 + $0x170] sm:$0xf0]  ;;  %1447 = vmatpush.bf16.msrb.mxu0 %v2396_v22  ;;  %v2804_v22 = vld [vmem:[#allocation10 + $0x158] sm:$0xff] }
 0x494   :  { %v2400_v28 = vor.u32 %v2773_v25, %v2397_v24 }
 0x495   :  { %1246 = vadd.xlane.f32.xlu0 %v3231_v26 }
 0x496   :  { %1460 = vmatpush.bf16.msrb.mxu1 %v2400_v28  ;;  %1488 = vmatpush.bf16.msrb.mxu3 %v2376_v61  ;;  %v2829_v61 = vld [vmem:[#allocation7 + $0xa0] sm:$0xff] }
 0x497   :  { %1448 = vmatpush.bf16.msrb.mxu0 %v2380_v37  ;;  %v2803_v37 = vld [vmem:[#allocation10 + $0x150] sm:$0xff] }
 0x498   :  { %v1243_v27 = vpop.f32.mrf.mxu3 }
 0x499   :  { %v2403_v27 = vld [vmem:[#allocation8 + $0x168] sm:$0xf] }
 0x49a   :  { %v2404_v29 = vor.u32 %v2776_v20, %v2403_v27  ;;  %1489 = vmatpush.bf16.msrb.mxu3 %v2360_v9  ;;  %v1266_v20 = vperm.slane %v3221_v54, 3 }
 0x49b   :  { %1449 = vmatpush.bf16.msrb.mxu0 %v2364_v51  ;;  %v2795_v51 = vld [vmem:[#allocation10 + $0x110] sm:$0xff] }
 0x49c   :  { %1473 = vmatpush.bf16.msrb.mxu2 %v2404_v29 }
 0x49f   :  { %1450 = vmatpush.bf16.msrb.mxu0 %v2348_v1  ;;  %v1272_v1 = vperm.slane %v3202_v43, 3 }
 0x4a1   :  { %v1280_v8 = vperm.slane %v1272_v1, 1 }
 0x4a3   :  { %1728 = vmatpush.bf16.msra.mxu0 %v2800_v12 }
 0x4a7   :  { %1729 = vmatpush.bf16.msra.mxu0 %v2799_v16 }
 0x508   :  { %v1247_v23 = vpop.xlane.xlu0 %1246 }
 0x509   :  { %v1248_v40 = vmul.f32 %v1247_v23, %v3176_v35  ;;  %v2772_v23 = vld [vmem:[#allocation8 + $0x154] sm:$0xf0] }
 0x50b   :  { %v3236_v41 = vsub.f32 %v3231_v26, %v1248_v40  ;;  %v2384_v40 = vor.u32 %v2769_v36, %v2381_v38  ;;  %v2824_v36 = vld [vmem:[#allocation10 + $0x1f8] sm:$0xff]  ;;  %v2798_v38 = vld [vmem:[#allocation10 + $0x128] sm:$0xff] }
 0x50c   :  { %1767 = vmatpush.bf16.msra.mxu3 %v2824_v36  ;;  %1730 = vmatpush.bf16.msra.mxu0 %v2798_v38  ;;  %v2840_v38 = vld [vmem:[#allocation7 + $0xf8] sm:$0xff] }
 0x50d   :  { %v1250_v42 = vmul.f32 %v3236_v41, %v3236_v41  ;;  %1461 = vmatpush.bf16.msrb.mxu1 %v2384_v40  ;;  %v2797_v40 = vld [vmem:[#allocation10 + $0x120] sm:$0xff] }
 0x50f   :  { %1251 = vadd.xlane.f32.xlu1 %v1250_v42  ;;  %v2388_v42 = vor.u32 %v2772_v23, %v2387_v39  ;;  %v2815_v39 = vld [vmem:[#allocation10 + $0x1b0] sm:$0xff] }
 0x510   :  { %v2823_v23 = vld [vmem:[#allocation10 + $0x1f0] sm:$0xff]  ;;  %1731 = vmatpush.bf16.msra.mxu0 %v2797_v40 }
 0x511   :  { %1474 = vmatpush.bf16.msrb.mxu2 %v2388_v42  ;;  %1462 = vmatpush.bf16.msrb.mxu1 %v2368_v56  ;;  %v2814_v42 = vld [vmem:[#allocation10 + $0x1a8] sm:$0xff] }
 0x512   :  { %1768 = vmatpush.bf16.msra.mxu3 %v2823_v23  ;;  %v2794_v56 = vld [vmem:[#allocation10 + $0x108] sm:$0xff] }
 0x514   :  { %1732 = vmatpush.bf16.msra.mxu0 %v2796_v46 }
 0x515   :  { %1475 = vmatpush.bf16.msrb.mxu2 %v2372_v57  ;;  %1463 = vmatpush.bf16.msrb.mxu1 %v2352_v2  ;;  %v2830_v57 = vld [vmem:[#allocation7 + $0xa8] sm:$0xff]  ;;  %v2828_v2 = vld [vmem:[#allocation7 + $0x98] sm:$0xff] }
 0x516   :  { %1769 = vmatpush.bf16.msra.mxu3 %v2822_v44 }
 0x518   :  { %1733 = vmatpush.bf16.msra.mxu0 %v2795_v51 }
 0x519   :  { %1476 = vmatpush.bf16.msrb.mxu2 %v2356_v6  ;;  %1741 = vmatpush.bf16.msra.mxu1 %v2808_v11  ;;  %v1279_v6 = vperm.slane %v1271_v0, 1  ;;  %v1273_v11 = vperm.slane %v3202_v43, 5 }
 0x51a   :  { %1770 = vmatpush.bf16.msra.mxu3 %v2821_v49 }
 0x51c   :  { %1734 = vmatpush.bf16.msra.mxu0 %v2794_v56 }
 0x51d   :  { %1742 = vmatpush.bf16.msra.mxu1 %v2807_v14  ;;  %1754 = vmatpush.bf16.msra.mxu2 %v2816_v34 }
 0x51e   :  { %1771 = vmatpush.bf16.msra.mxu3 %v2820_v55 }
 0x520   :  { %1735 = vmatpush.bf16.msra.mxu0 %v2793_v60 }
 0x521   :  { %1743 = vmatpush.bf16.msra.mxu1 %v2806_v17  ;;  %1755 = vmatpush.bf16.msra.mxu2 %v2815_v39 }
 0x522   :  { %1772 = vmatpush.bf16.msra.mxu3 %v2819_v59 }
 0x525   :  { %1744 = vmatpush.bf16.msra.mxu1 %v2805_v18  ;;  %1756 = vmatpush.bf16.msra.mxu2 %v2814_v42  ;;  %v1281_v18 = vperm.slane %v1273_v11, 1 }
 0x526   :  { %1773 = vmatpush.bf16.msra.mxu3 %v2818_v63 }
 0x529   :  { %1745 = vmatpush.bf16.msra.mxu1 %v2804_v22  ;;  %1757 = vmatpush.bf16.msra.mxu2 %v2813_v48  ;;  %v2838_v48 = vld [vmem:[#allocation7 + $0xe8] sm:$0xff] }
 0x52a   :  { %1774 = vmatpush.bf16.msra.mxu3 %v2817_v4 }
 0x52d   :  { %1746 = vmatpush.bf16.msra.mxu1 %v2803_v37  ;;  %1758 = vmatpush.bf16.msra.mxu2 %v2812_v53 }
 0x531   :  { %1759 = vmatpush.bf16.msra.mxu2 %v2811_v58 }
 0x535   :  { %1760 = vmatpush.bf16.msra.mxu2 %v2810_v62 }
 0x539   :  { %1761 = vmatpush.bf16.msra.mxu2 %v2809_v3 }
 0x582   :  { %v1252_v10 = vpop.xlane.xlu1 %1251 }
 0x583   :  { %v1253_v13 = vmul.f32 %v1252_v10, %v3176_v35 }
 0x585   :  { %v1254_v15 = vadd.f32 1e-05, %v1253_v13  ;;  %v1274_v13 = vperm.slane %v3202_v43, 7 }
 0x587   :  { %2872 = vrsqrt.f32 %v1254_v15  ;;  %vm1261_vm11 = vweird.f32 %v1254_v15 }
 0x58d   :  { %v2873_v19 = vpop.eup %2872 }
 0x58e   :  { %v1256_v21 = vmul.f32 %v2873_v19, %v1254_v15  ;;  %vm1262_vm10 = vweird.f32 %v2873_v19  ;;  %v2826_v15 = vld [vmem:[#allocation7 + $0x88] sm:$0xff] }
 0x58f   :  { %vm1263_vm12 = vmor %vm1261_vm11, %vm1262_vm10 }
 0x590   :  { %v1257_v25 = vmul.f32 %v2873_v19, %v1256_v21  ;;  %v2825_v21 = vld [vmem:[#allocation7 + $0x80] sm:$0xff] }
 0x592   :  { %v1258_v24 = vmul.f32 0.5, %v1257_v25 }
 0x594   :  { %v1259_v27 = vsub.f32 1.5, %v1258_v24 }
 0x596   :  { %v1260_v35 = vmul.f32 %v2873_v19, %v1259_v27 }
 0x598   :  { %v1264_v28 = vsel %vm1263_vm12, %v2873_v19, %v1260_v35  ;;  %v1282_v19 = vperm.slane %v1274_v13, 1  ;;  %v2837_v13 = vld [vmem:[#allocation7 + $0xe0] sm:$0xff] }
 0x599   :  { %v1265_v29 = vmul.f32 %v1264_v28, %v3236_v41  ;;  %v2802_v41 = vld [vmem:[#allocation10 + $0x148] sm:$0xff] }
 0x59a   :  { %1747 = vmatpush.bf16.msra.mxu1 %v2802_v41  ;;  %v2839_v41 = vld [vmem:[#allocation7 + $0xf0] sm:$0xff] }
 0x59b   :  { %v1267_v31 = vmul.f32 %v1266_v20, %v1265_v29 }
 0x59d   :  { %v1269_v32 = vadd.f32 %v1268_v30, %v1267_v31 }
 0x59e   :  { %1748 = vmatpush.bf16.msra.mxu1 %v2801_v45 }
 0x59f   :  { %v1270_v33 = vpack.c.bf16 %v1269_v32, %v1269_v32 }
 0x5a1   :  { %1451 = vmatmul.bf16.vlgmr.msrb.gmra.mxu0 %v1270_v33  ;;  %1464 = vmatmul.bf16.vlgmr.msrb.gmra.mxu1 %v1270_v33 }
 0x5a2   :  { %1477 = vmatmul.bf16.vlgmr.msrb.gmra.mxu2 %v1270_v33  ;;  %1490 = vmatmul.bf16.vlgmr.msrb.gmra.mxu3 %v1270_v33 }
 0x5a3   :  { %1925 = vmatpush.bf16.msrb.mxu1 %v2832_v47  ;;  %1864 = vmatpush.bf16.msrb.mxu0 %v2840_v38 }
 0x5a7   :  { %1926 = vmatpush.bf16.msrb.mxu1 %v2831_v52  ;;  %1865 = vmatpush.bf16.msrb.mxu0 %v2839_v41 }
 0x5ab   :  { %1927 = vmatpush.bf16.msrb.mxu1 %v2830_v57  ;;  %1866 = vmatpush.bf16.msrb.mxu0 %v2838_v48 }
 0x5af   :  { %1928 = vmatpush.bf16.msrb.mxu1 %v2829_v61  ;;  %1867 = vmatpush.bf16.msrb.mxu0 %v2837_v13 }
 0x5b3   :  { %1929 = vmatpush.bf16.msrb.mxu1 %v2828_v2 }
 0x5b7   :  { %1930 = vmatpush.bf16.msrb.mxu1 %v2827_v5 }
 0x5bb   :  { %1931 = vmatpush.bf16.msrb.mxu1 %v2826_v15  ;;  %v2834_v15 = vld [vmem:[#allocation7 + $0xc8] sm:$0xff] }
 0x5bf   :  { %1932 = vmatpush.bf16.msrb.mxu1 %v2825_v21 }
 0x61e   :  { %v1452_v9 = vpop.f32.mrf.mxu0  ;;  %v1465_v10 = vpop.f32.mrf.mxu1 }
 0x61f   :  { %v1453_v12 = vadd.f32 %v1452_v9, %v1279_v6  ;;  %v1466_v14 = vadd.f32 %v1465_v10, %v1280_v8  ;;  %v1041_v10 = vadd.f32 %v3227_v50, %v3189_v7 }
 0x621   :  { %v1495_v16 = vmul.f32 0.044715, %v1453_v12  ;;  %v1496_v17 = vmul.f32 0.044715, %v1466_v14  ;;  %v1515_v55 = vmul.f32 0.5, %v1453_v12  ;;  %v1516_v57 = vmul.f32 0.5, %v1466_v14 }
 0x622   :  { %v1042_v11 = vpack.c.bf16 %v1041_v10, %v1041_v10 }
 0x623   :  { %v1499_v25 = vmul.f32 %v1495_v16, %v1453_v12  ;;  %v1500_v22 = vmul.f32 %v1496_v17, %v1466_v14  ;;  %v2833_v16 = vld [vmem:[#allocation7 + $0xc0] sm:$0xff] }
 0x625   :  { %v1503_v24 = vmul.f32 %v1499_v25, %v1453_v12  ;;  %v1504_v27 = vmul.f32 %v1500_v22, %v1466_v14  ;;  %v1478_v35 = vpop.f32.mrf.mxu2  ;;  %v1491_v20 = vpop.f32.mrf.mxu3 }
 0x626   :  { %v1479_v28 = vadd.f32 %v1478_v35, %v1281_v18  ;;  %v1492_v29 = vadd.f32 %v1491_v20, %v1282_v19  ;;  %v1454_v30 = vpop.f32.mrf.mxu0  ;;  %v1467_v43 = vpop.f32.mrf.mxu1  ;;  %v1535_v19 = vperm.slane %v3221_v54, 5 }
 0x627   :  { %v1507_v31 = vadd.f32 %v1503_v24, %v1453_v12  ;;  %v1508_v32 = vadd.f32 %v1504_v27, %v1466_v14  ;;  %v2836_v12 = vld [vmem:[#allocation7 + $0xd8] sm:$0xff]  ;;  %v2835_v14 = vld [vmem:[#allocation7 + $0xd0] sm:$0xff] }
 0x628   :  { %v1497_v33 = vmul.f32 0.044715, %v1479_v28  ;;  %v1498_v34 = vmul.f32 0.044715, %v1492_v29  ;;  %v1517_v1 = vmul.f32 0.5, %v1479_v28  ;;  %v1518_v3 = vmul.f32 0.5, %v1492_v29  ;;  %1868 = vmatpush.bf16.msrb.mxu0 %v2836_v12 }
 0x629   :  { %v1511_v36 = vmul.f32 0.7978846, %v1507_v31  ;;  %v1512_v37 = vmul.f32 0.7978846, %v1508_v32  ;;  %v1938_v32 = vperm.slane %v3221_v54, 6 }
 0x62a   :  { %v1501_v39 = vmul.f32 %v1497_v33, %v1479_v28  ;;  %v1502_v23 = vmul.f32 %v1498_v34, %v1492_v29 }
 0x62b   :  { %2874 = vtanh.f32 %v1511_v36 }
 0x62c   :  { %v1505_v40 = vmul.f32 %v1501_v39, %v1479_v28  ;;  %v1506_v42 = vmul.f32 %v1502_v23, %v1492_v29  ;;  %2876 = vtanh.f32 %v1512_v37  ;;  %1869 = vmatpush.bf16.msrb.mxu0 %v2835_v14 }
 0x62d   :  { %v1480_v44 = vpop.f32.mrf.mxu2  ;;  %v1493_v45 = vpop.f32.mrf.mxu3 }
 0x62e   :  { %v1509_v46 = vadd.f32 %v1505_v40, %v1479_v28  ;;  %v1510_v47 = vadd.f32 %v1506_v42, %v1492_v29 }
 0x630   :  { %v1513_v49 = vmul.f32 0.7978846, %v1509_v46  ;;  %v1514_v51 = vmul.f32 0.7978846, %v1510_v47  ;;  %1870 = vmatpush.bf16.msrb.mxu0 %v2834_v15 }
 0x631   :  { %v2875_v52 = vpop.eup %2874 }
 0x632   :  { %v2877_v53 = vpop.eup %2876  ;;  %v1523_v56 = vadd.f32 1.0, %v2875_v52  ;;  %2878 = vtanh.f32 %v1513_v49 }
 0x633   :  { %v1524_v58 = vadd.f32 1.0, %v2877_v53  ;;  %2880 = vtanh.f32 %v1514_v51 }
 0x634   :  { %v1527_v59 = vmul.f32 %v1523_v56, %v1515_v55  ;;  %1871 = vmatpush.bf16.msrb.mxu0 %v2833_v16 }
 0x635   :  { %v1528_v60 = vmul.f32 %v1524_v58, %v1516_v57 }
 0x636   :  { %v1531_v61 = vpack.c.bf16 %v1527_v59, %v1527_v59 }
 0x637   :  { %v1532_v62 = vpack.c.bf16 %v1528_v60, %v1528_v60 }
 0x638   :  { %v2879_v63 = vpop.eup %2878  ;;  %1736 = vmatmul.bf16.vlgmr.msra.gmra.mxu0 %v1531_v61 }
 0x639   :  { %v2881_v0 = vpop.eup %2880  ;;  %1749 = vmatmul.bf16.vlgmr.msra.gmra.mxu1 %v1532_v62  ;;  %v1525_v2 = vadd.f32 1.0, %v2879_v63 }
 0x63a   :  { %v1526_v4 = vadd.f32 1.0, %v2881_v0 }
 0x63b   :  { %v1529_v5 = vmul.f32 %v1525_v2, %v1517_v1 }
 0x63c   :  { %v1530_v6 = vmul.f32 %v1526_v4, %v1518_v3 }
 0x63d   :  { %v1533_v8 = vpack.c.bf16 %v1529_v5, %v1529_v5 }
 0x63e   :  { %v1534_v9 = vpack.c.bf16 %v1530_v6, %v1530_v6 }
 0x63f   :  { %1762 = vmatmul.bf16.vlgmr.msra.gmra.mxu2 %v1533_v8 }
 0x640   :  { %1775 = vmatmul.bf16.vlgmr.msra.gmra.mxu3 %v1534_v9 }
 0x649   :  { %1933 = vmatmul.bf16.vlgmr.msrb.gmra.mxu1 %v1042_v11 }
 0x6b5   :  { %v1737_v17 = vpop.f32.mrf.mxu0 }
 0x6b6   :  { %v1750_v18 = vpop.f32.mrf.mxu1  ;;  %v1738_v21 = vadd.f32 %v1737_v17, %v1535_v19 }
 0x6b8   :  { %v1751_v7 = vadd.f32 %v1750_v18, %v1738_v21 }
 0x6bd   :  { %v1739_v25 = vpop.f32.mrf.mxu0 }
 0x6be   :  { %v1752_v22 = vpop.f32.mrf.mxu1 }
 0x6c2   :  { %v1763_v50 = vpop.f32.mrf.mxu2 }
 0x6c3   :  { %v1764_v24 = vadd.f32 %v1763_v50, %v1751_v7  ;;  %v1776_v27 = vpop.f32.mrf.mxu3 }
 0x6c5   :  { %v1777_v35 = vadd.f32 %v1776_v27, %v1764_v24 }
 0x6c6   :  { %v1934_v20 = vpop.f32.mrf.mxu1 }
 0x6c7   :  { %v1780_v28 = vadd.f32 %v1777_v35, %v3231_v26 }
 0x6c9   :  { %v1781_v29 = vpack.c.bf16 %v1780_v28, %v1780_v28 }
 0x6ca   :  { %v1765_v30 = vpop.f32.mrf.mxu2 }
 0x6cb   :  { %v1778_v43 = vpop.f32.mrf.mxu3  ;;  %1872 = vmatmul.bf16.vlgmr.msrb.gmra.mxu0 %v1781_v29 }
 0x6ce   :  { %v1936_v31 = vpop.f32.mrf.mxu1 }
 0x748   :  { %v1873_v33 = vpop.f32.mrf.mxu0 }
 0x749   :  { %v1935_v34 = vadd.f32 %v1934_v20, %v1873_v33 }
 0x74b   :  { %v1939_v36 = vadd.f32 %v1938_v32, %v1935_v34 }
 0x74d   :  { %1940 = vst [vmem:[#allocation14] sm:$0xff] %v1939_v36 }
 0x74e   :  { %1951 = dma.vmem_to_hbm [thread:$0]  %s1947_s9, 128, %s1949_s15, [#allocation4]  }
 0x750   :  { %v1875_v26 = vpop.f32.mrf.mxu0 }
 0x751   :  { %3082 = dma.done.wait [#allocation4], 128  }
 0x752   :  { %3083 = vsyncadd [#allocation4], 4294967168 }
 0x753   :  { %1956 = vsyncpa [#allocation3], 1 }
 0x754   :  { %1957 = vsyncpa [#allocation6], 1 }
 0x755   :  { %1958 = vsyncpa [#allocation9], 1 }
 0x756   :  { %1959 = vsyncpa [#allocation12], 1 }
 0x757   :  { %1960 = vsyncpa [#allocation4], 1 }

// kernel: tpu_custom_call.1
= control target key start
LH: loop header
LB: loop body
LE: loop exit
PB: predicated region body
PF: predicated region fallthrough
CT: control target
= control target key end

     0   :  { %12 = vsyncpa [#allocation3], 0  ;;  %s3256_s0 = inlined_call_operand.hbm [shape: f32[2,8,128], index: 0, kind: input, shape index: {}]   ;;  %s3257_s1 = inlined_call_operand.hbm [shape: bf16[2,128,128], index: 1, kind: input, shape index: {}]   ;;  %s3258_s2 = inlined_call_operand.hbm [shape: bf16[4,128,128], index: 2, kind: input, shape index: {}]   ;;  %s3259_s3 = inlined_call_operand.hbm [shape: bf16[2,128,512], index: 3, kind: input, shape index: {}]   ;;  %s3260_s4 = inlined_call_operand.hbm [shape: bf16[2,512,128], index: 4, kind: input, shape index: {}]   ;;  %s3261_s5 = inlined_call_operand.hbm [shape: f32[15,128], index: 5, kind: input, shape index: {}]   ;;  %s3262_s6 = inlined_call_operand.hbm [shape: f32[2,512], index: 6, kind: input, shape index: {}]   ;;  %s3263_s7 = inlined_call_operand.hbm [shape: f32[8,128], index: 7, kind: output, shape index: {}]  }
   0x1   :  { %13 = vsyncpa [#allocation6], 0 }
   0x2   :  { %14 = vsyncpa [#allocation9], 0 }
   0x3   :  { %15 = vsyncpa [#allocation12], 0  ;;  %s34_s26 = sshll.u32 %s3257_s1, 4  ;;  %s35_s26 = int_to_ptr.hbm [resolvable:$true] %s34_s26 }
   0x4   :  { %16 = vsyncpa [#allocation4], 0  ;;  %s3084_s27 = smov [#allocation5]   ;;  %s60_s8 = sshll.u32 %s3259_s3, 4  ;;  %s61_s8 = int_to_ptr.hbm [resolvable:$true] %s60_s8 }
   0x5   :  { %s36_s28 = sshll.u32 %s3084_s27, 4  ;;  %s3085_s9 = smov 64   ;;  %s37_s28 = int_to_ptr.vmem [resolvable:$true] %s36_s28 }
   0x6   :  { %s3086_s10 = smov 4   ;;  %s3087_s11 = smov [#allocation8]  }
   0x7   :  { %42 = dma.hbm_to_vmem [thread:$0]  %s35_s26, 2048, %s37_s28, [#allocation6], %s3085_s9, %s3085_s9, %s3086_s10  }
   0x8   :  { %s62_s12 = sshll.u32 %s3087_s11, 4  ;;  %s3088_s1 = smov 256   ;;  %s63_s12 = int_to_ptr.vmem [resolvable:$true] %s62_s12 }
   0x9   :  { %s3089_s13 = smov 16   ;;  %s86_s16 = sshll.u32 %s3261_s5, 4  ;;  %s87_s16 = int_to_ptr.hbm [resolvable:$true] %s86_s16 }
   0xa   :  { %68 = dma.hbm_to_vmem [thread:$0]  %s61_s8, 8192, %s63_s12, [#allocation9], %s3088_s1, %s3088_s1, %s3089_s13  }
   0xb   :  { %s3090_s17 = smov [#allocation11]   ;;  %s21_s20 = sshll.u32 %s3256_s0, 4  ;;  %s22_s20 = int_to_ptr.hbm [resolvable:$true] %s21_s20 }
   0xc   :  { %s88_s3 = sshll.u32 %s3090_s17, 4  ;;  %s3091_s21 = smov 128   ;;  %s89_s3 = int_to_ptr.vmem [resolvable:$true] %s88_s3 }
   0xd   :  { %s3092_s22 = smov 8   ;;  %s3093_s23 = smov [#allocation2]  }
   0xe   :  { %94 = dma.hbm_to_vmem [thread:$0]  %s87_s16, 256, %s89_s3, [#allocation12], %s3091_s21, %s3091_s21, %s3092_s22  }
   0xf   :  { %s23_s24 = sshll.u32 %s3093_s23, 4  ;;  %s47_s27 = sshll.u32 %s3258_s2, 4  ;;  %s24_s24 = int_to_ptr.vmem [resolvable:$true] %s23_s24  ;;  %s48_s27 = int_to_ptr.hbm [resolvable:$true] %s47_s27 }
  0x10   :  { %29 = dma.hbm_to_vmem [thread:$0]  %s22_s20, 256, %s24_s24, [#allocation3], %s3091_s21, %s3091_s21, %s3092_s22  }
  0x11   :  { %s73_s29 = sshll.u32 %s3260_s4, 4  ;;  %s3094_s30 = smov [#allocation7]   ;;  %s74_s29 = int_to_ptr.hbm [resolvable:$true] %s73_s29 }
  0x12   :  { %s49_s8 = sshll.u32 %s3094_s30, 4  ;;  %s3095_s0 = smov [#allocation10]   ;;  %s50_s8 = int_to_ptr.vmem [resolvable:$true] %s49_s8 }
  0x13   :  { %55 = dma.hbm_to_vmem [thread:$0]  %s48_s27, 4096, %s50_s8, [#allocation6], %s3085_s9, %s3085_s9, %s3086_s10  }
  0x14   :  { %s75_s11 = sshll.u32 %s3095_s0, 4  ;;  %s100_s2 = sshll.u32 %s3262_s6, 4  ;;  %s76_s11 = int_to_ptr.vmem [resolvable:$true] %s75_s11  ;;  %s101_s2 = int_to_ptr.hbm [resolvable:$true] %s100_s2 }
  0x15   :  { %81 = dma.hbm_to_vmem [thread:$0]  %s74_s29, 8192, %s76_s11, [#allocation9], %s3085_s9, %s3085_s9, %s3086_s10  }
  0x16   :  { %s3096_s4 = smov [#allocation13]  }
  0x17   :  { %s102_s13 = sshll.u32 %s3096_s4, 4  ;;  %s103_s13 = int_to_ptr.vmem [resolvable:$true] %s102_s13 }
  0x18   :  { %105 = dma.hbm_to_vmem [thread:$0]  %s101_s2, 128, %s103_s13, [#allocation12]  }
  0x19   :  { %3074 = dma.done.wait [#allocation3], 256  }
  0x1a   :  { %3075 = vsyncadd [#allocation3], 4294967040 }
  0x1b   :  { %3076 = dma.done.wait [#allocation6], 6144  }
  0x1c   :  { %3077 = vsyncadd [#allocation6], 4294961152 }
  0x1d   :  { %3078 = dma.done.wait [#allocation9], 16384  }
  0x1e   :  { %3079 = vsyncadd [#allocation9], 4294950912 }
  0x1f   :  { %3080 = dma.done.wait [#allocation12], 384  }
  0x20   :  { %3081 = vsyncadd [#allocation12], 4294966912  ;;  %v2680_v0 = vld [vmem:[#allocation5 + $0x78] sm:$0xff]  ;;  %v2679_v1 = vld [vmem:[#allocation5 + $0x70] sm:$0xff]  ;;  %v3097_v25 = vmov 128.0   ;;  %s3098_s6 = smov [#allocation14]  }
  0x21   :  { %286 = vmatpush.bf16.msra.mxu1 %v2680_v0  ;;  %v2672_v2 = vld [vmem:[#allocation5 + $0x38] sm:$0xff]  ;;  %v2671_v3 = vld [vmem:[#allocation5 + $0x30] sm:$0xff]  ;;  %v2678_v4 = vld [vmem:[#allocation5 + $0x68] sm:$0xff]  ;;  %2856 = vrcp.f32 %v3097_v25  ;;  %s1946_s9 = sshll.u32 %s3098_s6, 4  ;;  %s1948_s15 = sshll.u32 %s3263_s7, 4  ;;  %s1947_s9 = int_to_ptr.vmem [resolvable:$true] %s1946_s9  ;;  %s1949_s15 = int_to_ptr.hbm [resolvable:$true] %s1948_s15 }
  0x22   :  { %207 = vmatpush.bf16.msra.mxu0 %v2672_v2  ;;  %v2670_v5 = vld [vmem:[#allocation5 + $0x28] sm:$0xff]  ;;  %v2677_v6 = vld [vmem:[#allocation5 + $0x60] sm:$0xff]  ;;  %v2676_v8 = vld [vmem:[#allocation5 + $0x58] sm:$0xff] }
  0x23   :  { %v2669_v7 = vld [vmem:[#allocation5 + $0x20] sm:$0xff]  ;;  %v2675_v9 = vld [vmem:[#allocation5 + $0x50] sm:$0xff]  ;;  %v2674_v10 = vld [vmem:[#allocation5 + $0x48] sm:$0xff] }
  0x24   :  { %v2673_v11 = vld [vmem:[#allocation5 + $0x40] sm:$0xff]  ;;  %v140_v12 = vld [vmem:[#allocation2 + $0x8] sm:$0xff]  ;;  %v2667_v15 = vld [vmem:[#allocation5 + $0x10] sm:$0xff] }
  0x25   :  { %287 = vmatpush.bf16.msra.mxu1 %v2679_v1  ;;  %v141_v13 = vpack.c.bf16 %v140_v12, %v140_v12  ;;  %v2668_v14 = vld [vmem:[#allocation5 + $0x18] sm:$0xff]  ;;  %v2666_v16 = vld [vmem:[#allocation5 + $0x8] sm:$0xff]  ;;  %v2665_v17 = vld [vmem:[#allocation5] sm:$0xff] }
  0x26   :  { %208 = vmatpush.bf16.msra.mxu0 %v2671_v3  ;;  %v137_v18 = vld [vmem:[#allocation2] sm:$0xff]  ;;  %v3169_v20 = vld [vmem:[#allocation11] sm:$0xff]  ;;  %v2688_v26 = vld [vmem:[#allocation7 + $0x38] sm:$0xff] }
  0x27   :  { %v138_v19 = vpack.c.bf16 %v137_v18, %v137_v18  ;;  %v237_v21 = vperm.slane %v3169_v20, 1  ;;  %492 = vmatpush.bf16.msra.mxu2 %v2688_v26  ;;  %v2857_v27 = vpop.eup %2856  ;;  %v158_v31 = vperm.slane %v3169_v20, 0  ;;  %v2687_v41 = vld [vmem:[#allocation7 + $0x30] sm:$0xff]  ;;  %v2686_v42 = vld [vmem:[#allocation7 + $0x28] sm:$0xff]  ;;  %v2685_v43 = vld [vmem:[#allocation7 + $0x20] sm:$0xff]  ;;  %v438_v61 = vperm.slane %v3169_v20, 2 }
  0x28   :  { %v414_v28 = vmul.f32 128.0, %v2857_v27  ;;  %vm418_vm0 = vweird.f32 %v2857_v27  ;;  %v2684_v44 = vld [vmem:[#allocation7 + $0x18] sm:$0xff]  ;;  %v2683_v45 = vld [vmem:[#allocation7 + $0x10] sm:$0xff]  ;;  %v2682_v46 = vld [vmem:[#allocation7 + $0x8] sm:$0xff]  ;;  %v440_v0 = vperm.slane %v3169_v20, 3 }
  0x29   :  { %288 = vmatpush.bf16.msra.mxu1 %v2678_v4  ;;  %v2681_v49 = vld [vmem:[#allocation7] sm:$0xff]  ;;  %v443_v4 = vperm.slane %v3169_v20, 4  ;;  %v2718_v18 = vld [vmem:[#allocation8 + $0xec] sm:$0xf] }
  0x2a   :  { %209 = vmatpush.bf16.msra.mxu0 %v2670_v5  ;;  %v415_v29 = vsub.f32 1.0, %v414_v28  ;;  %v2715_v28 = vld [vmem:[#allocation8 + $0xcc] sm:$0xf0] }
  0x2b   :  { %493 = vmatpush.bf16.msra.mxu2 %v2687_v41  ;;  %v2711_v41 = vld [vmem:[#allocation8 + $0xac] sm:$0xf0] }
  0x2c   :  { %v416_v30 = vmul.f32 %v2857_v27, %v415_v29  ;;  %v2713_v29 = vld [vmem:[#allocation8 + $0xc4] sm:$0xf] }
  0x2d   :  { %289 = vmatpush.bf16.msra.mxu1 %v2677_v6 }
  0x2e   :  { %210 = vmatpush.bf16.msra.mxu0 %v2669_v7  ;;  %v417_v32 = vadd.f32 %v2857_v27, %v416_v30 }
  0x2f   :  { %494 = vmatpush.bf16.msra.mxu2 %v2686_v42  ;;  %v2709_v42 = vld [vmem:[#allocation8 + $0xa4] sm:$0xf] }
  0x30   :  { %v3176_v35 = vsel %vm418_vm0, %v2857_v27, %v417_v32  ;;  %v2155_v27 = vld [vmem:[#allocation8 + $0xc0] sm:$0xf]  ;;  %v2163_v32 = vld [vmem:[#allocation8 + $0xc8] sm:$0xf] }
  0x31   :  { %290 = vmatpush.bf16.msra.mxu1 %v2676_v8  ;;  %v2156_v30 = vor.u32 %v2715_v28, %v2155_v27  ;;  %v2101_v27 = vld [vmem:[#allocation8 + $0x58] sm:$0xf0] }
  0x32   :  { %211 = vmatpush.bf16.msra.mxu0 %v2668_v14  ;;  %v2179_v14 = vld [vmem:[#allocation8 + $0xe8] sm:$0xf] }
  0x33   :  { %495 = vmatpush.bf16.msra.mxu2 %v2685_v43 }
  0x35   :  { %291 = vmatpush.bf16.msra.mxu1 %v2675_v9  ;;  %v2171_v9 = vld [vmem:[#allocation8 + $0xe0] sm:$0xf] }
  0x36   :  { %212 = vmatpush.bf16.msra.mxu0 %v2667_v15  ;;  %v2720_v15 = vld [vmem:[#allocation8 + $0xf4] sm:$0xf0] }
  0x37   :  { %496 = vmatpush.bf16.msra.mxu2 %v2684_v44  ;;  %v2141_v44 = vld [vmem:[#allocation8 + $0xb0] sm:$0xf0] }
  0x39   :  { %292 = vmatpush.bf16.msra.mxu1 %v2674_v10  ;;  %v2719_v10 = vld [vmem:[#allocation8 + $0xec] sm:$0xf0] }
  0x3a   :  { %213 = vmatpush.bf16.msra.mxu0 %v2666_v16  ;;  %v2172_v12 = vor.u32 %v2719_v10, %v2171_v9 }
  0x3b   :  { %497 = vmatpush.bf16.msra.mxu2 %v2683_v45  ;;  %v2147_v45 = vld [vmem:[#allocation8 + $0xa8] sm:$0xf] }
  0x3c   :  { %704 = vmatpush.bf16.msra.mxu3 %v2172_v12  ;;  %v2117_v12 = vld [vmem:[#allocation8 + $0x78] sm:$0xf0] }
  0x3d   :  { %293 = vmatpush.bf16.msra.mxu1 %v2673_v11  ;;  %v2717_v11 = vld [vmem:[#allocation8 + $0xe4] sm:$0xf] }
  0x3e   :  { %214 = vmatpush.bf16.msra.mxu0 %v2665_v17  ;;  %v2180_v17 = vor.u32 %v2720_v15, %v2179_v14  ;;  %v2091_v14 = vld [vmem:[#allocation8 + $0x40] sm:$0xf]  ;;  %v2699_v15 = vld [vmem:[#allocation8 + $0x4c] sm:$0xf0] }
  0x3f   :  { %498 = vmatpush.bf16.msra.mxu2 %v2682_v46  ;;  %v2712_v46 = vld [vmem:[#allocation8 + $0xb4] sm:$0xf0] }
  0x40   :  { %294 = vmatmul.bf16.vlgmr.msra.gmra.mxu1 %v141_v13  ;;  %v2173_v13 = vld [vmem:[#allocation8 + $0xf0] sm:$0xf0]  ;;  %705 = vmatpush.bf16.msra.mxu3 %v2156_v30  ;;  %v2695_v30 = vld [vmem:[#allocation8 + $0x2c] sm:$0xf0] }
  0x41   :  { %215 = vmatmul.bf16.vlgmr.msra.gmra.mxu0 %v138_v19  ;;  %v2176_v16 = vor.u32 %v2717_v11, %v2173_v13  ;;  %v2181_v19 = vld [vmem:[#allocation8 + $0xf8] sm:$0xf0]  ;;  %730 = vmatpush.bf16.msrb.mxu1 %v2180_v17  ;;  %v2702_v11 = vld [vmem:[#allocation8 + $0x6c] sm:$0xf]  ;;  %v2092_v17 = vor.u32 %v2699_v15, %v2091_v14  ;;  %v2725_v15 = vld [vmem:[#allocation10 + $0x20] sm:$0xff] }
  0x42   :  { %v2120_v13 = vor.u32 %v2702_v11, %v2117_v12  ;;  %v528_v11 = vperm.slane %v3169_v20, 6 }
  0x43   :  { %499 = vmatpush.bf16.msra.mxu2 %v2681_v49  ;;  %717 = vmatpush.bf16.msrb.mxu0 %v2176_v16  ;;  %v2710_v49 = vld [vmem:[#allocation8 + $0xac] sm:$0xf]  ;;  %v2697_v16 = vld [vmem:[#allocation8 + $0x44] sm:$0xf] }
  0xbd   :  { %v295_v22 = vpop.f32.mrf.mxu1 }
  0xbe   :  { %v3172_v23 = vadd.f32 %v295_v22, %v237_v21  ;;  %v216_v33 = vpop.f32.mrf.mxu0  ;;  %v2184_v21 = vor.u32 %v2718_v18, %v2181_v19  ;;  %v2093_v18 = vld [vmem:[#allocation8 + $0x50] sm:$0xf0]  ;;  %v2099_v19 = vld [vmem:[#allocation8 + $0x48] sm:$0xf] }
  0xbf   :  { %v217_v34 = vadd.f32 %v216_v33, %v158_v31  ;;  %v2157_v31 = vld [vmem:[#allocation8 + $0xd0] sm:$0xf0]  ;;  %v2716_v33 = vld [vmem:[#allocation8 + $0xd4] sm:$0xf0] }
  0xc0   :  { %411 = vadd.xlane.f32.xlu0 %v3172_v23  ;;  %743 = vmatpush.bf16.msrb.mxu2 %v2184_v21  ;;  %v2700_v21 = vld [vmem:[#allocation8 + $0x54] sm:$0xf0] }
  0xc1   :  { %1158 = vadd.xlane.f32.xlu2 %v217_v34 }
  0xc5   :  { %v297_v24 = vpop.f32.mrf.mxu1 }
  0xc6   :  { %v218_v38 = vpop.f32.mrf.mxu0 }
  0xc7   :  { %v2165_v38 = vld [vmem:[#allocation8 + $0xd8] sm:$0xf0] }
 0x133   :  { %v412_v36 = vpop.xlane.xlu0 %411 }
 0x134   :  { %v420_v37 = vmul.f32 %v3176_v35, %v412_v36  ;;  %v1159_v47 = vpop.xlane.xlu2 %1158  ;;  %v2164_v36 = vor.u32 %v2716_v33, %v2163_v32  ;;  %v2077_v33 = vld [vmem:[#allocation8 + $0x30] sm:$0xf0] }
 0x135   :  { %v1160_v48 = vmul.f32 %v1159_v47, %v3176_v35  ;;  %v2144_v47 = vor.u32 %v2709_v42, %v2141_v44  ;;  %v2689_v44 = vld [vmem:[#allocation8 + $0x4] sm:$0xf] }
 0x136   :  { %v421_v39 = vsub.f32 %v3172_v23, %v420_v37  ;;  %v2714_v37 = vld [vmem:[#allocation8 + $0xcc] sm:$0xf]  ;;  %731 = vmatpush.bf16.msrb.mxu1 %v2164_v36  ;;  %v2696_v36 = vld [vmem:[#allocation8 + $0x34] sm:$0xf0] }
 0x137   :  { %v3181_v50 = vsub.f32 %v217_v34, %v1160_v48  ;;  %v2148_v48 = vor.u32 %v2712_v46, %v2147_v45  ;;  %v2061_v45 = vld [vmem:[#allocation8 + $0x10] sm:$0xf0] }
 0x138   :  { %v422_v40 = vmul.f32 %v421_v39, %v421_v39 }
 0x139   :  { %v1162_v51 = vmul.f32 %v3181_v50, %v3181_v50 }
 0x13a   :  { %423 = vadd.xlane.f32.xlu0 %v422_v40  ;;  %v2139_v40 = vld [vmem:[#allocation8 + $0xa0] sm:$0xf]  ;;  %732 = vmatpush.bf16.msrb.mxu1 %v2148_v48  ;;  %v2067_v48 = vld [vmem:[#allocation8 + $0x8] sm:$0xf] }
 0x13b   :  { %1163 = vadd.xlane.f32.xlu2 %v1162_v51  ;;  %v2140_v43 = vor.u32 %v2711_v41, %v2139_v40  ;;  %v2149_v51 = vld [vmem:[#allocation8 + $0xb8] sm:$0xf0]  ;;  %v2059_v41 = vld [vmem:[#allocation8] sm:$0xf] }
 0x13c   :  { %v2085_v40 = vld [vmem:[#allocation8 + $0x38] sm:$0xf0] }
 0x13d   :  { %706 = vmatpush.bf16.msra.mxu3 %v2140_v43  ;;  %v2691_v43 = vld [vmem:[#allocation8 + $0xc] sm:$0xf0] }
 0x13e   :  { %v2060_v46 = vor.u32 %v2691_v43, %v2059_v41  ;;  %v2729_v41 = vld [vmem:[#allocation10 + $0x40] sm:$0xff]  ;;  %v3202_v43 = vld [vmem:[#allocation13] sm:$0xff] }
 0x1ad   :  { %v424_v52 = vpop.xlane.xlu0 %423 }
 0x1ae   :  { %v425_v53 = vmul.f32 %v424_v52, %v3176_v35  ;;  %v2152_v52 = vor.u32 %v2710_v49, %v2149_v51  ;;  %v2692_v49 = vld [vmem:[#allocation8 + $0x14] sm:$0xf0]  ;;  %v2690_v51 = vld [vmem:[#allocation8 + $0xc] sm:$0xf] }
 0x1b0   :  { %v426_v54 = vadd.f32 1e-05, %v425_v53  ;;  %v2123_v53 = vld [vmem:[#allocation8 + $0x80] sm:$0xf] }
 0x1b2   :  { %2858 = vrsqrt.f32 %v426_v54  ;;  %vm433_vm2 = vweird.f32 %v426_v54 }
 0x1b8   :  { %v2859_v55 = vpop.eup %2858 }
 0x1b9   :  { %v428_v56 = vmul.f32 %v2859_v55, %v426_v54  ;;  %vm434_vm1 = vweird.f32 %v2859_v55  ;;  %v2707_v54 = vld [vmem:[#allocation8 + $0x8c] sm:$0xf0] }
 0x1ba   :  { %vm435_vm3 = vmor %vm433_vm2, %vm434_vm1 }
 0x1bb   :  { %v429_v57 = vmul.f32 %v2859_v55, %v428_v56  ;;  %v2124_v56 = vor.u32 %v2707_v54, %v2123_v53  ;;  %v2069_v53 = vld [vmem:[#allocation8 + $0x18] sm:$0xf0] }
 0x1bc   :  { %v2072_v54 = vor.u32 %v2690_v51, %v2069_v53  ;;  %v2745_v51 = vld [vmem:[#allocation10 + $0xc0] sm:$0xff] }
 0x1bd   :  { %v430_v58 = vmul.f32 0.5, %v429_v57  ;;  %v2125_v57 = vld [vmem:[#allocation8 + $0x90] sm:$0xf0]  ;;  %707 = vmatpush.bf16.msra.mxu3 %v2124_v56  ;;  %v2728_v56 = vld [vmem:[#allocation10 + $0x38] sm:$0xff] }
 0x1bf   :  { %v431_v59 = vsub.f32 1.5, %v430_v58  ;;  %v2131_v58 = vld [vmem:[#allocation8 + $0x88] sm:$0xf] }
 0x1c1   :  { %v432_v60 = vmul.f32 %v2859_v55, %v431_v59  ;;  %v2708_v59 = vld [vmem:[#allocation8 + $0x94] sm:$0xf0] }
 0x1c3   :  { %v436_v62 = vsel %vm435_vm3, %v2859_v55, %v432_v60  ;;  %v2705_v55 = vld [vmem:[#allocation8 + $0x84] sm:$0xf] }
 0x1c4   :  { %v437_v63 = vmul.f32 %v436_v62, %v421_v39  ;;  %v2168_v39 = vor.u32 %v2714_v37, %v2165_v38  ;;  %v2128_v60 = vor.u32 %v2705_v55, %v2125_v57  ;;  %v2706_v62 = vld [vmem:[#allocation8 + $0x8c] sm:$0xf]  ;;  %v2736_v57 = vld [vmem:[#allocation10 + $0x78] sm:$0xff] }
 0x1c6   :  { %v439_v1 = vmul.f32 %v438_v61, %v437_v63  ;;  %744 = vmatpush.bf16.msrb.mxu2 %v2168_v39  ;;  %v2132_v61 = vor.u32 %v2708_v59, %v2131_v58  ;;  %v2133_v63 = vld [vmem:[#allocation8 + $0x98] sm:$0xf0]  ;;  %v2694_v39 = vld [vmem:[#allocation8 + $0x2c] sm:$0xf] }
 0x1c7   :  { %v2088_v42 = vor.u32 %v2694_v39, %v2085_v40  ;;  %v2744_v59 = vld [vmem:[#allocation10 + $0xb8] sm:$0xff]  ;;  %v2747_v39 = vld [vmem:[#allocation10 + $0xd0] sm:$0xff] }
 0x1c8   :  { %v441_v2 = vadd.f32 %v440_v0, %v439_v1  ;;  %v2136_v0 = vor.u32 %v2706_v62, %v2133_v63  ;;  %733 = vmatpush.bf16.msrb.mxu1 %v2132_v61  ;;  %v2107_v1 = vld [vmem:[#allocation8 + $0x60] sm:$0xf]  ;;  %v2735_v61 = vld [vmem:[#allocation10 + $0x70] sm:$0xff] }
 0x1c9   :  { %v2743_v63 = vld [vmem:[#allocation10 + $0xb0] sm:$0xff] }
 0x1ca   :  { %v442_v3 = vpack.c.bf16 %v441_v2, %v441_v2  ;;  %745 = vmatpush.bf16.msrb.mxu2 %v2152_v52  ;;  %v2703_v2 = vld [vmem:[#allocation8 + $0x6c] sm:$0xf0]  ;;  %v2068_v52 = vor.u32 %v2692_v49, %v2067_v48  ;;  %v534_v49 = vperm.slane %v3202_v43, 4 }
 0x1cb   :  { %v2759_v40 = vld [vmem:[#allocation7 + $0x70] sm:$0xff] }
 0x1cc   :  { %500 = vmatmul.bf16.vlgmr.msra.gmra.mxu2 %v442_v3  ;;  %v2701_v3 = vld [vmem:[#allocation8 + $0x64] sm:$0xf] }
 0x1ce   :  { %746 = vmatpush.bf16.msrb.mxu2 %v2136_v0  ;;  %v2726_v0 = vld [vmem:[#allocation10 + $0x28] sm:$0xff] }
 0x1d2   :  { %747 = vmatpush.bf16.msrb.mxu2 %v2120_v13 }
 0x24f   :  { %v501_v5 = vpop.f32.mrf.mxu2 }
 0x250   :  { %v502_v6 = vadd.f32 %v501_v5, %v443_v4  ;;  %v2108_v4 = vor.u32 %v2703_v2, %v2107_v1  ;;  %v2109_v5 = vld [vmem:[#allocation8 + $0x70] sm:$0xf0] }
 0x251   :  { %v2112_v9 = vor.u32 %v2701_v3, %v2109_v5 }
 0x252   :  { %v3189_v7 = vadd.f32 %v502_v6, %v217_v34  ;;  %v2160_v34 = vor.u32 %v2713_v29, %v2157_v31  ;;  %v2115_v6 = vld [vmem:[#allocation8 + $0x68] sm:$0xf]  ;;  %708 = vmatpush.bf16.msra.mxu3 %v2108_v4  ;;  %v2075_v29 = vld [vmem:[#allocation8 + $0x20] sm:$0xf]  ;;  %v2693_v31 = vld [vmem:[#allocation8 + $0x24] sm:$0xf] }
 0x253   :  { %v2076_v32 = vor.u32 %v2695_v30, %v2075_v29  ;;  %v2080_v37 = vor.u32 %v2693_v31, %v2077_v33  ;;  %v2722_v29 = vld [vmem:[#allocation10 + $0x8] sm:$0xff]  ;;  %v2749_v30 = vld [vmem:[#allocation10 + $0xe0] sm:$0xff]  ;;  %v2731_v31 = vld [vmem:[#allocation10 + $0x50] sm:$0xff] }
 0x254   :  { %506 = vadd.xlane.f32.xlu1 %v3189_v7  ;;  %718 = vmatpush.bf16.msrb.mxu0 %v2160_v34  ;;  %v2083_v34 = vld [vmem:[#allocation8 + $0x28] sm:$0xf]  ;;  %v2721_v33 = vld [vmem:[#allocation10] sm:$0xff] }
 0x255   :  { %v2084_v38 = vor.u32 %v2696_v36, %v2083_v34  ;;  %v2748_v34 = vld [vmem:[#allocation10 + $0xd8] sm:$0xff] }
 0x256   :  { %709 = vmatpush.bf16.msra.mxu3 %v2092_v17  ;;  %v2734_v17 = vld [vmem:[#allocation10 + $0x68] sm:$0xff]  ;;  %v2760_v36 = vld [vmem:[#allocation7 + $0x78] sm:$0xff] }
 0x257   :  { %v503_v8 = vpop.f32.mrf.mxu2 }
 0x258   :  { %719 = vmatpush.bf16.msrb.mxu0 %v2144_v47  ;;  %v2704_v8 = vld [vmem:[#allocation8 + $0x74] sm:$0xf0]  ;;  %v2064_v47 = vor.u32 %v2689_v44, %v2061_v45  ;;  %v2746_v44 = vld [vmem:[#allocation10 + $0xc8] sm:$0xff] }
 0x259   :  { %v2116_v10 = vor.u32 %v2704_v8, %v2115_v6  ;;  %v526_v8 = vperm.slane %v3169_v20, 5  ;;  %v2758_v45 = vld [vmem:[#allocation7 + $0x68] sm:$0xff] }
 0x25a   :  { %710 = vmatpush.bf16.msra.mxu3 %v2076_v32  ;;  %v2739_v32 = vld [vmem:[#allocation10 + $0x90] sm:$0xff] }
 0x25b   :  { %734 = vmatpush.bf16.msrb.mxu1 %v2116_v10 }
 0x25c   :  { %720 = vmatpush.bf16.msrb.mxu0 %v2128_v60  ;;  %v2727_v60 = vld [vmem:[#allocation10 + $0x30] sm:$0xff] }
 0x25e   :  { %711 = vmatpush.bf16.msra.mxu3 %v2060_v46  ;;  %v1164_v46 = vpop.xlane.xlu2 %1163 }
 0x25f   :  { %v1165_v48 = vmul.f32 %v1164_v46, %v3176_v35 }
 0x260   :  { %721 = vmatpush.bf16.msrb.mxu0 %v2112_v9 }
 0x262   :  { %989 = vmatpush.bf16.msrb.mxu3 %v2728_v56  ;;  %v532_v56 = vperm.slane %v3202_v43, 0 }
 0x266   :  { %990 = vmatpush.bf16.msrb.mxu3 %v2727_v60 }
 0x26a   :  { %991 = vmatpush.bf16.msrb.mxu3 %v2726_v0 }
 0x26e   :  { %992 = vmatpush.bf16.msrb.mxu3 %v2725_v15 }
 0x2c7   :  { %v507_v22 = vpop.xlane.xlu1 %506 }
 0x2c8   :  { %v508_v24 = vmul.f32 %v507_v22, %v3176_v35  ;;  %v2096_v22 = vor.u32 %v2697_v16, %v2093_v18  ;;  %v2752_v16 = vld [vmem:[#allocation10 + $0xf8] sm:$0xff]  ;;  %v2742_v18 = vld [vmem:[#allocation10 + $0xa8] sm:$0xff] }
 0x2ca   :  { %v3194_v25 = vsub.f32 %v3189_v7, %v508_v24  ;;  %v2100_v24 = vor.u32 %v2700_v21, %v2099_v19  ;;  %722 = vmatpush.bf16.msrb.mxu0 %v2096_v22  ;;  %v2724_v19 = vld [vmem:[#allocation10 + $0x18] sm:$0xff]  ;;  %v2751_v21 = vld [vmem:[#allocation10 + $0xf0] sm:$0xff]  ;;  %v2741_v22 = vld [vmem:[#allocation10 + $0xa0] sm:$0xff] }
 0x2cb   :  { %993 = vmatpush.bf16.msrb.mxu3 %v2724_v19 }
 0x2cc   :  { %v510_v26 = vmul.f32 %v3194_v25, %v3194_v25  ;;  %735 = vmatpush.bf16.msrb.mxu1 %v2100_v24  ;;  %v2723_v24 = vld [vmem:[#allocation10 + $0x10] sm:$0xff] }
 0x2ce   :  { %511 = vadd.xlane.f32.xlu1 %v510_v26  ;;  %v2698_v26 = vld [vmem:[#allocation8 + $0x4c] sm:$0xf]  ;;  %723 = vmatpush.bf16.msrb.mxu0 %v2080_v37 }
 0x2cf   :  { %v2104_v28 = vor.u32 %v2698_v26, %v2101_v27  ;;  %v2750_v26 = vld [vmem:[#allocation10 + $0xe8] sm:$0xff]  ;;  %994 = vmatpush.bf16.msrb.mxu3 %v2723_v24  ;;  %v2732_v27 = vld [vmem:[#allocation10 + $0x58] sm:$0xff] }
 0x2d0   :  { %736 = vmatpush.bf16.msrb.mxu1 %v2084_v38  ;;  %v2730_v37 = vld [vmem:[#allocation10 + $0x48] sm:$0xff] }
 0x2d1   :  { %748 = vmatpush.bf16.msrb.mxu2 %v2104_v28  ;;  %v2740_v28 = vld [vmem:[#allocation10 + $0x98] sm:$0xff]  ;;  %v2738_v38 = vld [vmem:[#allocation10 + $0x88] sm:$0xff] }
 0x2d2   :  { %724 = vmatpush.bf16.msrb.mxu0 %v2064_v47  ;;  %v533_v47 = vperm.slane %v3202_v43, 2 }
 0x2d3   :  { %995 = vmatpush.bf16.msrb.mxu3 %v2722_v29 }
 0x2d4   :  { %737 = vmatpush.bf16.msrb.mxu1 %v2068_v52  ;;  %v2757_v52 = vld [vmem:[#allocation7 + $0x60] sm:$0xff]  ;;  %v541_v53 = vperm.slane %v533_v47, 0 }
 0x2d5   :  { %749 = vmatpush.bf16.msrb.mxu2 %v2088_v42  ;;  %v2737_v42 = vld [vmem:[#allocation10 + $0x80] sm:$0xff] }
 0x2d6   :  { %1002 = vmatpush.bf16.msra.mxu0 %v2736_v57 }
 0x2d7   :  { %996 = vmatpush.bf16.msrb.mxu3 %v2721_v33 }
 0x2d8   :  { %1015 = vmatpush.bf16.msra.mxu1 %v2744_v59  ;;  %v2756_v59 = vld [vmem:[#allocation7 + $0x58] sm:$0xff] }
 0x2d9   :  { %750 = vmatpush.bf16.msrb.mxu2 %v2072_v54  ;;  %v3207_v54 = vadd.f32 1e-05, %v1165_v48 }
 0x2da   :  { %1003 = vmatpush.bf16.msra.mxu0 %v2735_v61 }
 0x2db   :  { %vm1173_vm7 = vweird.f32 %v3207_v54 }
 0x2dc   :  { %1016 = vmatpush.bf16.msra.mxu1 %v2743_v63  ;;  %v2755_v63 = vld [vmem:[#allocation7 + $0x50] sm:$0xff] }
 0x2dd   :  { %1028 = vmatpush.bf16.msra.mxu2 %v2752_v16 }
 0x2de   :  { %1004 = vmatpush.bf16.msra.mxu0 %v2734_v17 }
 0x2e0   :  { %1017 = vmatpush.bf16.msra.mxu1 %v2742_v18 }
 0x2e1   :  { %1029 = vmatpush.bf16.msra.mxu2 %v2751_v21 }
 0x2e4   :  { %1018 = vmatpush.bf16.msra.mxu1 %v2741_v22 }
 0x2e5   :  { %1030 = vmatpush.bf16.msra.mxu2 %v2750_v26 }
 0x2e8   :  { %1019 = vmatpush.bf16.msra.mxu1 %v2740_v28 }
 0x2e9   :  { %1031 = vmatpush.bf16.msra.mxu2 %v2749_v30 }
 0x2ec   :  { %1020 = vmatpush.bf16.msra.mxu1 %v2739_v32 }
 0x2ed   :  { %1032 = vmatpush.bf16.msra.mxu2 %v2748_v34 }
 0x2f0   :  { %1021 = vmatpush.bf16.msra.mxu1 %v2738_v38 }
 0x2f1   :  { %1033 = vmatpush.bf16.msra.mxu2 %v2747_v39 }
 0x2f4   :  { %1022 = vmatpush.bf16.msra.mxu1 %v2737_v42 }
 0x2f5   :  { %1034 = vmatpush.bf16.msra.mxu2 %v2746_v44 }
 0x2f9   :  { %1035 = vmatpush.bf16.msra.mxu2 %v2745_v51 }
 0x341   :  { %v512_v55 = vpop.xlane.xlu1 %511 }
 0x342   :  { %v513_v58 = vmul.f32 %v512_v55, %v3176_v35  ;;  %v542_v55 = vperm.slane %v534_v49, 0 }
 0x344   :  { %v514_v62 = vadd.f32 1e-05, %v513_v58  ;;  %v535_v58 = vperm.slane %v3202_v43, 6 }
 0x346   :  { %2860 = vrsqrt.f32 %v514_v62  ;;  %vm521_vm5 = vweird.f32 %v514_v62 }
 0x347   :  { %2862 = vrsqrt.f32 %v3207_v54 }
 0x34c   :  { %v2861_v1 = vpop.eup %2860 }
 0x34d   :  { %v516_v2 = vmul.f32 %v2861_v1, %v514_v62  ;;  %vm522_vm4 = vweird.f32 %v2861_v1 }
 0x34e   :  { %vm523_vm6 = vmor %vm521_vm5, %vm522_vm4 }
 0x34f   :  { %v517_v3 = vmul.f32 %v2861_v1, %v516_v2 }
 0x351   :  { %v518_v4 = vmul.f32 0.5, %v517_v3  ;;  %v543_v3 = vperm.slane %v535_v58, 0 }
 0x353   :  { %v519_v5 = vsub.f32 1.5, %v518_v4 }
 0x355   :  { %v520_v6 = vmul.f32 %v2861_v1, %v519_v5 }
 0x357   :  { %v524_v9 = vsel %vm523_vm6, %v2861_v1, %v520_v6  ;;  %v540_v1 = vperm.slane %v532_v56, 0 }
 0x358   :  { %v525_v10 = vmul.f32 %v524_v9, %v3194_v25  ;;  %v2733_v25 = vld [vmem:[#allocation10 + $0x60] sm:$0xff] }
 0x359   :  { %1005 = vmatpush.bf16.msra.mxu0 %v2733_v25  ;;  %v2753_v25 = vld [vmem:[#allocation7 + $0x40] sm:$0xff] }
 0x35a   :  { %v527_v12 = vmul.f32 %v526_v8, %v525_v10  ;;  %v2754_v8 = vld [vmem:[#allocation7 + $0x48] sm:$0xff] }
 0x35c   :  { %v529_v13 = vadd.f32 %v528_v11, %v527_v12  ;;  %v3212_v12 = vpop.eup %2862 }
 0x35d   :  { %1006 = vmatpush.bf16.msra.mxu0 %v2732_v27  ;;  %v1168_v22 = vmul.f32 %v3212_v12, %v3207_v54  ;;  %vm1174_vm8 = vweird.f32 %v3212_v12  ;;  %v3221_v54 = vld [vmem:[#allocation11 + $0x8] sm:$0x7f] }
 0x35e   :  { %v530_v14 = vpack.c.bf16 %v529_v13, %v529_v13  ;;  %vm1175_vm9 = vmor %vm1173_vm7, %vm1174_vm8 }
 0x35f   :  { %v1169_v32 = vmul.f32 %v3212_v12, %v1168_v22 }
 0x360   :  { %712 = vmatmul.bf16.vlgmr.msra.gmra.mxu3 %v530_v14  ;;  %725 = vmatmul.bf16.vlgmr.msrb.gmra.mxu0 %v530_v14 }
 0x361   :  { %738 = vmatmul.bf16.vlgmr.msrb.gmra.mxu1 %v530_v14  ;;  %751 = vmatmul.bf16.vlgmr.msrb.gmra.mxu2 %v530_v14 }
 0x362   :  { %1007 = vmatpush.bf16.msra.mxu0 %v2731_v31  ;;  %1232 = vmatpush.bf16.msra.mxu3 %v2760_v36 }
 0x366   :  { %1008 = vmatpush.bf16.msra.mxu0 %v2730_v37  ;;  %1233 = vmatpush.bf16.msra.mxu3 %v2759_v40  ;;  %v1170_v40 = vmul.f32 0.5, %v1169_v32  ;;  %v2467_v32 = vld [vmem:[#allocation8 + $0x1e8] sm:$0xf] }
 0x368   :  { %v1171_v48 = vsub.f32 1.5, %v1170_v40 }
 0x36a   :  { %1009 = vmatpush.bf16.msra.mxu0 %v2729_v41  ;;  %1234 = vmatpush.bf16.msra.mxu3 %v2758_v45  ;;  %v1172_v58 = vmul.f32 %v3212_v12, %v1171_v48  ;;  %v2445_v48 = vld [vmem:[#allocation8 + $0x1d0] sm:$0xf0] }
 0x36e   :  { %1235 = vmatpush.bf16.msra.mxu3 %v2757_v52 }
 0x372   :  { %1236 = vmatpush.bf16.msra.mxu3 %v2756_v59 }
 0x376   :  { %1237 = vmatpush.bf16.msra.mxu3 %v2755_v63 }
 0x37a   :  { %1238 = vmatpush.bf16.msra.mxu3 %v2754_v8 }
 0x37e   :  { %1239 = vmatpush.bf16.msra.mxu3 %v2753_v25  ;;  %v1183_v25 = vperm.slane %v3221_v54, 2 }
 0x3dd   :  { %v726_v57 = vpop.f32.mrf.mxu0 }
 0x3de   :  { %v727_v60 = vadd.f32 %v726_v57, %v541_v53  ;;  %v739_v61 = vpop.f32.mrf.mxu1 }
 0x3df   :  { %v740_v62 = vadd.f32 %v739_v61, %v542_v55 }
 0x3e0   :  { %v757_v0 = vmul.f32 0.044715, %v727_v60  ;;  %v777_v42 = vmul.f32 0.5, %v727_v60 }
 0x3e1   :  { %v758_v2 = vmul.f32 0.044715, %v740_v62  ;;  %v778_v45 = vmul.f32 0.5, %v740_v62 }
 0x3e2   :  { %v761_v4 = vmul.f32 %v757_v0, %v727_v60  ;;  %v1176_v0 = vsel %vm1175_vm9, %v3212_v12, %v1172_v58  ;;  %v796_v12 = vperm.slane %v3169_v20, 7  ;;  %v2459_v20 = vld [vmem:[#allocation8 + $0x1e0] sm:$0xf] }
 0x3e3   :  { %v762_v5 = vmul.f32 %v758_v2, %v740_v62  ;;  %v713_v6 = vpop.f32.mrf.mxu3  ;;  %v1177_v2 = vmul.f32 %v1176_v0, %v3181_v50  ;;  %v2427_v58 = vld [vmem:[#allocation8 + $0x1a0] sm:$0xf]  ;;  %v2784_v0 = vld [vmem:[#allocation8 + $0x1b4] sm:$0xf0] }
 0x3e4   :  { %v765_v9 = vmul.f32 %v761_v4, %v727_v60  ;;  %v714_v10 = vadd.f32 %v713_v6, %v540_v1  ;;  %v752_v11 = vpop.f32.mrf.mxu2 }
 0x3e5   :  { %v766_v13 = vmul.f32 %v762_v5, %v740_v62  ;;  %v753_v14 = vadd.f32 %v752_v11, %v543_v3  ;;  %v728_v15 = vpop.f32.mrf.mxu0  ;;  %v1178_v3 = vperm.slane %v3221_v54, 0  ;;  %v1180_v5 = vperm.slane %v3221_v54, 1 }
 0x3e6   :  { %v756_v16 = vmul.f32 0.044715, %v714_v10  ;;  %v741_v17 = vpop.f32.mrf.mxu1  ;;  %v769_v18 = vadd.f32 %v765_v9, %v727_v60  ;;  %v776_v56 = vmul.f32 0.5, %v714_v10 }
 0x3e7   :  { %v759_v19 = vmul.f32 0.044715, %v753_v14  ;;  %v770_v21 = vadd.f32 %v766_v13, %v740_v62  ;;  %v779_v59 = vmul.f32 0.5, %v753_v14  ;;  %v1179_v4 = vmul.f32 %v1178_v3, %v1177_v2  ;;  %v2782_v3 = vld [vmem:[#allocation8 + $0x1ac] sm:$0xf] }
 0x3e8   :  { %v760_v24 = vmul.f32 %v756_v16, %v714_v10  ;;  %v773_v26 = vmul.f32 0.7978846, %v769_v18 }
 0x3e9   :  { %v763_v27 = vmul.f32 %v759_v19, %v753_v14  ;;  %v774_v28 = vmul.f32 0.7978846, %v770_v21  ;;  %v1181_v6 = vadd.f32 %v1180_v5, %v1179_v4  ;;  %v2437_v4 = vld [vmem:[#allocation8 + $0x1b8] sm:$0xf0] }
 0x3ea   :  { %2864 = vtanh.f32 %v773_v26  ;;  %v764_v29 = vmul.f32 %v760_v24, %v714_v10  ;;  %v2440_v5 = vor.u32 %v2782_v3, %v2437_v4  ;;  %v2355_v3 = vld [vmem:[#allocation8 + $0x108] sm:$0xf]  ;;  %v2764_v4 = vld [vmem:[#allocation8 + $0x114] sm:$0xf0] }
 0x3eb   :  { %v767_v30 = vmul.f32 %v763_v27, %v753_v14  ;;  %v715_v31 = vpop.f32.mrf.mxu3  ;;  %2866 = vtanh.f32 %v774_v28  ;;  %v1182_v8 = vpack.c.bf16 %v1181_v6, %v1181_v6  ;;  %v2791_v28 = vld [vmem:[#allocation8 + $0x1ec] sm:$0xf0]  ;;  %v2411_v6 = vld [vmem:[#allocation8 + $0x180] sm:$0xf] }
 0x3ec   :  { %v754_v33 = vpop.f32.mrf.mxu2  ;;  %v768_v34 = vadd.f32 %v764_v29, %v714_v10  ;;  %v2789_v29 = vld [vmem:[#allocation8 + $0x1e4] sm:$0xf]  ;;  %v2461_v31 = vld [vmem:[#allocation8 + $0x1f0] sm:$0xf0] }
 0x3ed   :  { %v771_v36 = vadd.f32 %v767_v30, %v753_v14  ;;  %v2460_v30 = vor.u32 %v2791_v28, %v2459_v20  ;;  %v2792_v33 = vld [vmem:[#allocation8 + $0x1f4] sm:$0xf0] }
 0x3ee   :  { %v772_v37 = vmul.f32 0.7978846, %v768_v34  ;;  %v2464_v34 = vor.u32 %v2789_v29, %v2461_v31  ;;  %v2776_v20 = vld [vmem:[#allocation8 + $0x174] sm:$0xf0]  ;;  %v2405_v31 = vld [vmem:[#allocation8 + $0x178] sm:$0xf0] }
 0x3ef   :  { %v775_v38 = vmul.f32 0.7978846, %v771_v36  ;;  %v2468_v36 = vor.u32 %v2792_v33, %v2467_v32  ;;  %1443 = vmatpush.bf16.msrb.mxu0 %v2460_v30  ;;  %v2774_v30 = vld [vmem:[#allocation8 + $0x16c] sm:$0xf]  ;;  %v2379_v33 = vld [vmem:[#allocation8 + $0x140] sm:$0xf] }
 0x3f0   :  { %v2865_v39 = vpop.eup %2864  ;;  %2868 = vtanh.f32 %v772_v37  ;;  %v2790_v37 = vld [vmem:[#allocation8 + $0x1ec] sm:$0xf]  ;;  %1456 = vmatpush.bf16.msrb.mxu1 %v2464_v34  ;;  %v2408_v32 = vor.u32 %v2774_v30, %v2405_v31  ;;  %v2771_v34 = vld [vmem:[#allocation8 + $0x14c] sm:$0xf0]  ;;  %v1268_v30 = vperm.slane %v3221_v54, 4 }
 0x3f1   :  { %v2867_v41 = vpop.eup %2866  ;;  %v785_v44 = vadd.f32 1.0, %v2865_v39  ;;  %2870 = vtanh.f32 %v775_v38  ;;  %v2469_v38 = vld [vmem:[#allocation8 + $0x1f8] sm:$0xf0]  ;;  %1469 = vmatpush.bf16.msrb.mxu2 %v2468_v36  ;;  %v2769_v36 = vld [vmem:[#allocation8 + $0x144] sm:$0xf] }
 0x3f2   :  { %v786_v46 = vadd.f32 1.0, %v2867_v41  ;;  %v2472_v39 = vor.u32 %v2790_v37, %v2469_v38  ;;  %v2380_v37 = vor.u32 %v2771_v34, %v2379_v33  ;;  %v2381_v38 = vld [vmem:[#allocation8 + $0x150] sm:$0xf0]  ;;  %v2816_v34 = vld [vmem:[#allocation10 + $0x1b8] sm:$0xff] }
 0x3f3   :  { %v789_v47 = vmul.f32 %v785_v44, %v777_v42  ;;  %v2443_v44 = vld [vmem:[#allocation8 + $0x1c0] sm:$0xf] }
 0x3f4   :  { %v790_v49 = vmul.f32 %v786_v46, %v778_v45  ;;  %v2787_v45 = vld [vmem:[#allocation8 + $0x1cc] sm:$0xf0]  ;;  %v2785_v46 = vld [vmem:[#allocation8 + $0x1c4] sm:$0xf] }
 0x3f5   :  { %v793_v51 = vpack.c.bf16 %v789_v47, %v789_v47  ;;  %v2444_v47 = vor.u32 %v2787_v45, %v2443_v44  ;;  %v2770_v44 = vld [vmem:[#allocation8 + $0x14c] sm:$0xf]  ;;  %v2389_v45 = vld [vmem:[#allocation8 + $0x158] sm:$0xf0] }
 0x3f6   :  { %v2869_v52 = vpop.eup %2868  ;;  %v794_v53 = vpack.c.bf16 %v790_v49, %v790_v49  ;;  %v2451_v49 = vld [vmem:[#allocation8 + $0x1c8] sm:$0xf] }
 0x3f7   :  { %v2871_v55 = vpop.eup %2870  ;;  %1010 = vmatmul.bf16.vlgmr.msra.gmra.mxu0 %v793_v51  ;;  %v784_v57 = vadd.f32 1.0, %v2869_v52  ;;  %v2788_v51 = vld [vmem:[#allocation8 + $0x1d4] sm:$0xf0]  ;;  %v2448_v52 = vor.u32 %v2785_v46, %v2445_v48  ;;  %v2392_v46 = vor.u32 %v2770_v44, %v2389_v45  ;;  %v2767_v48 = vld [vmem:[#allocation8 + $0x12c] sm:$0xf0]  ;;  %v2822_v44 = vld [vmem:[#allocation10 + $0x1e8] sm:$0xff] }
 0x3f8   :  { %1023 = vmatmul.bf16.vlgmr.msra.gmra.mxu1 %v794_v53  ;;  %v787_v60 = vadd.f32 1.0, %v2871_v55  ;;  %v2452_v53 = vor.u32 %v2788_v51, %v2451_v49  ;;  %v2786_v55 = vld [vmem:[#allocation8 + $0x1cc] sm:$0xf]  ;;  %1444 = vmatpush.bf16.msrb.mxu0 %v2444_v47  ;;  %v2363_v47 = vld [vmem:[#allocation8 + $0x120] sm:$0xf] }
 0x3f9   :  { %v788_v61 = vmul.f32 %v784_v57, %v776_v56  ;;  %v2453_v56 = vld [vmem:[#allocation8 + $0x1d8] sm:$0xf0]  ;;  %1457 = vmatpush.bf16.msrb.mxu1 %v2448_v52  ;;  %v2765_v49 = vld [vmem:[#allocation8 + $0x124] sm:$0xf]  ;;  %v2364_v51 = vor.u32 %v2767_v48, %v2363_v47  ;;  %v2365_v52 = vld [vmem:[#allocation8 + $0x130] sm:$0xf0] }
 0x3fa   :  { %v791_v62 = vmul.f32 %v787_v60, %v779_v59  ;;  %v2456_v57 = vor.u32 %v2786_v55, %v2453_v56  ;;  %1470 = vmatpush.bf16.msrb.mxu2 %v2452_v53  ;;  %v2783_v59 = vld [vmem:[#allocation8 + $0x1ac] sm:$0xf0]  ;;  %v2781_v60 = vld [vmem:[#allocation8 + $0x1a4] sm:$0xf]  ;;  %v2371_v53 = vld [vmem:[#allocation8 + $0x128] sm:$0xf]  ;;  %v2368_v56 = vor.u32 %v2765_v49, %v2365_v52 }
 0x3fb   :  { %v792_v63 = vpack.c.bf16 %v788_v61, %v788_v61  ;;  %v2428_v61 = vor.u32 %v2783_v59, %v2427_v58  ;;  %v2768_v55 = vld [vmem:[#allocation8 + $0x134] sm:$0xf0]  ;;  %v2766_v58 = vld [vmem:[#allocation8 + $0x12c] sm:$0xf]  ;;  %v2373_v59 = vld [vmem:[#allocation8 + $0x138] sm:$0xf0] }
 0x3fc   :  { %v795_v1 = vpack.c.bf16 %v791_v62, %v791_v62  ;;  %v2429_v62 = vld [vmem:[#allocation8 + $0x1b0] sm:$0xf0]  ;;  %v2801_v45 = vld [vmem:[#allocation10 + $0x140] sm:$0xff]  ;;  %v2832_v47 = vld [vmem:[#allocation7 + $0xb8] sm:$0xff] }
 0x3fd   :  { %997 = vmatmul.bf16.vlgmr.msrb.gmra.mxu3 %v792_v63  ;;  %v2435_v63 = vld [vmem:[#allocation8 + $0x1a8] sm:$0xf]  ;;  %1445 = vmatpush.bf16.msrb.mxu0 %v2428_v61  ;;  %v2376_v61 = vor.u32 %v2766_v58, %v2373_v59  ;;  %v2813_v48 = vld [vmem:[#allocation10 + $0x1a0] sm:$0xff]  ;;  %v2831_v52 = vld [vmem:[#allocation7 + $0xb0] sm:$0xff] }
 0x3fe   :  { %1036 = vmatmul.bf16.vlgmr.msra.gmra.mxu2 %v795_v1  ;;  %1482 = vmatpush.bf16.msrb.mxu3 %v2472_v39  ;;  %v2432_v1 = vor.u32 %v2781_v60, %v2429_v62  ;;  %v2436_v2 = vor.u32 %v2784_v0, %v2435_v63  ;;  %v2387_v39 = vld [vmem:[#allocation8 + $0x148] sm:$0xf]  ;;  %v2347_v60 = vld [vmem:[#allocation8 + $0x100] sm:$0xf]  ;;  %v2763_v62 = vld [vmem:[#allocation8 + $0x10c] sm:$0xf0] }
 0x3ff   :  { %v2761_v63 = vld [vmem:[#allocation8 + $0x104] sm:$0xf]  ;;  %v2349_v0 = vld [vmem:[#allocation8 + $0x110] sm:$0xf0] }
 0x400   :  { %1458 = vmatpush.bf16.msrb.mxu1 %v2432_v1  ;;  %1471 = vmatpush.bf16.msrb.mxu2 %v2436_v2  ;;  %v2348_v1 = vor.u32 %v2763_v62, %v2347_v60  ;;  %v2352_v2 = vor.u32 %v2761_v63, %v2349_v0  ;;  %v2821_v49 = vld [vmem:[#allocation10 + $0x1e0] sm:$0xff]  ;;  %v2811_v58 = vld [vmem:[#allocation10 + $0x190] sm:$0xff]  ;;  %v2810_v62 = vld [vmem:[#allocation10 + $0x188] sm:$0xff]  ;;  %v1271_v0 = vperm.slane %v3202_v43, 1 }
 0x401   :  { %v2819_v59 = vld [vmem:[#allocation10 + $0x1d0] sm:$0xff]  ;;  %v2793_v60 = vld [vmem:[#allocation10 + $0x100] sm:$0xff]  ;;  %v2818_v63 = vld [vmem:[#allocation10 + $0x1c8] sm:$0xff] }
 0x402   :  { %1483 = vmatpush.bf16.msrb.mxu3 %v2456_v57  ;;  %v2372_v57 = vor.u32 %v2768_v55, %v2371_v53  ;;  %v2812_v53 = vld [vmem:[#allocation10 + $0x198] sm:$0xff] }
 0x403   :  { %v2820_v55 = vld [vmem:[#allocation10 + $0x1d8] sm:$0xff] }
 0x406   :  { %1484 = vmatpush.bf16.msrb.mxu3 %v2440_v5  ;;  %v2762_v5 = vld [vmem:[#allocation8 + $0x10c] sm:$0xf] }
 0x40d   :  { %1240 = vmatmul.bf16.vlgmr.msra.gmra.mxu3 %v1182_v8  ;;  %v2779_v8 = vld [vmem:[#allocation8 + $0x18c] sm:$0xf0] }
 0x474   :  { %v1011_v9 = vpop.f32.mrf.mxu0 }
 0x475   :  { %v1024_v10 = vpop.f32.mrf.mxu1 }
 0x47c   :  { %v1013_v11 = vpop.f32.mrf.mxu0 }
 0x47d   :  { %v1026_v13 = vpop.f32.mrf.mxu1  ;;  %v2413_v11 = vld [vmem:[#allocation8 + $0x190] sm:$0xf0] }
 0x47e   :  { %v2419_v13 = vld [vmem:[#allocation8 + $0x188] sm:$0xf] }
 0x480   :  { %v998_v14 = vpop.f32.mrf.mxu3 }
 0x481   :  { %v999_v15 = vadd.f32 %v998_v14, %v796_v12  ;;  %v1037_v16 = vpop.f32.mrf.mxu2  ;;  %v2780_v12 = vld [vmem:[#allocation8 + $0x194] sm:$0xf0] }
 0x483   :  { %v1012_v17 = vadd.f32 %v1011_v9, %v999_v15  ;;  %v2777_v9 = vld [vmem:[#allocation8 + $0x184] sm:$0xf]  ;;  %v2420_v15 = vor.u32 %v2780_v12, %v2419_v13  ;;  %v2800_v12 = vld [vmem:[#allocation10 + $0x138] sm:$0xff] }
 0x484   :  { %v2416_v14 = vor.u32 %v2777_v9, %v2413_v11  ;;  %v2808_v11 = vld [vmem:[#allocation10 + $0x178] sm:$0xff] }
 0x485   :  { %v1025_v18 = vadd.f32 %v1024_v10, %v1012_v17  ;;  %v2412_v10 = vor.u32 %v2779_v8, %v2411_v6  ;;  %v2421_v17 = vld [vmem:[#allocation8 + $0x198] sm:$0xf0]  ;;  %1472 = vmatpush.bf16.msrb.mxu2 %v2420_v15  ;;  %v2356_v6 = vor.u32 %v2764_v4, %v2355_v3  ;;  %v2809_v3 = vld [vmem:[#allocation10 + $0x180] sm:$0xff] }
 0x486   :  { %1459 = vmatpush.bf16.msrb.mxu1 %v2416_v14  ;;  %v2357_v8 = vld [vmem:[#allocation8 + $0x118] sm:$0xf0]  ;;  %v2807_v14 = vld [vmem:[#allocation10 + $0x170] sm:$0xff]  ;;  %v2817_v4 = vld [vmem:[#allocation10 + $0x1c0] sm:$0xff] }
 0x487   :  { %v3227_v50 = vadd.f32 %v1037_v16, %v1025_v18  ;;  %v2778_v16 = vld [vmem:[#allocation8 + $0x18c] sm:$0xf]  ;;  %1446 = vmatpush.bf16.msrb.mxu0 %v2412_v10  ;;  %v2360_v9 = vor.u32 %v2762_v5, %v2357_v8  ;;  %v2827_v5 = vld [vmem:[#allocation7 + $0x90] sm:$0xff] }
 0x488   :  { %v1000_v19 = vpop.f32.mrf.mxu3  ;;  %v2424_v18 = vor.u32 %v2778_v16, %v2421_v17  ;;  %v2799_v16 = vld [vmem:[#allocation10 + $0x130] sm:$0xff]  ;;  %v2806_v17 = vld [vmem:[#allocation10 + $0x168] sm:$0xff] }
 0x489   :  { %v1039_v21 = vpop.f32.mrf.mxu2  ;;  %v2395_v19 = vld [vmem:[#allocation8 + $0x160] sm:$0xf] }
 0x48a   :  { %v2775_v21 = vld [vmem:[#allocation8 + $0x16c] sm:$0xf0]  ;;  %1485 = vmatpush.bf16.msrb.mxu3 %v2424_v18  ;;  %v2805_v18 = vld [vmem:[#allocation10 + $0x160] sm:$0xff] }
 0x48e   :  { %1486 = vmatpush.bf16.msrb.mxu3 %v2408_v32 }
 0x490   :  { %v1241_v22 = vpop.f32.mrf.mxu3 }
 0x491   :  { %v1242_v24 = vadd.f32 %v1241_v22, %v1183_v25  ;;  %v2773_v25 = vld [vmem:[#allocation8 + $0x164] sm:$0xf]  ;;  %v2396_v22 = vor.u32 %v2775_v21, %v2395_v19 }
 0x492   :  { %1487 = vmatpush.bf16.msrb.mxu3 %v2392_v46  ;;  %v2796_v46 = vld [vmem:[#allocation10 + $0x118] sm:$0xff] }
 0x493   :  { %v3231_v26 = vadd.f32 %v1242_v24, %v3172_v23  ;;  %v2397_v24 = vld [vmem:[#allocation8 + $0x170] sm:$0xf0]  ;;  %1447 = vmatpush.bf16.msrb.mxu0 %v2396_v22  ;;  %v2804_v22 = vld [vmem:[#allocation10 + $0x158] sm:$0xff] }
 0x494   :  { %v2400_v28 = vor.u32 %v2773_v25, %v2397_v24 }
 0x495   :  { %1246 = vadd.xlane.f32.xlu0 %v3231_v26 }
 0x496   :  { %1460 = vmatpush.bf16.msrb.mxu1 %v2400_v28  ;;  %1488 = vmatpush.bf16.msrb.mxu3 %v2376_v61  ;;  %v2829_v61 = vld [vmem:[#allocation7 + $0xa0] sm:$0xff] }
 0x497   :  { %1448 = vmatpush.bf16.msrb.mxu0 %v2380_v37  ;;  %v2803_v37 = vld [vmem:[#allocation10 + $0x150] sm:$0xff] }
 0x498   :  { %v1243_v27 = vpop.f32.mrf.mxu3 }
 0x499   :  { %v2403_v27 = vld [vmem:[#allocation8 + $0x168] sm:$0xf] }
 0x49a   :  { %v2404_v29 = vor.u32 %v2776_v20, %v2403_v27  ;;  %1489 = vmatpush.bf16.msrb.mxu3 %v2360_v9  ;;  %v1266_v20 = vperm.slane %v3221_v54, 3 }
 0x49b   :  { %1449 = vmatpush.bf16.msrb.mxu0 %v2364_v51  ;;  %v2795_v51 = vld [vmem:[#allocation10 + $0x110] sm:$0xff] }
 0x49c   :  { %1473 = vmatpush.bf16.msrb.mxu2 %v2404_v29 }
 0x49f   :  { %1450 = vmatpush.bf16.msrb.mxu0 %v2348_v1  ;;  %v1272_v1 = vperm.slane %v3202_v43, 3 }
 0x4a1   :  { %v1280_v8 = vperm.slane %v1272_v1, 1 }
 0x4a3   :  { %1728 = vmatpush.bf16.msra.mxu0 %v2800_v12 }
 0x4a7   :  { %1729 = vmatpush.bf16.msra.mxu0 %v2799_v16 }
 0x508   :  { %v1247_v23 = vpop.xlane.xlu0 %1246 }
 0x509   :  { %v1248_v40 = vmul.f32 %v1247_v23, %v3176_v35  ;;  %v2772_v23 = vld [vmem:[#allocation8 + $0x154] sm:$0xf0] }
 0x50b   :  { %v3236_v41 = vsub.f32 %v3231_v26, %v1248_v40  ;;  %v2384_v40 = vor.u32 %v2769_v36, %v2381_v38  ;;  %v2824_v36 = vld [vmem:[#allocation10 + $0x1f8] sm:$0xff]  ;;  %v2798_v38 = vld [vmem:[#allocation10 + $0x128] sm:$0xff] }
 0x50c   :  { %1767 = vmatpush.bf16.msra.mxu3 %v2824_v36  ;;  %1730 = vmatpush.bf16.msra.mxu0 %v2798_v38  ;;  %v2840_v38 = vld [vmem:[#allocation7 + $0xf8] sm:$0xff] }
 0x50d   :  { %v1250_v42 = vmul.f32 %v3236_v41, %v3236_v41  ;;  %1461 = vmatpush.bf16.msrb.mxu1 %v2384_v40  ;;  %v2797_v40 = vld [vmem:[#allocation10 + $0x120] sm:$0xff] }
 0x50f   :  { %1251 = vadd.xlane.f32.xlu1 %v1250_v42  ;;  %v2388_v42 = vor.u32 %v2772_v23, %v2387_v39  ;;  %v2815_v39 = vld [vmem:[#allocation10 + $0x1b0] sm:$0xff] }
 0x510   :  { %v2823_v23 = vld [vmem:[#allocation10 + $0x1f0] sm:$0xff]  ;;  %1731 = vmatpush.bf16.msra.mxu0 %v2797_v40 }
 0x511   :  { %1474 = vmatpush.bf16.msrb.mxu2 %v2388_v42  ;;  %1462 = vmatpush.bf16.msrb.mxu1 %v2368_v56  ;;  %v2814_v42 = vld [vmem:[#allocation10 + $0x1a8] sm:$0xff] }
 0x512   :  { %1768 = vmatpush.bf16.msra.mxu3 %v2823_v23  ;;  %v2794_v56 = vld [vmem:[#allocation10 + $0x108] sm:$0xff] }
 0x514   :  { %1732 = vmatpush.bf16.msra.mxu0 %v2796_v46 }
 0x515   :  { %1475 = vmatpush.bf16.msrb.mxu2 %v2372_v57  ;;  %1463 = vmatpush.bf16.msrb.mxu1 %v2352_v2  ;;  %v2830_v57 = vld [vmem:[#allocation7 + $0xa8] sm:$0xff]  ;;  %v2828_v2 = vld [vmem:[#allocation7 + $0x98] sm:$0xff] }
 0x516   :  { %1769 = vmatpush.bf16.msra.mxu3 %v2822_v44 }
 0x518   :  { %1733 = vmatpush.bf16.msra.mxu0 %v2795_v51 }
 0x519   :  { %1476 = vmatpush.bf16.msrb.mxu2 %v2356_v6  ;;  %1741 = vmatpush.bf16.msra.mxu1 %v2808_v11  ;;  %v1279_v6 = vperm.slane %v1271_v0, 1  ;;  %v1273_v11 = vperm.slane %v3202_v43, 5 }
 0x51a   :  { %1770 = vmatpush.bf16.msra.mxu3 %v2821_v49 }
 0x51c   :  { %1734 = vmatpush.bf16.msra.mxu0 %v2794_v56 }
 0x51d   :  { %1742 = vmatpush.bf16.msra.mxu1 %v2807_v14  ;;  %1754 = vmatpush.bf16.msra.mxu2 %v2816_v34 }
 0x51e   :  { %1771 = vmatpush.bf16.msra.mxu3 %v2820_v55 }
 0x520   :  { %1735 = vmatpush.bf16.msra.mxu0 %v2793_v60 }
 0x521   :  { %1743 = vmatpush.bf16.msra.mxu1 %v2806_v17  ;;  %1755 = vmatpush.bf16.msra.mxu2 %v2815_v39 }
 0x522   :  { %1772 = vmatpush.bf16.msra.mxu3 %v2819_v59 }
 0x525   :  { %1744 = vmatpush.bf16.msra.mxu1 %v2805_v18  ;;  %1756 = vmatpush.bf16.msra.mxu2 %v2814_v42  ;;  %v1281_v18 = vperm.slane %v1273_v11, 1 }
 0x526   :  { %1773 = vmatpush.bf16.msra.mxu3 %v2818_v63 }
 0x529   :  { %1745 = vmatpush.bf16.msra.mxu1 %v2804_v22  ;;  %1757 = vmatpush.bf16.msra.mxu2 %v2813_v48  ;;  %v2838_v48 = vld [vmem:[#allocation7 + $0xe8] sm:$0xff] }
 0x52a   :  { %1774 = vmatpush.bf16.msra.mxu3 %v2817_v4 }
 0x52d   :  { %1746 = vmatpush.bf16.msra.mxu1 %v2803_v37  ;;  %1758 = vmatpush.bf16.msra.mxu2 %v2812_v53 }
 0x531   :  { %1759 = vmatpush.bf16.msra.mxu2 %v2811_v58 }
 0x535   :  { %1760 = vmatpush.bf16.msra.mxu2 %v2810_v62 }
 0x539   :  { %1761 = vmatpush.bf16.msra.mxu2 %v2809_v3 }
 0x582   :  { %v1252_v10 = vpop.xlane.xlu1 %1251 }
 0x583   :  { %v1253_v13 = vmul.f32 %v1252_v10, %v3176_v35 }
 0x585   :  { %v1254_v15 = vadd.f32 1e-05, %v1253_v13  ;;  %v1274_v13 = vperm.slane %v3202_v43, 7 }
 0x587   :  { %2872 = vrsqrt.f32 %v1254_v15  ;;  %vm1261_vm11 = vweird.f32 %v1254_v15 }
 0x58d   :  { %v2873_v19 = vpop.eup %2872 }
 0x58e   :  { %v1256_v21 = vmul.f32 %v2873_v19, %v1254_v15  ;;  %vm1262_vm10 = vweird.f32 %v2873_v19  ;;  %v2826_v15 = vld [vmem:[#allocation7 + $0x88] sm:$0xff] }
 0x58f   :  { %vm1263_vm12 = vmor %vm1261_vm11, %vm1262_vm10 }
 0x590   :  { %v1257_v25 = vmul.f32 %v2873_v19, %v1256_v21  ;;  %v2825_v21 = vld [vmem:[#allocation7 + $0x80] sm:$0xff] }
 0x592   :  { %v1258_v24 = vmul.f32 0.5, %v1257_v25 }
 0x594   :  { %v1259_v27 = vsub.f32 1.5, %v1258_v24 }
 0x596   :  { %v1260_v35 = vmul.f32 %v2873_v19, %v1259_v27 }
 0x598   :  { %v1264_v28 = vsel %vm1263_vm12, %v2873_v19, %v1260_v35  ;;  %v1282_v19 = vperm.slane %v1274_v13, 1  ;;  %v2837_v13 = vld [vmem:[#allocation7 + $0xe0] sm:$0xff] }
 0x599   :  { %v1265_v29 = vmul.f32 %v1264_v28, %v3236_v41  ;;  %v2802_v41 = vld [vmem:[#allocation10 + $0x148] sm:$0xff] }
 0x59a   :  { %1747 = vmatpush.bf16.msra.mxu1 %v2802_v41  ;;  %v2839_v41 = vld [vmem:[#allocation7 + $0xf0] sm:$0xff] }
 0x59b   :  { %v1267_v31 = vmul.f32 %v1266_v20, %v1265_v29 }
 0x59d   :  { %v1269_v32 = vadd.f32 %v1268_v30, %v1267_v31 }
 0x59e   :  { %1748 = vmatpush.bf16.msra.mxu1 %v2801_v45 }
 0x59f   :  { %v1270_v33 = vpack.c.bf16 %v1269_v32, %v1269_v32 }
 0x5a1   :  { %1451 = vmatmul.bf16.vlgmr.msrb.gmra.mxu0 %v1270_v33  ;;  %1464 = vmatmul.bf16.vlgmr.msrb.gmra.mxu1 %v1270_v33 }
 0x5a2   :  { %1477 = vmatmul.bf16.vlgmr.msrb.gmra.mxu2 %v1270_v33  ;;  %1490 = vmatmul.bf16.vlgmr.msrb.gmra.mxu3 %v1270_v33 }
 0x5a3   :  { %1925 = vmatpush.bf16.msrb.mxu1 %v2832_v47  ;;  %1864 = vmatpush.bf16.msrb.mxu0 %v2840_v38 }
 0x5a7   :  { %1926 = vmatpush.bf16.msrb.mxu1 %v2831_v52  ;;  %1865 = vmatpush.bf16.msrb.mxu0 %v2839_v41 }
 0x5ab   :  { %1927 = vmatpush.bf16.msrb.mxu1 %v2830_v57  ;;  %1866 = vmatpush.bf16.msrb.mxu0 %v2838_v48 }
 0x5af   :  { %1928 = vmatpush.bf16.msrb.mxu1 %v2829_v61  ;;  %1867 = vmatpush.bf16.msrb.mxu0 %v2837_v13 }
 0x5b3   :  { %1929 = vmatpush.bf16.msrb.mxu1 %v2828_v2 }
 0x5b7   :  { %1930 = vmatpush.bf16.msrb.mxu1 %v2827_v5 }
 0x5bb   :  { %1931 = vmatpush.bf16.msrb.mxu1 %v2826_v15  ;;  %v2834_v15 = vld [vmem:[#allocation7 + $0xc8] sm:$0xff] }
 0x5bf   :  { %1932 = vmatpush.bf16.msrb.mxu1 %v2825_v21 }
 0x61e   :  { %v1452_v9 = vpop.f32.mrf.mxu0  ;;  %v1465_v10 = vpop.f32.mrf.mxu1 }
 0x61f   :  { %v1453_v12 = vadd.f32 %v1452_v9, %v1279_v6  ;;  %v1466_v14 = vadd.f32 %v1465_v10, %v1280_v8  ;;  %v1041_v10 = vadd.f32 %v3227_v50, %v3189_v7 }
 0x621   :  { %v1495_v16 = vmul.f32 0.044715, %v1453_v12  ;;  %v1496_v17 = vmul.f32 0.044715, %v1466_v14  ;;  %v1515_v55 = vmul.f32 0.5, %v1453_v12  ;;  %v1516_v57 = vmul.f32 0.5, %v1466_v14 }
 0x622   :  { %v1042_v11 = vpack.c.bf16 %v1041_v10, %v1041_v10 }
 0x623   :  { %v1499_v25 = vmul.f32 %v1495_v16, %v1453_v12  ;;  %v1500_v22 = vmul.f32 %v1496_v17, %v1466_v14  ;;  %v2833_v16 = vld [vmem:[#allocation7 + $0xc0] sm:$0xff] }
 0x625   :  { %v1503_v24 = vmul.f32 %v1499_v25, %v1453_v12  ;;  %v1504_v27 = vmul.f32 %v1500_v22, %v1466_v14  ;;  %v1478_v35 = vpop.f32.mrf.mxu2  ;;  %v1491_v20 = vpop.f32.mrf.mxu3 }
 0x626   :  { %v1479_v28 = vadd.f32 %v1478_v35, %v1281_v18  ;;  %v1492_v29 = vadd.f32 %v1491_v20, %v1282_v19  ;;  %v1454_v30 = vpop.f32.mrf.mxu0  ;;  %v1467_v43 = vpop.f32.mrf.mxu1  ;;  %v1535_v19 = vperm.slane %v3221_v54, 5 }
 0x627   :  { %v1507_v31 = vadd.f32 %v1503_v24, %v1453_v12  ;;  %v1508_v32 = vadd.f32 %v1504_v27, %v1466_v14  ;;  %v2836_v12 = vld [vmem:[#allocation7 + $0xd8] sm:$0xff]  ;;  %v2835_v14 = vld [vmem:[#allocation7 + $0xd0] sm:$0xff] }
 0x628   :  { %v1497_v33 = vmul.f32 0.044715, %v1479_v28  ;;  %v1498_v34 = vmul.f32 0.044715, %v1492_v29  ;;  %v1517_v1 = vmul.f32 0.5, %v1479_v28  ;;  %v1518_v3 = vmul.f32 0.5, %v1492_v29  ;;  %1868 = vmatpush.bf16.msrb.mxu0 %v2836_v12 }
 0x629   :  { %v1511_v36 = vmul.f32 0.7978846, %v1507_v31  ;;  %v1512_v37 = vmul.f32 0.7978846, %v1508_v32  ;;  %v1938_v32 = vperm.slane %v3221_v54, 6 }
 0x62a   :  { %v1501_v39 = vmul.f32 %v1497_v33, %v1479_v28  ;;  %v1502_v23 = vmul.f32 %v1498_v34, %v1492_v29 }
 0x62b   :  { %2874 = vtanh.f32 %v1511_v36 }
 0x62c   :  { %v1505_v40 = vmul.f32 %v1501_v39, %v1479_v28  ;;  %v1506_v42 = vmul.f32 %v1502_v23, %v1492_v29  ;;  %2876 = vtanh.f32 %v1512_v37  ;;  %1869 = vmatpush.bf16.msrb.mxu0 %v2835_v14 }
 0x62d   :  { %v1480_v44 = vpop.f32.mrf.mxu2  ;;  %v1493_v45 = vpop.f32.mrf.mxu3 }
 0x62e   :  { %v1509_v46 = vadd.f32 %v1505_v40, %v1479_v28  ;;  %v1510_v47 = vadd.f32 %v1506_v42, %v1492_v29 }
 0x630   :  { %v1513_v49 = vmul.f32 0.7978846, %v1509_v46  ;;  %v1514_v51 = vmul.f32 0.7978846, %v1510_v47  ;;  %1870 = vmatpush.bf16.msrb.mxu0 %v2834_v15 }
 0x631   :  { %v2875_v52 = vpop.eup %2874 }
 0x632   :  { %v2877_v53 = vpop.eup %2876  ;;  %v1523_v56 = vadd.f32 1.0, %v2875_v52  ;;  %2878 = vtanh.f32 %v1513_v49 }
 0x633   :  { %v1524_v58 = vadd.f32 1.0, %v2877_v53  ;;  %2880 = vtanh.f32 %v1514_v51 }
 0x634   :  { %v1527_v59 = vmul.f32 %v1523_v56, %v1515_v55  ;;  %1871 = vmatpush.bf16.msrb.mxu0 %v2833_v16 }
 0x635   :  { %v1528_v60 = vmul.f32 %v1524_v58, %v1516_v57 }
 0x636   :  { %v1531_v61 = vpack.c.bf16 %v1527_v59, %v1527_v59 }
 0x637   :  { %v1532_v62 = vpack.c.bf16 %v1528_v60, %v1528_v60 }
 0x638   :  { %v2879_v63 = vpop.eup %2878  ;;  %1736 = vmatmul.bf16.vlgmr.msra.gmra.mxu0 %v1531_v61 }
 0x639   :  { %v2881_v0 = vpop.eup %2880  ;;  %1749 = vmatmul.bf16.vlgmr.msra.gmra.mxu1 %v1532_v62  ;;  %v1525_v2 = vadd.f32 1.0, %v2879_v63 }
 0x63a   :  { %v1526_v4 = vadd.f32 1.0, %v2881_v0 }
 0x63b   :  { %v1529_v5 = vmul.f32 %v1525_v2, %v1517_v1 }
 0x63c   :  { %v1530_v6 = vmul.f32 %v1526_v4, %v1518_v3 }
 0x63d   :  { %v1533_v8 = vpack.c.bf16 %v1529_v5, %v1529_v5 }
 0x63e   :  { %v1534_v9 = vpack.c.bf16 %v1530_v6, %v1530_v6 }
 0x63f   :  { %1762 = vmatmul.bf16.vlgmr.msra.gmra.mxu2 %v1533_v8 }
 0x640   :  { %1775 = vmatmul.bf16.vlgmr.msra.gmra.mxu3 %v1534_v9 }
 0x649   :  { %1933 = vmatmul.bf16.vlgmr.msrb.gmra.mxu1 %v1042_v11 }
 0x6b5   :  { %v1737_v17 = vpop.f32.mrf.mxu0 }
 0x6b6   :  { %v1750_v18 = vpop.f32.mrf.mxu1  ;;  %v1738_v21 = vadd.f32 %v1737_v17, %v1535_v19 }
 0x6b8   :  { %v1751_v7 = vadd.f32 %v1750_v18, %v1738_v21 }
 0x6bd   :  { %v1739_v25 = vpop.f32.mrf.mxu0 }
 0x6be   :  { %v1752_v22 = vpop.f32.mrf.mxu1 }
 0x6c2   :  { %v1763_v50 = vpop.f32.mrf.mxu2 }
 0x6c3   :  { %v1764_v24 = vadd.f32 %v1763_v50, %v1751_v7  ;;  %v1776_v27 = vpop.f32.mrf.mxu3 }
 0x6c5   :  { %v1777_v35 = vadd.f32 %v1776_v27, %v1764_v24 }
 0x6c6   :  { %v1934_v20 = vpop.f32.mrf.mxu1 }
 0x6c7   :  { %v1780_v28 = vadd.f32 %v1777_v35, %v3231_v26 }
 0x6c9   :  { %v1781_v29 = vpack.c.bf16 %v1780_v28, %v1780_v28 }
 0x6ca   :  { %v1765_v30 = vpop.f32.mrf.mxu2 }
 0x6cb   :  { %v1778_v43 = vpop.f32.mrf.mxu3  ;;  %1872 = vmatmul.bf16.vlgmr.msrb.gmra.mxu0 %v1781_v29 }
 0x6ce   :  { %v1936_v31 = vpop.f32.mrf.mxu1 }
 0x748   :  { %v1873_v33 = vpop.f32.mrf.mxu0 }
 0x749   :  { %v1935_v34 = vadd.f32 %v1934_v20, %v1873_v33 }
 0x74b   :  { %v1939_v36 = vadd.f32 %v1938_v32, %v1935_v34 }
 0x74d   :  { %1940 = vst [vmem:[#allocation14] sm:$0xff] %v1939_v36 }
 0x74e   :  { %1951 = dma.vmem_to_hbm [thread:$0]  %s1947_s9, 128, %s1949_s15, [#allocation4]  }
 0x750   :  { %v1875_v26 = vpop.f32.mrf.mxu0 }
 0x751   :  { %3082 = dma.done.wait [#allocation4], 128  }
 0x752   :  { %3083 = vsyncadd [#allocation4], 4294967168 }
 0x753   :  { %1956 = vsyncpa [#allocation3], 1 }
 0x754   :  { %1957 = vsyncpa [#allocation6], 1 }
 0x755   :  { %1958 = vsyncpa [#allocation9], 1 }
 0x756   :  { %1959 = vsyncpa [#allocation12], 1 }
 0x757   :  { %1960 = vsyncpa [#allocation4], 1 }

</bundles_post_ra>
